<compile_context>
chip_gen: v5e
topology: v5e:2x2
jax: 0.10.0
libtpu: 0.0.40
codegen_flags: <defaults>
</compile_context>

<pallas_src>
import functools

import jax
import jax.numpy as jnp
from jax.experimental import pallas as pl
from jax.experimental.pallas import tpu as pltpu


CPAD = 128  # lane-dense padded channel / feature width


def _round_up(x, m):
    return ((x + m - 1) // m) * m


def _tile_rows(M, cap=256):
    """Pick an M-tile (multiple of 16, <= cap) and the padded M it divides."""
    Mp = _round_up(M, 16)
    if Mp <= cap:
        return Mp, Mp
    return cap, _round_up(M, cap)


# --------------------------------------------------------------------------
# Pallas kernels
# --------------------------------------------------------------------------
def _matmul_bias_relu_kernel(x_ref, w_ref, b_ref, o_ref):
    """One M-tile of:  y = relu(x @ w + b).  bf16 operands, f32 epilogue."""
    y = jnp.dot(x_ref[...], w_ref[...], preferred_element_type=jnp.float32)
    y = y + b_ref[...]                       # (1, 128) broadcast over rows
    o_ref[...] = jnp.maximum(y, 0.0).astype(o_ref.dtype)


def _maxpool2x2_kernel(x_ref, o_ref):
    """2x2 max-pool.  x block: (tr, 2, OW, 2*C);  out block: (tr, OW, C)."""
    v = x_ref[...]
    r = jnp.maximum(v[:, 0], v[:, 1])        # max over the row pair
    c = o_ref.shape[-1]
    o_ref[...] = jnp.maximum(r[..., :c], r[..., c:])   # max over the col pair


def _fc_head_kernel(x_ref, w1_ref, b1_ref, w2_ref, b2_ref, o_ref, *, num_classes):
    """Fused fc1 -> relu -> (dropout id) -> fc2 -> log_softmax; h stays in VMEM."""
    h = jnp.dot(x_ref[...], w1_ref[...], preferred_element_type=jnp.float32)
    h = jnp.maximum(h + b1_ref[...], 0.0)
    # TODO(synk): F.dropout(training=True) RNG mask not implemented (identity).
    logits = jnp.dot(h.astype(w2_ref.dtype), w2_ref[...],
                     preferred_element_type=jnp.float32)
    logits = logits + b2_ref[...]
    col = jax.lax.broadcasted_iota(jnp.int32, logits.shape, 1)
    logits = jnp.where(col < num_classes, logits, -1e30)   # mask padded classes
    m = jnp.max(logits, axis=-1, keepdims=True)
    s = logits - m
    lse = jnp.log(jnp.sum(jnp.exp(s), axis=-1, keepdims=True))
    o_ref[...] = (s - lse).astype(o_ref.dtype)


# --------------------------------------------------------------------------
# Pallas wrappers
# --------------------------------------------------------------------------
def matmul_bias_relu(x, w, b, *, tm_cap=256):
    """x: (M, K) bf16, w: (K, 128) bf16, b: (1, 128) f32 -> (M, 128) f32."""
    M, K = x.shape
    Kw, Np = w.shape
    assert K == Kw
    tm, Mp = _tile_rows(M, tm_cap)
    if Mp != M:
        x = jnp.pad(x, ((0, Mp - M), (0, 0)))
    out = pl.pallas_call(
        _matmul_bias_relu_kernel,
        out_shape=jax.ShapeDtypeStruct((Mp, Np), jnp.float32),
        grid=(Mp // tm,),
        in_specs=[
            pl.BlockSpec((tm, K), lambda i: (i, 0)),
            pl.BlockSpec((K, Np), lambda i: (0, 0)),
            pl.BlockSpec((1, Np), lambda i: (0, 0)),
        ],
        out_specs=pl.BlockSpec((tm, Np), lambda i: (i, 0)),
        compiler_params=pltpu.CompilerParams(dimension_semantics=("parallel",)),
    )(x, w, b)
    return out[:M] if Mp != M else out


def maxpool2x2(x, *, tr_cap=256):
    """x: (N, H, W, C) f32 (C multiple of 128) -> (N, H//2, W//2, C) f32."""
    N, H, W, C = x.shape
    OH, OW = H // 2, W // 2
    R = N * OH
    xr = x.reshape(R, 2, OW, 2 * C)          # pure reshape, no relayout
    if R <= tr_cap:
        tr, Rp = R, R
    else:
        tr = tr_cap
        Rp = _round_up(R, tr)
        xr = jnp.pad(xr, ((0, Rp - R), (0, 0), (0, 0), (0, 0)))
    out = pl.pallas_call(
        _maxpool2x2_kernel,
        out_shape=jax.ShapeDtypeStruct((Rp, OW, C), jnp.float32),
        grid=(Rp // tr,),
        in_specs=[pl.BlockSpec((tr, 2, OW, 2 * C), lambda i: (i, 0, 0, 0))],
        out_specs=pl.BlockSpec((tr, OW, C), lambda i: (i, 0, 0)),
        compiler_params=pltpu.CompilerParams(dimension_semantics=("parallel",)),
    )(xr)
    if Rp != R:
        out = out[:R]
    return out.reshape(N, OH, OW, C)


def fc_head(x, w1, b1, w2, b2, *, num_classes, tm_cap=256):
    """x: (M, K) bf16 -> log_softmax(relu(x@w1+b1)@w2+b2): (M, num_classes) f32."""
    M, K = x.shape
    H = w1.shape[1]
    Np = w2.shape[1]
    tm, Mp = _tile_rows(M, tm_cap)
    if Mp != M:
        x = jnp.pad(x, ((0, Mp - M), (0, 0)))
    kernel = functools.partial(_fc_head_kernel, num_classes=num_classes)
    out = pl.pallas_call(
        kernel,
        out_shape=jax.ShapeDtypeStruct((Mp, Np), jnp.float32),
        grid=(Mp // tm,),
        in_specs=[
            pl.BlockSpec((tm, K), lambda i: (i, 0)),
            pl.BlockSpec((K, H), lambda i: (0, 0)),
            pl.BlockSpec((1, H), lambda i: (0, 0)),
            pl.BlockSpec((H, Np), lambda i: (0, 0)),
            pl.BlockSpec((1, Np), lambda i: (0, 0)),
        ],
        out_specs=pl.BlockSpec((tm, Np), lambda i: (i, 0)),
        compiler_params=pltpu.CompilerParams(dimension_semantics=("parallel",)),
    )(x, w1, b1, w2, b2)
    return out[:M, :num_classes]


# --------------------------------------------------------------------------
# JAX glue
# --------------------------------------------------------------------------
def im2col(x, kh, kw):
    """x: (N, H, W, C) -> patches (N*OH*OW, kh*kw*C), K order = (kh, kw, c)."""
    N, H, W, C = x.shape
    oh, ow = H - kh + 1, W - kw + 1
    cols = []
    for i in range(kh):
        for j in range(kw):
            cols.append(x[:, i:i + oh, j:j + ow, :])
    patches = jnp.concatenate(cols, axis=-1)          # (N, oh, ow, kh*kw*C)
    return patches.reshape(N * oh * ow, kh * kw * C)


def init_params(key, num_channels=1, num_classes=10):
    """PyTorch-style uniform init for CNNMnist."""
    def uni(k, shape, fan_in):
        bound = 1.0 / float(fan_in) ** 0.5
        return jax.random.uniform(k, shape, jnp.float32, -bound, bound)

    ks = jax.random.split(key, 8)
    return {
        "conv1_w": uni(ks[0], (10, num_channels, 5, 5), num_channels * 25),
        "conv1_b": uni(ks[1], (10,), num_channels * 25),
        "conv2_w": uni(ks[2], (20, 10, 5, 5), 10 * 25),
        "conv2_b": uni(ks[3], (20,), 10 * 25),
        "fc1_w": uni(ks[4], (50, 320), 320),
        "fc1_b": uni(ks[5], (50,), 320),
        "fc2_w": uni(ks[6], (num_classes, 50), 50),
        "fc2_b": uni(ks[7], (50,), 50)[:num_classes] if num_classes <= 50
                  else uni(ks[7], (num_classes,), 50),
    }


def preprocess_params(params, num_channels, num_classes):
    """One-time weight prep: matmul layout, zero-pad to lane-dense 128, bf16."""
    assert num_classes <= CPAD
    f32, bf16 = jnp.float32, jnp.bfloat16

    def pad_bias(b):
        return jnp.pad(b, (0, CPAD - b.shape[0])).reshape(1, CPAD).astype(f32)

    # conv1: (10, Cin, 5, 5) -> (Kp1, 128), K order (kh, kw, cin), K padded.
    w = jnp.transpose(params["conv1_w"], (2, 3, 1, 0)).reshape(
        25 * num_channels, 10)
    k1 = _round_up(25 * num_channels, 32)
    conv1_w = jnp.pad(w, ((0, k1 - w.shape[0]), (0, CPAD - 10))).astype(bf16)

    # conv2: (20, 10, 5, 5) -> (25*CPAD, 128); input channels padded to CPAD.
    w = jnp.transpose(params["conv2_w"], (2, 3, 1, 0))           # (5,5,10,20)
    w = jnp.pad(w, ((0, 0), (0, 0), (0, CPAD - 10), (0, CPAD - 20)))
    conv2_w = w.reshape(25 * CPAD, CPAD).astype(bf16)

    # fc1: (50, 320) torch flatten order (c,h,w) -> NHWC-padded flatten order.
    w = params["fc1_w"].reshape(50, 20, 4, 4)                    # (out,c,h,w)
    w = jnp.transpose(w, (2, 3, 1, 0))                           # (h,w,c,out)
    w = jnp.pad(w, ((0, 0), (0, 0), (0, CPAD - 20), (0, CPAD - 50)))
    fc1_w = w.reshape(4 * 4 * CPAD, CPAD).astype(bf16)

    # fc2: (nc, 50) -> (128, 128)
    w = params["fc2_w"].T                                        # (50, nc)
    fc2_w = jnp.pad(w, ((0, CPAD - 50), (0, CPAD - num_classes))).astype(bf16)

    return {
        "conv1_w": conv1_w, "conv1_b": pad_bias(params["conv1_b"]),
        "conv2_w": conv2_w, "conv2_b": pad_bias(params["conv2_b"]),
        "fc1_w": fc1_w, "fc1_b": pad_bias(params["fc1_b"]),
        "fc2_w": fc2_w, "fc2_b": pad_bias(params["fc2_b"]),
    }


def cnn_mnist_forward(x_nchw, pp, *, num_classes):
    """x_nchw: (N, C, 28, 28) f32 -> log-probs (N, num_classes) f32."""
    N, _, H, W = x_nchw.shape
    x = jnp.transpose(x_nchw, (0, 2, 3, 1)).astype(jnp.bfloat16)   # NHWC bf16

    # conv1 + bias + relu  (fused), then 2x2 max-pool
    oh1, ow1 = H - 4, W - 4
    p1 = im2col(x, 5, 5)                                  # (N*oh1*ow1, 25*Cin)
    k1 = pp["conv1_w"].shape[0]
    if p1.shape[1] != k1:
        p1 = jnp.pad(p1, ((0, 0), (0, k1 - p1.shape[1])))
    y1 = matmul_bias_relu(p1, pp["conv1_w"], pp["conv1_b"])
    y1 = y1.reshape(N, oh1, ow1, CPAD)
    x = maxpool2x2(y1)                                    # (N, 12, 12, 128)

    # conv2 + bias + relu (dropout2d = identity), then 2x2 max-pool
    oh2, ow2 = x.shape[1] - 4, x.shape[2] - 4
    p2 = im2col(x.astype(jnp.bfloat16), 5, 5)             # (N*oh2*ow2, 25*128)
    y2 = matmul_bias_relu(p2, pp["conv2_w"], pp["conv2_b"])
    y2 = y2.reshape(N, oh2, ow2, CPAD)
    x = maxpool2x2(y2)                                    # (N, 4, 4, 128)

    # flatten is a free reshape (fc1 weight pre-permuted to NHWC-padded order)
    xf = x.reshape(N, x.shape[1] * x.shape[2] * CPAD).astype(jnp.bfloat16)

    # fc1 -> relu -> dropout(id) -> fc2 -> log_softmax fused in one kernel
    return fc_head(xf, pp["fc1_w"], pp["fc1_b"], pp["fc2_w"], pp["fc2_b"],
                   num_classes=num_classes)


# --------------------------------------------------------------------------
# Demo
# --------------------------------------------------------------------------
if __name__ == "__main__":
    key = jax.random.PRNGKey(0)
    k_params, k_x = jax.random.split(key)

    num_channels, num_classes, batch = 1, 10, 2
    params = init_params(k_params, num_channels, num_classes)
    pp = preprocess_params(params, num_channels, num_classes)

    # 28x28 spatial is implied by fc1 in_features = 320 = 20 * 4 * 4.
    x = jax.random.normal(k_x, (batch, num_channels, 28, 28), jnp.float32)

    fwd = jax.jit(cnn_mnist_forward, static_argnames=("num_classes",))
    out = fwd(x, pp, num_classes=num_classes)
    out = jax.block_until_ready(out)

    assert out.shape == (batch, num_classes)
    # log_softmax rows must normalize (sanity check).
    row_sums = jnp.sum(jnp.exp(out), axis=1)
    assert bool(jnp.all(jnp.abs(row_sums - 1.0) < 1e-4))

    print("KERNEL_OK")
</pallas_src>

<mosaic_0001>
module attributes {stable_mosaic.version = 11 : i64} {
  func.func @_matmul_bias_relu_kernel(%arg0: i32, %arg1: memref<256x32xbf16, #tpu.memory_space<vmem>>, %arg2: memref<32x128xbf16, #tpu.memory_space<vmem>>, %arg3: memref<1x128xf32, #tpu.memory_space<vmem>>, %arg4: memref<256x128xf32, #tpu.memory_space<vmem>>) attributes {dimension_semantics = [#tpu.dimension_semantics<parallel>], iteration_bounds = array<i64: 5>, scalar_prefetch = 0 : i64, scratch_operands = 0 : i64, tpu.core_type = #tpu.core_type<tc>, window_params = [{transform_indices = @transform_0, window_bounds = array<i64: 256, 32>}, {pipeline_mode = #tpu.pipeline_mode<synchronous>, transform_indices = @transform_1, window_bounds = array<i64: 32, 128>}, {pipeline_mode = #tpu.pipeline_mode<synchronous>, transform_indices = @transform_2, window_bounds = array<i64: 1, 128>}, {transform_indices = @transform_3, window_bounds = array<i64: 256, 128>}]} {
    %c0 = arith.constant 0 : index
    %c0_0 = arith.constant 0 : index
    %0 = vector.load %arg1[%c0, %c0_0] : memref<256x32xbf16, #tpu.memory_space<vmem>>, vector<256x32xbf16>
    %c0_1 = arith.constant 0 : index
    %c0_2 = arith.constant 0 : index
    %1 = vector.load %arg2[%c0_1, %c0_2] : memref<32x128xbf16, #tpu.memory_space<vmem>>, vector<32x128xbf16>
    %cst = arith.constant dense<0.000000e+00> : vector<256x128xf32>
    %2 = tpu.matmul %0, %1, %cst {dimension_numbers = #tpu.dot_dimension_numbers<[1], [0], [0], [1], [0, 0, 1, 1], [], []>} : vector<256x32xbf16>, vector<32x128xbf16>, vector<256x128xf32> -> vector<256x128xf32>
    %c0_3 = arith.constant 0 : index
    %c0_4 = arith.constant 0 : index
    %3 = vector.load %arg3[%c0_3, %c0_4] : memref<1x128xf32, #tpu.memory_space<vmem>>, vector<1x128xf32>
    %4 = vector.broadcast %3 : vector<1x128xf32> to vector<256x128xf32>
    %5 = arith.addf %2, %4 : vector<256x128xf32>
    %cst_5 = arith.constant 0.000000e+00 : f32
    %6 = vector.broadcast %cst_5 : f32 to vector<256x128xf32>
    %7 = arith.maximumf %5, %6 : vector<256x128xf32>
    %c0_6 = arith.constant 0 : index
    %c0_7 = arith.constant 0 : index
    %8 = vector.load %arg4[%c0_6, %c0_7] : memref<256x128xf32, #tpu.memory_space<vmem>>, vector<256x128xf32>
    tpu.vector_store %arg4[%c0_6, %c0_7], %7 {strides = array<i32>} : memref<256x128xf32, #tpu.memory_space<vmem>>, vector<256x128xf32>,
    return
  }
  func.func @transform_0(%arg0: i32) -> (i32, i32) {
    %c0_i32 = arith.constant 0 : i32
    %c0_i32_0 = arith.constant 0 : i32
    return %arg0, %c0_i32 : i32, i32
  }
  func.func @transform_1(%arg0: i32) -> (i32, i32) {
    %c0_i32 = arith.constant 0 : i32
    %c0_i32_0 = arith.constant 0 : i32
    %c0_i32_1 = arith.constant 0 : i32
    return %c0_i32, %c0_i32_0 : i32, i32
  }
  func.func @transform_2(%arg0: i32) -> (i32, i32) {
    %c0_i32 = arith.constant 0 : i32
    %c0_i32_0 = arith.constant 0 : i32
    %c0_i32_1 = arith.constant 0 : i32
    return %c0_i32, %c0_i32_0 : i32, i32
  }
  func.func @transform_3(%arg0: i32) -> (i32, i32) {
    %c0_i32 = arith.constant 0 : i32
    %c0_i32_0 = arith.constant 0 : i32
    return %arg0, %c0_i32 : i32, i32
  }
}

module attributes {stable_mosaic.version = 11 : i64} {
  func.func @_maxpool2x2_kernel(%arg0: i32, %arg1: memref<24x2x12x256xf32, #tpu.memory_space<vmem>>, %arg2: memref<24x12x128xf32, #tpu.memory_space<vmem>>) attributes {dimension_semantics = [#tpu.dimension_semantics<parallel>], iteration_bounds = array<i64: 1>, scalar_prefetch = 0 : i64, scratch_operands = 0 : i64, tpu.core_type = #tpu.core_type<tc>, window_params = [{transform_indices = @transform_0, window_bounds = array<i64: 24, 2, 12, 256>}, {transform_indices = @transform_1, window_bounds = array<i64: 24, 12, 128>}]} {
    %c0 = arith.constant 0 : index
    %c0_0 = arith.constant 0 : index
    %c0_1 = arith.constant 0 : index
    %c0_2 = arith.constant 0 : index
    %0 = vector.load %arg1[%c0, %c0_0, %c0_1, %c0_2] : memref<24x2x12x256xf32, #tpu.memory_space<vmem>>, vector<24x2x12x256xf32>
    %1 = vector.extract_strided_slice %0 {offsets = [0, 0, 0, 0], sizes = [24, 1, 12, 256], strides = [1, 1, 1, 1]} : vector<24x2x12x256xf32> to vector<24x1x12x256xf32>
    %2 = vector.shape_cast %1 : vector<24x1x12x256xf32> to vector<24x12x256xf32>
    %3 = vector.extract_strided_slice %0 {offsets = [0, 1, 0, 0], sizes = [24, 1, 12, 256], strides = [1, 1, 1, 1]} : vector<24x2x12x256xf32> to vector<24x1x12x256xf32>
    %4 = vector.shape_cast %3 : vector<24x1x12x256xf32> to vector<24x12x256xf32>
    %5 = arith.maximumf %2, %4 : vector<24x12x256xf32>
    %6 = vector.extract_strided_slice %5 {offsets = [0, 0, 0], sizes = [24, 12, 128], strides = [1, 1, 1]} : vector<24x12x256xf32> to vector<24x12x128xf32>
    %7 = vector.extract_strided_slice %5 {offsets = [0, 0, 128], sizes = [24, 12, 128], strides = [1, 1, 1]} : vector<24x12x256xf32> to vector<24x12x128xf32>
    %8 = arith.maximumf %6, %7 : vector<24x12x128xf32>
    %c0_3 = arith.constant 0 : index
    %c0_4 = arith.constant 0 : index
    %c0_5 = arith.constant 0 : index
    %9 = vector.load %arg2[%c0_3, %c0_4, %c0_5] : memref<24x12x128xf32, #tpu.memory_space<vmem>>, vector<24x12x128xf32>
    tpu.vector_store %arg2[%c0_3, %c0_4, %c0_5], %8 {strides = array<i32>} : memref<24x12x128xf32, #tpu.memory_space<vmem>>, vector<24x12x128xf32>,
    return
  }
  func.func @transform_0(%arg0: i32) -> (i32, i32, i32, i32) {
    %c0_i32 = arith.constant 0 : i32
    %c0_i32_0 = arith.constant 0 : i32
    %c0_i32_1 = arith.constant 0 : i32
    %c0_i32_2 = arith.constant 0 : i32
    return %arg0, %c0_i32, %c0_i32_0, %c0_i32_1 : i32, i32, i32, i32
  }
  func.func @transform_1(%arg0: i32) -> (i32, i32, i32) {
    %c0_i32 = arith.constant 0 : i32
    %c0_i32_0 = arith.constant 0 : i32
    %c0_i32_1 = arith.constant 0 : i32
    return %arg0, %c0_i32, %c0_i32_0 : i32, i32, i32
  }
}

module attributes {stable_mosaic.version = 11 : i64} {
  func.func @_maxpool2x2_kernel(%arg0: i32, %arg1: memref<8x2x4x256xf32, #tpu.memory_space<vmem>>, %arg2: memref<8x4x128xf32, #tpu.memory_space<vmem>>) attributes {dimension_semantics = [#tpu.dimension_semantics<parallel>], iteration_bounds = array<i64: 1>, scalar_prefetch = 0 : i64, scratch_operands = 0 : i64, tpu.core_type = #tpu.core_type<tc>, window_params = [{transform_indices = @transform_0, window_bounds = array<i64: 8, 2, 4, 256>}, {transform_indices = @transform_1, window_bounds = array<i64: 8, 4, 128>}]} {
    %c0 = arith.constant 0 : index
    %c0_0 = arith.constant 0 : index
    %c0_1 = arith.constant 0 : index
    %c0_2 = arith.constant 0 : index
    %0 = vector.load %arg1[%c0, %c0_0, %c0_1, %c0_2] : memref<8x2x4x256xf32, #tpu.memory_space<vmem>>, vector<8x2x4x256xf32>
    %1 = vector.extract_strided_slice %0 {offsets = [0, 0, 0, 0], sizes = [8, 1, 4, 256], strides = [1, 1, 1, 1]} : vector<8x2x4x256xf32> to vector<8x1x4x256xf32>
    %2 = vector.shape_cast %1 : vector<8x1x4x256xf32> to vector<8x4x256xf32>
    %3 = vector.extract_strided_slice %0 {offsets = [0, 1, 0, 0], sizes = [8, 1, 4, 256], strides = [1, 1, 1, 1]} : vector<8x2x4x256xf32> to vector<8x1x4x256xf32>
    %4 = vector.shape_cast %3 : vector<8x1x4x256xf32> to vector<8x4x256xf32>
    %5 = arith.maximumf %2, %4 : vector<8x4x256xf32>
    %6 = vector.extract_strided_slice %5 {offsets = [0, 0, 0], sizes = [8, 4, 128], strides = [1, 1, 1]} : vector<8x4x256xf32> to vector<8x4x128xf32>
    %7 = vector.extract_strided_slice %5 {offsets = [0, 0, 128], sizes = [8, 4, 128], strides = [1, 1, 1]} : vector<8x4x256xf32> to vector<8x4x128xf32>
    %8 = arith.maximumf %6, %7 : vector<8x4x128xf32>
    %c0_3 = arith.constant 0 : index
    %c0_4 = arith.constant 0 : index
    %c0_5 = arith.constant 0 : index
    %9 = vector.load %arg2[%c0_3, %c0_4, %c0_5] : memref<8x4x128xf32, #tpu.memory_space<vmem>>, vector<8x4x128xf32>
    tpu.vector_store %arg2[%c0_3, %c0_4, %c0_5], %8 {strides = array<i32>} : memref<8x4x128xf32, #tpu.memory_space<vmem>>, vector<8x4x128xf32>,
    return
  }
  func.func @transform_0(%arg0: i32) -> (i32, i32, i32, i32) {
    %c0_i32 = arith.constant 0 : i32
    %c0_i32_0 = arith.constant 0 : i32
    %c0_i32_1 = arith.constant 0 : i32
    %c0_i32_2 = arith.constant 0 : i32
    return %arg0, %c0_i32, %c0_i32_0, %c0_i32_1 : i32, i32, i32, i32
  }
  func.func @transform_1(%arg0: i32) -> (i32, i32, i32) {
    %c0_i32 = arith.constant 0 : i32
    %c0_i32_0 = arith.constant 0 : i32
    %c0_i32_1 = arith.constant 0 : i32
    return %arg0, %c0_i32, %c0_i32_0 : i32, i32, i32
  }
}

module attributes {stable_mosaic.version = 11 : i64} {
  func.func @_matmul_bias_relu_kernel(%arg0: i32, %arg1: memref<128x3200xbf16, #tpu.memory_space<vmem>>, %arg2: memref<3200x128xbf16, #tpu.memory_space<vmem>>, %arg3: memref<1x128xf32, #tpu.memory_space<vmem>>, %arg4: memref<128x128xf32, #tpu.memory_space<vmem>>) attributes {dimension_semantics = [#tpu.dimension_semantics<parallel>], iteration_bounds = array<i64: 1>, scalar_prefetch = 0 : i64, scratch_operands = 0 : i64, tpu.core_type = #tpu.core_type<tc>, window_params = [{transform_indices = @transform_0, window_bounds = array<i64: 128, 3200>}, {pipeline_mode = #tpu.pipeline_mode<synchronous>, transform_indices = @transform_1, window_bounds = array<i64: 3200, 128>}, {pipeline_mode = #tpu.pipeline_mode<synchronous>, transform_indices = @transform_2, window_bounds = array<i64: 1, 128>}, {transform_indices = @transform_3, window_bounds = array<i64: 128, 128>}]} {
    %c0 = arith.constant 0 : index
    %c0_0 = arith.constant 0 : index
    %0 = vector.load %arg1[%c0, %c0_0] : memref<128x3200xbf16, #tpu.memory_space<vmem>>, vector<128x3200xbf16>
    %c0_1 = arith.constant 0 : index
    %c0_2 = arith.constant 0 : index
    %1 = vector.load %arg2[%c0_1, %c0_2] : memref<3200x128xbf16, #tpu.memory_space<vmem>>, vector<3200x128xbf16>
    %cst = arith.constant dense<0.000000e+00> : vector<128x128xf32>
    %2 = tpu.matmul %0, %1, %cst {dimension_numbers = #tpu.dot_dimension_numbers<[1], [0], [0], [1], [0, 0, 1, 1], [], []>} : vector<128x3200xbf16>, vector<3200x128xbf16>, vector<128x128xf32> -> vector<128x128xf32>
    %c0_3 = arith.constant 0 : index
    %c0_4 = arith.constant 0 : index
    %3 = vector.load %arg3[%c0_3, %c0_4] : memref<1x128xf32, #tpu.memory_space<vmem>>, vector<1x128xf32>
    %4 = vector.broadcast %3 : vector<1x128xf32> to vector<128x128xf32>
    %5 = arith.addf %2, %4 : vector<128x128xf32>
    %cst_5 = arith.constant 0.000000e+00 : f32
    %6 = vector.broadcast %cst_5 : f32 to vector<128x128xf32>
    %7 = arith.maximumf %5, %6 : vector<128x128xf32>
    %c0_6 = arith.constant 0 : index
    %c0_7 = arith.constant 0 : index
    %8 = vector.load %arg4[%c0_6, %c0_7] : memref<128x128xf32, #tpu.memory_space<vmem>>, vector<128x128xf32>
    tpu.vector_store %arg4[%c0_6, %c0_7], %7 {strides = array<i32>} : memref<128x128xf32, #tpu.memory_space<vmem>>, vector<128x128xf32>,
    return
  }
  func.func @transform_0(%arg0: i32) -> (i32, i32) {
    %c0_i32 = arith.constant 0 : i32
    %c0_i32_0 = arith.constant 0 : i32
    return %arg0, %c0_i32 : i32, i32
  }
  func.func @transform_1(%arg0: i32) -> (i32, i32) {
    %c0_i32 = arith.constant 0 : i32
    %c0_i32_0 = arith.constant 0 : i32
    %c0_i32_1 = arith.constant 0 : i32
    return %c0_i32, %c0_i32_0 : i32, i32
  }
  func.func @transform_2(%arg0: i32) -> (i32, i32) {
    %c0_i32 = arith.constant 0 : i32
    %c0_i32_0 = arith.constant 0 : i32
    %c0_i32_1 = arith.constant 0 : i32
    return %c0_i32, %c0_i32_0 : i32, i32
  }
  func.func @transform_3(%arg0: i32) -> (i32, i32) {
    %c0_i32 = arith.constant 0 : i32
    %c0_i32_0 = arith.constant 0 : i32
    return %arg0, %c0_i32 : i32, i32
  }
}

module attributes {stable_mosaic.version = 11 : i64} {
  func.func @_fc_head_kernel(%arg0: i32, %arg1: memref<16x2048xbf16, #tpu.memory_space<vmem>>, %arg2: memref<2048x128xbf16, #tpu.memory_space<vmem>>, %arg3: memref<1x128xf32, #tpu.memory_space<vmem>>, %arg4: memref<128x128xbf16, #tpu.memory_space<vmem>>, %arg5: memref<1x128xf32, #tpu.memory_space<vmem>>, %arg6: memref<16x128xf32, #tpu.memory_space<vmem>>) attributes {dimension_semantics = [#tpu.dimension_semantics<parallel>], iteration_bounds = array<i64: 1>, scalar_prefetch = 0 : i64, scratch_operands = 0 : i64, tpu.core_type = #tpu.core_type<tc>, window_params = [{transform_indices = @transform_0, window_bounds = array<i64: 16, 2048>}, {pipeline_mode = #tpu.pipeline_mode<synchronous>, transform_indices = @transform_1, window_bounds = array<i64: 2048, 128>}, {pipeline_mode = #tpu.pipeline_mode<synchronous>, transform_indices = @transform_2, window_bounds = array<i64: 1, 128>}, {pipeline_mode = #tpu.pipeline_mode<synchronous>, transform_indices = @transform_3, window_bounds = array<i64: 128, 128>}, {pipeline_mode = #tpu.pipeline_mode<synchronous>, transform_indices = @transform_4, window_bounds = array<i64: 1, 128>}, {transform_indices = @transform_5, window_bounds = array<i64: 16, 128>}]} {
    %c0 = arith.constant 0 : index
    %c0_0 = arith.constant 0 : index
    %0 = vector.load %arg1[%c0, %c0_0] : memref<16x2048xbf16, #tpu.memory_space<vmem>>, vector<16x2048xbf16>
    %c0_1 = arith.constant 0 : index
    %c0_2 = arith.constant 0 : index
    %1 = vector.load %arg2[%c0_1, %c0_2] : memref<2048x128xbf16, #tpu.memory_space<vmem>>, vector<2048x128xbf16>
    %cst = arith.constant dense<0.000000e+00> : vector<16x128xf32>
    %2 = tpu.matmul %0, %1, %cst {dimension_numbers = #tpu.dot_dimension_numbers<[1], [0], [0], [1], [0, 0, 1, 1], [], []>} : vector<16x2048xbf16>, vector<2048x128xbf16>, vector<16x128xf32> -> vector<16x128xf32>
    %c0_3 = arith.constant 0 : index
    %c0_4 = arith.constant 0 : index
    %3 = vector.load %arg3[%c0_3, %c0_4] : memref<1x128xf32, #tpu.memory_space<vmem>>, vector<1x128xf32>
    %4 = vector.broadcast %3 : vector<1x128xf32> to vector<16x128xf32>
    %5 = arith.addf %2, %4 : vector<16x128xf32>
    %cst_5 = arith.constant 0.000000e+00 : f32
    %6 = vector.broadcast %cst_5 : f32 to vector<16x128xf32>
    %7 = arith.maximumf %5, %6 : vector<16x128xf32>
    %8 = arith.truncf %7 : vector<16x128xf32> to vector<16x128xbf16>
    %c0_6 = arith.constant 0 : index
    %c0_7 = arith.constant 0 : index
    %9 = vector.load %arg4[%c0_6, %c0_7] : memref<128x128xbf16, #tpu.memory_space<vmem>>, vector<128x128xbf16>
    %cst_8 = arith.constant dense<0.000000e+00> : vector<16x128xf32>
    %10 = tpu.matmul %8, %9, %cst_8 {dimension_numbers = #tpu.dot_dimension_numbers<[1], [0], [0], [1], [0, 0, 1, 1], [], []>} : vector<16x128xbf16>, vector<128x128xbf16>, vector<16x128xf32> -> vector<16x128xf32>
    %c0_9 = arith.constant 0 : index
    %c0_10 = arith.constant 0 : index
    %11 = vector.load %arg5[%c0_9, %c0_10] : memref<1x128xf32, #tpu.memory_space<vmem>>, vector<1x128xf32>
    %12 = vector.broadcast %11 : vector<1x128xf32> to vector<16x128xf32>
    %13 = arith.addf %10, %12 : vector<16x128xf32>
    %14 = tpu.iota {dimensions = array<i32: 1>} : vector<16x128xi32>
    %c10_i32 = arith.constant 10 : i32
    %15 = vector.broadcast %c10_i32 : i32 to vector<16x128xi32>
    %16 = arith.cmpi slt, %14, %15 : vector<16x128xi32>
    %cst_11 = arith.constant -1.000000e+30 : f32
    %17 = vector.broadcast %cst_11 : f32 to vector<16x128xf32>
    %18 = arith.select %16, %13, %17 : vector<16x128xi1>, vector<16x128xf32>
    %cst_12 = arith.constant dense<0xFF800000> : vector<16xf32>
    %19 = vector.multi_reduction <maximumf>, %18, %cst_12 [1] : vector<16x128xf32> to vector<16xf32>
    %20 = vector.shape_cast %19 : vector<16xf32> to vector<16x1xf32>
    %21 = vector.broadcast %20 : vector<16x1xf32> to vector<16x128xf32>
    %22 = arith.subf %18, %21 : vector<16x128xf32>
    %23 = math.exp %22 : vector<16x128xf32>
    %cst_13 = arith.constant dense<0.000000e+00> : vector<16xf32>
    %24 = vector.multi_reduction <add>, %23, %cst_13 [1] : vector<16x128xf32> to vector<16xf32>
    %25 = vector.shape_cast %24 : vector<16xf32> to vector<16x1xf32>
    %26 = math.log %25 : vector<16x1xf32>
    %27 = vector.broadcast %26 : vector<16x1xf32> to vector<16x128xf32>
    %28 = arith.subf %22, %27 : vector<16x128xf32>
    %c0_14 = arith.constant 0 : index
    %c0_15 = arith.constant 0 : index
    %29 = vector.load %arg6[%c0_14, %c0_15] : memref<16x128xf32, #tpu.memory_space<vmem>>, vector<16x128xf32>
    tpu.vector_store %arg6[%c0_14, %c0_15], %28 {strides = array<i32>} : memref<16x128xf32, #tpu.memory_space<vmem>>, vector<16x128xf32>,
    return
  }
  func.func @transform_0(%arg0: i32) -> (i32, i32) {
    %c0_i32 = arith.constant 0 : i32
    %c0_i32_0 = arith.constant 0 : i32
    return %arg0, %c0_i32 : i32, i32
  }
  func.func @transform_1(%arg0: i32) -> (i32, i32) {
    %c0_i32 = arith.constant 0 : i32
    %c0_i32_0 = arith.constant 0 : i32
    %c0_i32_1 = arith.constant 0 : i32
    return %c0_i32, %c0_i32_0 : i32, i32
  }
  func.func @transform_2(%arg0: i32) -> (i32, i32) {
    %c0_i32 = arith.constant 0 : i32
    %c0_i32_0 = arith.constant 0 : i32
    %c0_i32_1 = arith.constant 0 : i32
    return %c0_i32, %c0_i32_0 : i32, i32
  }
  func.func @transform_3(%arg0: i32) -> (i32, i32) {
    %c0_i32 = arith.constant 0 : i32
    %c0_i32_0 = arith.constant 0 : i32
    %c0_i32_1 = arith.constant 0 : i32
    return %c0_i32, %c0_i32_0 : i32, i32
  }
  func.func @transform_4(%arg0: i32) -> (i32, i32) {
    %c0_i32 = arith.constant 0 : i32
    %c0_i32_0 = arith.constant 0 : i32
    %c0_i32_1 = arith.constant 0 : i32
    return %c0_i32, %c0_i32_0 : i32, i32
  }
  func.func @transform_5(%arg0: i32) -> (i32, i32) {
    %c0_i32 = arith.constant 0 : i32
    %c0_i32_0 = arith.constant 0 : i32
    return %arg0, %c0_i32 : i32, i32
  }
}

</mosaic_0001>

<bundles_post_ra>
// kernel: cnn_mnist_forward.5
= control target key start
LH: loop header
LB: loop body
LE: loop exit
PB: predicated region body
PF: predicated region fallthrough
CT: control target
= control target key end

     0   :  { %s725_s12 = smov 0   ;;  %s857_s0 = inlined_call_operand.vmem [shape: bf16[1280,32], index: 0, kind: input, shape index: {}]   ;;  %s858_s1 = inlined_call_operand.vmem [shape: bf16[32,128], index: 1, kind: input, shape index: {}]   ;;  %s859_s2 = inlined_call_operand.vmem [shape: f32[1,128], index: 2, kind: input, shape index: {}]   ;;  %s860_s3 = inlined_call_operand.vmem [shape: f32[1280,128], index: 3, kind: output, shape index: {}]  }
   0x1 LB: > { %s565_s13 = sadd.s32 4294967295, %s703_s12   ;;  %p569_p0 = scmp.ge.s32.totalorder %s703_s12, 1  ;;  %s703_s12 = sphi %s725_s12, %s13_s12  }
   0x2   : > { %p138_p1 = scmp.lt.s32.totalorder %s703_s12, 6 }
   0x4   : > { %p139_p2 = pnand %p569_p0, %p138_p1 }
   0x5   : > { %s570_s16 = sshll.u32 (!%p139_p2), %s565_s13, 5 }
   0x6   : > { %142 = sbr.rel (%p139_p2) target bundleno = 214 (0xd6), region = 32  ;;  %p163_p3 = scmp.lt.s32.totalorder (!%p139_p2), %s570_s16, 159 }
   0xb   : > { %v681_v0 = vld [vmem:[%s858_s1 + $0x8] sm:$0xff]  ;;  %v680_v1 = vld [vmem:[%s858_s1] sm:$0xff]  ;;  %s862_s16 = smov (!%p163_p3, %s570_s16), 159  ;;  %vm307_vm0 = vcmask 261120  }
   0xc   : > { %362 = vmatpush.bf16.msra.mxu0 %v681_v0  ;;  %682 = vmatpush.bf16.msra.mxu1 %v681_v0  ;;  %s571_s19 = sshll.u32 %s862_s16, 2  ;;  %v782_v18 = vld [vmem:[%s859_s2] ss:$0 sm:$0xff]  ;;  %s573_s25 = sshll.u32 %s862_s16, 3 }
   0xd   : > { %683 = vmatpush.bf16.msra.mxu2 %v681_v0  ;;  %684 = vmatpush.bf16.msra.mxu3 %v681_v0  ;;  %s745_s22 = scalar_lea.vmem %s857_s0, %s571_s19  ;;  %s790_s28 = scalar_lea.vmem %s860_s3, %s573_s25 }
   0xe   : > { %v664_v2 = vld [vmem:[%s745_s22] sm:$0xff]  ;;  %v665_v6 = vld [vmem:[%s745_s22 + $0x8] sm:$0xff]  ;;  %v666_v10 = vld [vmem:[%s745_s22 + $0x10] sm:$0xff] }
   0xf   : > { %v668_v3 = vld [vmem:[%s745_s22 + $0x20] sm:$0xff]  ;;  %v669_v7 = vld [vmem:[%s745_s22 + $0x28] sm:$0xff]  ;;  %v670_v11 = vld [vmem:[%s745_s22 + $0x30] sm:$0xff] }
  0x10   : > { %363 = vmatpush.bf16.msra.mxu0 %v680_v1  ;;  %685 = vmatpush.bf16.msra.mxu1 %v680_v1  ;;  %v672_v4 = vld [vmem:[%s745_s22 + $0x40] sm:$0xff]  ;;  %v673_v8 = vld [vmem:[%s745_s22 + $0x48] sm:$0xff]  ;;  %v674_v12 = vld [vmem:[%s745_s22 + $0x50] sm:$0xff] }
  0x11   : > { %686 = vmatpush.bf16.msra.mxu2 %v680_v1  ;;  %687 = vmatpush.bf16.msra.mxu3 %v680_v1  ;;  %v676_v5 = vld [vmem:[%s745_s22 + $0x60] sm:$0xff]  ;;  %v677_v9 = vld [vmem:[%s745_s22 + $0x68] sm:$0xff]  ;;  %v678_v13 = vld [vmem:[%s745_s22 + $0x70] sm:$0xff] }
  0x12   : > { %v667_v14 = vld [vmem:[%s745_s22 + $0x18] sm:$0xff] }
  0x13   : > { %646 = vmatmul.msk.bf16.vlgmr.msra.gmra.mxu0 %vm307_vm0, %v664_v2  ;;  %650 = vmatmul.msk.bf16.vlgmr.msra.gmra.mxu1 %vm307_vm0, %v668_v3  ;;  %v671_v15 = vld [vmem:[%s745_s22 + $0x38] sm:$0xff] }
  0x14   : > { %654 = vmatmul.msk.bf16.vlgmr.msra.gmra.mxu2 %vm307_vm0, %v672_v4  ;;  %658 = vmatmul.msk.bf16.vlgmr.msra.gmra.mxu3 %vm307_vm0, %v676_v5  ;;  %v675_v16 = vld [vmem:[%s745_s22 + $0x58] sm:$0xff] }
  0x15   : > { %v679_v17 = vld [vmem:[%s745_s22 + $0x78] sm:$0xff] }
  0x23   : > { %647 = vmatmul.msk.bf16.gmra.mxu0 %vm307_vm0, %v665_v6  ;;  %651 = vmatmul.msk.bf16.gmra.mxu1 %vm307_vm0, %v669_v7 }
  0x24   : > { %655 = vmatmul.msk.bf16.gmra.mxu2 %vm307_vm0, %v673_v8  ;;  %659 = vmatmul.msk.bf16.gmra.mxu3 %vm307_vm0, %v677_v9 }
  0x33   : > { %648 = vmatmul.msk.bf16.gmra.mxu0 %vm307_vm0, %v666_v10  ;;  %652 = vmatmul.msk.bf16.gmra.mxu1 %vm307_vm0, %v670_v11 }
  0x34   : > { %656 = vmatmul.msk.bf16.gmra.mxu2 %vm307_vm0, %v674_v12  ;;  %660 = vmatmul.msk.bf16.gmra.mxu3 %vm307_vm0, %v678_v13 }
  0x43   : > { %649 = vmatmul.msk.bf16.gmra.mxu0 %vm307_vm0, %v667_v14  ;;  %653 = vmatmul.msk.bf16.gmra.mxu1 %vm307_vm0, %v671_v15 }
  0x44   : > { %657 = vmatmul.msk.bf16.gmra.mxu2 %vm307_vm0, %v675_v16  ;;  %661 = vmatmul.msk.bf16.gmra.mxu3 %vm307_vm0, %v679_v17 }
  0x90   : > { %v365_v19 = vpop.f32.mrf.mxu0  ;;  %v385_v20 = vpop.f32.mrf.mxu1 }
  0x91   : > { %v366_v21 = vadd.f32 %v782_v18, %v365_v19  ;;  %v386_v22 = vadd.f32 %v782_v18, %v385_v20 }
  0x93   : > { %v445_v23 = vmax.f32 %v366_v21, 0.0  ;;  %v453_v24 = vmax.f32 %v386_v22, 0.0 }
  0x95   : > { %477 = vst [vmem:[%s790_s28] sm:$0xff] %v445_v23 }
  0x96   : > { %485 = vst [vmem:[%s790_s28 + $0x40] sm:$0xff] %v453_v24 }
  0x97   : > { %v405_v25 = vpop.f32.mrf.mxu2  ;;  %v425_v26 = vpop.f32.mrf.mxu3 }
  0x98   : > { %v406_v27 = vadd.f32 %v782_v18, %v405_v25  ;;  %v426_v28 = vadd.f32 %v782_v18, %v425_v26  ;;  %v367_v29 = vpop.f32.mrf.mxu0  ;;  %v387_v30 = vpop.f32.mrf.mxu1 }
  0x99   : > { %v368_v31 = vadd.f32 %v782_v18, %v367_v29  ;;  %v388_v32 = vadd.f32 %v782_v18, %v387_v30 }
  0x9a   : > { %v461_v33 = vmax.f32 %v406_v27, 0.0  ;;  %v469_v34 = vmax.f32 %v426_v28, 0.0 }
  0x9b   : > { %v446_v35 = vmax.f32 %v368_v31, 0.0  ;;  %v454_v36 = vmax.f32 %v388_v32, 0.0 }
  0x9c   : > { %493 = vst [vmem:[%s790_s28 + $0x80] sm:$0xff] %v461_v33 }
  0x9d   : > { %501 = vst [vmem:[%s790_s28 + $0xc0] sm:$0xff] %v469_v34 }
  0x9e   : > { %478 = vst [vmem:[%s790_s28 + $0x8] sm:$0xff] %v446_v35 }
  0x9f   : > { %486 = vst [vmem:[%s790_s28 + $0x48] sm:$0xff] %v454_v36  ;;  %v407_v37 = vpop.f32.mrf.mxu2  ;;  %v427_v38 = vpop.f32.mrf.mxu3 }
  0xa0   : > { %v408_v39 = vadd.f32 %v782_v18, %v407_v37  ;;  %v428_v40 = vadd.f32 %v782_v18, %v427_v38  ;;  %v370_v41 = vpop.f32.mrf.mxu0  ;;  %v390_v42 = vpop.f32.mrf.mxu1 }
  0xa1   : > { %v371_v43 = vadd.f32 %v782_v18, %v370_v41  ;;  %v391_v44 = vadd.f32 %v782_v18, %v390_v42 }
  0xa2   : > { %v462_v45 = vmax.f32 %v408_v39, 0.0  ;;  %v470_v46 = vmax.f32 %v428_v40, 0.0 }
  0xa3   : > { %v447_v47 = vmax.f32 %v371_v43, 0.0  ;;  %v455_v48 = vmax.f32 %v391_v44, 0.0 }
  0xa4   : > { %494 = vst [vmem:[%s790_s28 + $0x88] sm:$0xff] %v462_v45 }
  0xa5   : > { %502 = vst [vmem:[%s790_s28 + $0xc8] sm:$0xff] %v470_v46 }
  0xa6   : > { %479 = vst [vmem:[%s790_s28 + $0x10] sm:$0xff] %v447_v47 }
  0xa7   : > { %487 = vst [vmem:[%s790_s28 + $0x50] sm:$0xff] %v455_v48  ;;  %v410_v49 = vpop.f32.mrf.mxu2  ;;  %v430_v50 = vpop.f32.mrf.mxu3 }
  0xa8   : > { %v411_v51 = vadd.f32 %v782_v18, %v410_v49  ;;  %v431_v52 = vadd.f32 %v782_v18, %v430_v50  ;;  %v372_v53 = vpop.f32.mrf.mxu0  ;;  %v392_v54 = vpop.f32.mrf.mxu1 }
  0xa9   : > { %v373_v55 = vadd.f32 %v782_v18, %v372_v53  ;;  %v393_v56 = vadd.f32 %v782_v18, %v392_v54 }
  0xaa   : > { %v463_v57 = vmax.f32 %v411_v51, 0.0  ;;  %v471_v58 = vmax.f32 %v431_v52, 0.0 }
  0xab   : > { %v448_v59 = vmax.f32 %v373_v55, 0.0  ;;  %v456_v60 = vmax.f32 %v393_v56, 0.0 }
  0xac   : > { %495 = vst [vmem:[%s790_s28 + $0x90] sm:$0xff] %v463_v57 }
  0xad   : > { %503 = vst [vmem:[%s790_s28 + $0xd0] sm:$0xff] %v471_v58 }
  0xae   : > { %480 = vst [vmem:[%s790_s28 + $0x18] sm:$0xff] %v448_v59 }
  0xaf   : > { %488 = vst [vmem:[%s790_s28 + $0x58] sm:$0xff] %v456_v60  ;;  %v412_v61 = vpop.f32.mrf.mxu2  ;;  %v432_v62 = vpop.f32.mrf.mxu3 }
  0xb0   : > { %v413_v63 = vadd.f32 %v782_v18, %v412_v61  ;;  %v433_v0 = vadd.f32 %v782_v18, %v432_v62  ;;  %v375_v1 = vpop.f32.mrf.mxu0  ;;  %v395_v2 = vpop.f32.mrf.mxu1 }
  0xb1   : > { %v376_v3 = vadd.f32 %v782_v18, %v375_v1  ;;  %v396_v4 = vadd.f32 %v782_v18, %v395_v2 }
  0xb2   : > { %v464_v5 = vmax.f32 %v413_v63, 0.0  ;;  %v472_v6 = vmax.f32 %v433_v0, 0.0 }
  0xb3   : > { %v449_v7 = vmax.f32 %v376_v3, 0.0  ;;  %v457_v8 = vmax.f32 %v396_v4, 0.0 }
  0xb4   : > { %496 = vst [vmem:[%s790_s28 + $0x98] sm:$0xff] %v464_v5 }
  0xb5   : > { %504 = vst [vmem:[%s790_s28 + $0xd8] sm:$0xff] %v472_v6 }
  0xb6   : > { %481 = vst [vmem:[%s790_s28 + $0x20] sm:$0xff] %v449_v7 }
  0xb7   : > { %489 = vst [vmem:[%s790_s28 + $0x60] sm:$0xff] %v457_v8  ;;  %v415_v9 = vpop.f32.mrf.mxu2  ;;  %v435_v10 = vpop.f32.mrf.mxu3 }
  0xb8   : > { %v416_v11 = vadd.f32 %v782_v18, %v415_v9  ;;  %v436_v12 = vadd.f32 %v782_v18, %v435_v10  ;;  %v377_v13 = vpop.f32.mrf.mxu0  ;;  %v397_v14 = vpop.f32.mrf.mxu1 }
  0xb9   : > { %v378_v15 = vadd.f32 %v782_v18, %v377_v13  ;;  %v398_v16 = vadd.f32 %v782_v18, %v397_v14 }
  0xba   : > { %v465_v17 = vmax.f32 %v416_v11, 0.0  ;;  %v473_v19 = vmax.f32 %v436_v12, 0.0 }
  0xbb   : > { %v450_v20 = vmax.f32 %v378_v15, 0.0  ;;  %v458_v21 = vmax.f32 %v398_v16, 0.0 }
  0xbc   : > { %497 = vst [vmem:[%s790_s28 + $0xa0] sm:$0xff] %v465_v17 }
  0xbd   : > { %505 = vst [vmem:[%s790_s28 + $0xe0] sm:$0xff] %v473_v19 }
  0xbe   : > { %482 = vst [vmem:[%s790_s28 + $0x28] sm:$0xff] %v450_v20 }
  0xbf   : > { %490 = vst [vmem:[%s790_s28 + $0x68] sm:$0xff] %v458_v21  ;;  %v417_v22 = vpop.f32.mrf.mxu2  ;;  %v437_v23 = vpop.f32.mrf.mxu3 }
  0xc0   : > { %v418_v24 = vadd.f32 %v782_v18, %v417_v22  ;;  %v438_v25 = vadd.f32 %v782_v18, %v437_v23  ;;  %v380_v26 = vpop.f32.mrf.mxu0  ;;  %v400_v27 = vpop.f32.mrf.mxu1 }
  0xc1   : > { %v381_v28 = vadd.f32 %v782_v18, %v380_v26  ;;  %v401_v29 = vadd.f32 %v782_v18, %v400_v27 }
  0xc2   : > { %v466_v30 = vmax.f32 %v418_v24, 0.0  ;;  %v474_v31 = vmax.f32 %v438_v25, 0.0 }
  0xc3   : > { %v451_v32 = vmax.f32 %v381_v28, 0.0  ;;  %v459_v33 = vmax.f32 %v401_v29, 0.0 }
  0xc4   : > { %498 = vst [vmem:[%s790_s28 + $0xa8] sm:$0xff] %v466_v30 }
  0xc5   : > { %506 = vst [vmem:[%s790_s28 + $0xe8] sm:$0xff] %v474_v31 }
  0xc6   : > { %483 = vst [vmem:[%s790_s28 + $0x30] sm:$0xff] %v451_v32 }
  0xc7   : > { %491 = vst [vmem:[%s790_s28 + $0x70] sm:$0xff] %v459_v33  ;;  %v420_v34 = vpop.f32.mrf.mxu2  ;;  %v440_v35 = vpop.f32.mrf.mxu3 }
  0xc8   : > { %v421_v36 = vadd.f32 %v782_v18, %v420_v34  ;;  %v441_v37 = vadd.f32 %v782_v18, %v440_v35  ;;  %v382_v38 = vpop.f32.mrf.mxu0  ;;  %v402_v39 = vpop.f32.mrf.mxu1 }
  0xc9   : > { %v383_v40 = vadd.f32 %v782_v18, %v382_v38  ;;  %v403_v41 = vadd.f32 %v782_v18, %v402_v39 }
  0xca   : > { %v467_v42 = vmax.f32 %v421_v36, 0.0  ;;  %v475_v43 = vmax.f32 %v441_v37, 0.0 }
  0xcb   : > { %v452_v44 = vmax.f32 %v383_v40, 0.0  ;;  %v460_v45 = vmax.f32 %v403_v41, 0.0 }
  0xcc   : > { %499 = vst [vmem:[%s790_s28 + $0xb0] sm:$0xff] %v467_v42 }
  0xcd   : > { %507 = vst [vmem:[%s790_s28 + $0xf0] sm:$0xff] %v475_v43 }
  0xce   : > { %484 = vst [vmem:[%s790_s28 + $0x38] sm:$0xff] %v452_v44 }
  0xcf   : > { %492 = vst [vmem:[%s790_s28 + $0x78] sm:$0xff] %v460_v45  ;;  %v422_v46 = vpop.f32.mrf.mxu2  ;;  %v442_v47 = vpop.f32.mrf.mxu3 }
  0xd0   : > { %v423_v48 = vadd.f32 %v782_v18, %v422_v46  ;;  %v443_v49 = vadd.f32 %v782_v18, %v442_v47 }
  0xd2   : > { %v468_v50 = vmax.f32 %v423_v48, 0.0  ;;  %v476_v51 = vmax.f32 %v443_v49, 0.0 }
  0xd4   : > { %500 = vst [vmem:[%s790_s28 + $0xb8] sm:$0xff] %v468_v50 }
  0xd5   : > { %508 = vst [vmem:[%s790_s28 + $0xf8] sm:$0xff] %v476_v51 }
  0xd6 PF: > { %s13_s12 = sadd.s32 1, %s703_s12  }
  0xd7   : > { %p10_p4 = scmp.ge.s32.totalorder %s13_s12, 7  }
  0xd9   :  { %12 = sbr.rel (!%p10_p4) target bundleno = 1 (0x1), region = 62 }

// kernel: cnn_mnist_forward.6
= control target key start
LH: loop header
LB: loop body
LE: loop exit
PB: predicated region body
PF: predicated region fallthrough
CT: control target
= control target key end

     0   :  { %s1126_s0 = inlined_call_operand.vmem [shape: f32[24,2,12,256], index: 0, kind: input, shape index: {}]   ;;  %s1127_s1 = inlined_call_operand.vmem [shape: f32[24,12,128], index: 1, kind: output, shape index: {}]  }
   0x1   :  { %v8_v0 = vld [vmem:[%s1126_s0] sm:$0xff]  ;;  %v9_v1 = vld [vmem:[%s1126_s0 + $0x8] sm:$0xff]  ;;  %v10_v5 = vld [vmem:[%s1126_s0 + $0x10] sm:$0xf] }
   0x2   :  { %v12_v2 = vld [vmem:[%s1126_s0 + $0x20] sm:$0xff]  ;;  %v13_v3 = vld [vmem:[%s1126_s0 + $0x28] sm:$0xff]  ;;  %v11_v6 = vld [vmem:[%s1126_s0 + $0x18] sm:$0xf] }
   0x3   :  { %v200_v4 = vmax.f32 %v8_v0, %v12_v2  ;;  %v201_v7 = vmax.f32 %v9_v1, %v13_v3  ;;  %v14_v8 = vld [vmem:[%s1126_s0 + $0x30] sm:$0xf]  ;;  %v15_v9 = vld [vmem:[%s1126_s0 + $0x38] sm:$0xf]  ;;  %v16_v10 = vld [vmem:[%s1126_s0 + $0x40] sm:$0xff] }
   0x4   :  { %v202_v11 = vmax.f32 %v10_v5, %v14_v8  ;;  %v203_v12 = vmax.f32 %v11_v6, %v15_v9  ;;  %v17_v13 = vld [vmem:[%s1126_s0 + $0x48] sm:$0xff]  ;;  %v20_v14 = vld [vmem:[%s1126_s0 + $0x60] sm:$0xff]  ;;  %v18_v19 = vld [vmem:[%s1126_s0 + $0x50] sm:$0xf] }
   0x5   :  { %v21_v15 = vld [vmem:[%s1126_s0 + $0x68] sm:$0xff]  ;;  %v296_v16 = vmax.f32 %v200_v4, %v201_v7  ;;  %v204_v17 = vmax.f32 %v16_v10, %v20_v14  ;;  %v19_v20 = vld [vmem:[%s1126_s0 + $0x58] sm:$0xf]  ;;  %v22_v21 = vld [vmem:[%s1126_s0 + $0x70] sm:$0xf] }
   0x6   :  { %v205_v18 = vmax.f32 %v17_v13, %v21_v15  ;;  %v297_v22 = vmax.f32 %v202_v11, %v203_v12  ;;  %v23_v23 = vld [vmem:[%s1126_s0 + $0x78] sm:$0xf]  ;;  %v206_v24 = vmax.f32 %v18_v19, %v22_v21  ;;  %v24_v25 = vld [vmem:[%s1126_s0 + $0x80] sm:$0xff]  ;;  %v25_v26 = vld [vmem:[%s1126_s0 + $0x88] sm:$0xff] }
   0x7   :  { %344 = vst [vmem:[%s1127_s1] sm:$0xff] %v296_v16  ;;  %v207_v28 = vmax.f32 %v19_v20, %v23_v23  ;;  %v28_v29 = vld [vmem:[%s1126_s0 + $0xa0] sm:$0xff]  ;;  %v29_v30 = vld [vmem:[%s1126_s0 + $0xa8] sm:$0xff]  ;;  %v26_v31 = vld [vmem:[%s1126_s0 + $0x90] sm:$0xf] }
   0x8   :  { %v298_v27 = vmax.f32 %v204_v17, %v205_v18  ;;  %345 = vst [vmem:[%s1127_s1 + $0x8] sm:$0xf] %v297_v22  ;;  %v208_v32 = vmax.f32 %v24_v25, %v28_v29  ;;  %v209_v33 = vmax.f32 %v25_v26, %v29_v30  ;;  %v27_v34 = vld [vmem:[%s1126_s0 + $0x98] sm:$0xf]  ;;  %v30_v35 = vld [vmem:[%s1126_s0 + $0xb0] sm:$0xf] }
   0x9   :  { %v299_v36 = vmax.f32 %v206_v24, %v207_v28  ;;  %v31_v37 = vld [vmem:[%s1126_s0 + $0xb8] sm:$0xf]  ;;  %v210_v38 = vmax.f32 %v26_v31, %v30_v35  ;;  %v32_v39 = vld [vmem:[%s1126_s0 + $0xc0] sm:$0xff]  ;;  %v33_v40 = vld [vmem:[%s1126_s0 + $0xc8] sm:$0xff] }
   0xa   :  { %346 = vst [vmem:[%s1127_s1 + $0x10] sm:$0xff] %v298_v27  ;;  %v300_v41 = vmax.f32 %v208_v32, %v209_v33  ;;  %v211_v42 = vmax.f32 %v27_v34, %v31_v37  ;;  %v36_v43 = vld [vmem:[%s1126_s0 + $0xe0] sm:$0xff]  ;;  %v37_v44 = vld [vmem:[%s1126_s0 + $0xe8] sm:$0xff]  ;;  %v34_v45 = vld [vmem:[%s1126_s0 + $0xd0] sm:$0xf] }
   0xb   :  { %347 = vst [vmem:[%s1127_s1 + $0x18] sm:$0xf] %v299_v36  ;;  %v212_v46 = vmax.f32 %v32_v39, %v36_v43  ;;  %v213_v47 = vmax.f32 %v33_v40, %v37_v44  ;;  %v35_v48 = vld [vmem:[%s1126_s0 + $0xd8] sm:$0xf]  ;;  %v38_v49 = vld [vmem:[%s1126_s0 + $0xf0] sm:$0xf] }
   0xc   :  { %348 = vst [vmem:[%s1127_s1 + $0x20] sm:$0xff] %v300_v41  ;;  %v301_v50 = vmax.f32 %v210_v38, %v211_v42  ;;  %v39_v51 = vld [vmem:[%s1126_s0 + $0xf8] sm:$0xf]  ;;  %v214_v52 = vmax.f32 %v34_v45, %v38_v49  ;;  %v40_v53 = vld [vmem:[%s1126_s0 + $0x100] sm:$0xff]  ;;  %v41_v54 = vld [vmem:[%s1126_s0 + $0x108] sm:$0xff] }
   0xd   :  { %v302_v55 = vmax.f32 %v212_v46, %v213_v47  ;;  %v215_v56 = vmax.f32 %v35_v48, %v39_v51  ;;  %v44_v57 = vld [vmem:[%s1126_s0 + $0x120] sm:$0xff]  ;;  %v45_v58 = vld [vmem:[%s1126_s0 + $0x128] sm:$0xff]  ;;  %v42_v59 = vld [vmem:[%s1126_s0 + $0x110] sm:$0xf] }
   0xe   :  { %349 = vst [vmem:[%s1127_s1 + $0x28] sm:$0xf] %v301_v50  ;;  %v216_v60 = vmax.f32 %v40_v53, %v44_v57  ;;  %v217_v61 = vmax.f32 %v41_v54, %v45_v58  ;;  %v43_v62 = vld [vmem:[%s1126_s0 + $0x118] sm:$0xf]  ;;  %v46_v63 = vld [vmem:[%s1126_s0 + $0x130] sm:$0xf] }
   0xf   :  { %350 = vst [vmem:[%s1127_s1 + $0x30] sm:$0xff] %v302_v55  ;;  %v303_v0 = vmax.f32 %v214_v52, %v215_v56  ;;  %v47_v1 = vld [vmem:[%s1126_s0 + $0x138] sm:$0xf]  ;;  %v218_v2 = vmax.f32 %v42_v59, %v46_v63  ;;  %v48_v3 = vld [vmem:[%s1126_s0 + $0x140] sm:$0xff]  ;;  %v49_v4 = vld [vmem:[%s1126_s0 + $0x148] sm:$0xff] }
  0x10   :  { %v304_v5 = vmax.f32 %v216_v60, %v217_v61  ;;  %v219_v6 = vmax.f32 %v43_v62, %v47_v1  ;;  %v52_v7 = vld [vmem:[%s1126_s0 + $0x160] sm:$0xff]  ;;  %v53_v8 = vld [vmem:[%s1126_s0 + $0x168] sm:$0xff]  ;;  %v50_v9 = vld [vmem:[%s1126_s0 + $0x150] sm:$0xf] }
  0x11   :  { %351 = vst [vmem:[%s1127_s1 + $0x38] sm:$0xf] %v303_v0  ;;  %v220_v10 = vmax.f32 %v48_v3, %v52_v7  ;;  %v221_v11 = vmax.f32 %v49_v4, %v53_v8  ;;  %v51_v12 = vld [vmem:[%s1126_s0 + $0x158] sm:$0xf]  ;;  %v54_v13 = vld [vmem:[%s1126_s0 + $0x170] sm:$0xf] }
  0x12   :  { %352 = vst [vmem:[%s1127_s1 + $0x40] sm:$0xff] %v304_v5  ;;  %v305_v14 = vmax.f32 %v218_v2, %v219_v6  ;;  %v55_v15 = vld [vmem:[%s1126_s0 + $0x178] sm:$0xf]  ;;  %v222_v16 = vmax.f32 %v50_v9, %v54_v13  ;;  %v56_v17 = vld [vmem:[%s1126_s0 + $0x180] sm:$0xff]  ;;  %v57_v18 = vld [vmem:[%s1126_s0 + $0x188] sm:$0xff] }
  0x13   :  { %v306_v19 = vmax.f32 %v220_v10, %v221_v11  ;;  %v223_v20 = vmax.f32 %v51_v12, %v55_v15  ;;  %v60_v21 = vld [vmem:[%s1126_s0 + $0x1a0] sm:$0xff]  ;;  %v61_v22 = vld [vmem:[%s1126_s0 + $0x1a8] sm:$0xff]  ;;  %v58_v23 = vld [vmem:[%s1126_s0 + $0x190] sm:$0xf] }
  0x14   :  { %353 = vst [vmem:[%s1127_s1 + $0x48] sm:$0xf] %v305_v14  ;;  %v224_v24 = vmax.f32 %v56_v17, %v60_v21  ;;  %v225_v25 = vmax.f32 %v57_v18, %v61_v22  ;;  %v59_v26 = vld [vmem:[%s1126_s0 + $0x198] sm:$0xf]  ;;  %v62_v27 = vld [vmem:[%s1126_s0 + $0x1b0] sm:$0xf] }
  0x15   :  { %354 = vst [vmem:[%s1127_s1 + $0x50] sm:$0xff] %v306_v19  ;;  %v307_v28 = vmax.f32 %v222_v16, %v223_v20  ;;  %v63_v29 = vld [vmem:[%s1126_s0 + $0x1b8] sm:$0xf]  ;;  %v226_v30 = vmax.f32 %v58_v23, %v62_v27  ;;  %v64_v31 = vld [vmem:[%s1126_s0 + $0x1c0] sm:$0xff]  ;;  %v65_v32 = vld [vmem:[%s1126_s0 + $0x1c8] sm:$0xff] }
  0x16   :  { %v308_v33 = vmax.f32 %v224_v24, %v225_v25  ;;  %v227_v34 = vmax.f32 %v59_v26, %v63_v29  ;;  %v68_v35 = vld [vmem:[%s1126_s0 + $0x1e0] sm:$0xff]  ;;  %v69_v36 = vld [vmem:[%s1126_s0 + $0x1e8] sm:$0xff]  ;;  %v66_v37 = vld [vmem:[%s1126_s0 + $0x1d0] sm:$0xf] }
  0x17   :  { %355 = vst [vmem:[%s1127_s1 + $0x58] sm:$0xf] %v307_v28  ;;  %v228_v38 = vmax.f32 %v64_v31, %v68_v35  ;;  %v229_v39 = vmax.f32 %v65_v32, %v69_v36  ;;  %v67_v40 = vld [vmem:[%s1126_s0 + $0x1d8] sm:$0xf]  ;;  %v70_v41 = vld [vmem:[%s1126_s0 + $0x1f0] sm:$0xf] }
  0x18   :  { %356 = vst [vmem:[%s1127_s1 + $0x60] sm:$0xff] %v308_v33  ;;  %v309_v42 = vmax.f32 %v226_v30, %v227_v34  ;;  %v71_v43 = vld [vmem:[%s1126_s0 + $0x1f8] sm:$0xf]  ;;  %v230_v44 = vmax.f32 %v66_v37, %v70_v41  ;;  %v72_v45 = vld [vmem:[%s1126_s0 + $0x200] sm:$0xff]  ;;  %v73_v46 = vld [vmem:[%s1126_s0 + $0x208] sm:$0xff] }
  0x19   :  { %v310_v47 = vmax.f32 %v228_v38, %v229_v39  ;;  %v231_v48 = vmax.f32 %v67_v40, %v71_v43  ;;  %v76_v49 = vld [vmem:[%s1126_s0 + $0x220] sm:$0xff]  ;;  %v77_v50 = vld [vmem:[%s1126_s0 + $0x228] sm:$0xff]  ;;  %v74_v51 = vld [vmem:[%s1126_s0 + $0x210] sm:$0xf] }
  0x1a   :  { %357 = vst [vmem:[%s1127_s1 + $0x68] sm:$0xf] %v309_v42  ;;  %v232_v52 = vmax.f32 %v72_v45, %v76_v49  ;;  %v233_v53 = vmax.f32 %v73_v46, %v77_v50  ;;  %v75_v54 = vld [vmem:[%s1126_s0 + $0x218] sm:$0xf]  ;;  %v78_v55 = vld [vmem:[%s1126_s0 + $0x230] sm:$0xf] }
  0x1b   :  { %358 = vst [vmem:[%s1127_s1 + $0x70] sm:$0xff] %v310_v47  ;;  %v311_v56 = vmax.f32 %v230_v44, %v231_v48  ;;  %v79_v57 = vld [vmem:[%s1126_s0 + $0x238] sm:$0xf]  ;;  %v234_v58 = vmax.f32 %v74_v51, %v78_v55  ;;  %v80_v59 = vld [vmem:[%s1126_s0 + $0x240] sm:$0xff]  ;;  %v81_v60 = vld [vmem:[%s1126_s0 + $0x248] sm:$0xff] }
  0x1c   :  { %v312_v61 = vmax.f32 %v232_v52, %v233_v53  ;;  %v235_v62 = vmax.f32 %v75_v54, %v79_v57  ;;  %v84_v63 = vld [vmem:[%s1126_s0 + $0x260] sm:$0xff]  ;;  %v85_v0 = vld [vmem:[%s1126_s0 + $0x268] sm:$0xff]  ;;  %v82_v1 = vld [vmem:[%s1126_s0 + $0x250] sm:$0xf] }
  0x1d   :  { %359 = vst [vmem:[%s1127_s1 + $0x78] sm:$0xf] %v311_v56  ;;  %v236_v2 = vmax.f32 %v80_v59, %v84_v63  ;;  %v237_v3 = vmax.f32 %v81_v60, %v85_v0  ;;  %v83_v4 = vld [vmem:[%s1126_s0 + $0x258] sm:$0xf]  ;;  %v86_v5 = vld [vmem:[%s1126_s0 + $0x270] sm:$0xf] }
  0x1e   :  { %360 = vst [vmem:[%s1127_s1 + $0x80] sm:$0xff] %v312_v61  ;;  %v313_v6 = vmax.f32 %v234_v58, %v235_v62  ;;  %v87_v7 = vld [vmem:[%s1126_s0 + $0x278] sm:$0xf]  ;;  %v238_v8 = vmax.f32 %v82_v1, %v86_v5  ;;  %v88_v9 = vld [vmem:[%s1126_s0 + $0x280] sm:$0xff]  ;;  %v89_v10 = vld [vmem:[%s1126_s0 + $0x288] sm:$0xff] }
  0x1f   :  { %v314_v11 = vmax.f32 %v236_v2, %v237_v3  ;;  %v239_v12 = vmax.f32 %v83_v4, %v87_v7  ;;  %v92_v13 = vld [vmem:[%s1126_s0 + $0x2a0] sm:$0xff]  ;;  %v93_v14 = vld [vmem:[%s1126_s0 + $0x2a8] sm:$0xff]  ;;  %v90_v15 = vld [vmem:[%s1126_s0 + $0x290] sm:$0xf] }
  0x20   :  { %361 = vst [vmem:[%s1127_s1 + $0x88] sm:$0xf] %v313_v6  ;;  %v240_v16 = vmax.f32 %v88_v9, %v92_v13  ;;  %v241_v17 = vmax.f32 %v89_v10, %v93_v14  ;;  %v91_v18 = vld [vmem:[%s1126_s0 + $0x298] sm:$0xf]  ;;  %v94_v19 = vld [vmem:[%s1126_s0 + $0x2b0] sm:$0xf] }
  0x21   :  { %362 = vst [vmem:[%s1127_s1 + $0x90] sm:$0xff] %v314_v11  ;;  %v315_v20 = vmax.f32 %v238_v8, %v239_v12  ;;  %v95_v21 = vld [vmem:[%s1126_s0 + $0x2b8] sm:$0xf]  ;;  %v242_v22 = vmax.f32 %v90_v15, %v94_v19  ;;  %v96_v23 = vld [vmem:[%s1126_s0 + $0x2c0] sm:$0xff]  ;;  %v97_v24 = vld [vmem:[%s1126_s0 + $0x2c8] sm:$0xff] }
  0x22   :  { %v316_v25 = vmax.f32 %v240_v16, %v241_v17  ;;  %v243_v26 = vmax.f32 %v91_v18, %v95_v21  ;;  %v100_v27 = vld [vmem:[%s1126_s0 + $0x2e0] sm:$0xff]  ;;  %v101_v28 = vld [vmem:[%s1126_s0 + $0x2e8] sm:$0xff]  ;;  %v98_v29 = vld [vmem:[%s1126_s0 + $0x2d0] sm:$0xf] }
  0x23   :  { %363 = vst [vmem:[%s1127_s1 + $0x98] sm:$0xf] %v315_v20  ;;  %v244_v30 = vmax.f32 %v96_v23, %v100_v27  ;;  %v245_v31 = vmax.f32 %v97_v24, %v101_v28  ;;  %v99_v32 = vld [vmem:[%s1126_s0 + $0x2d8] sm:$0xf]  ;;  %v102_v33 = vld [vmem:[%s1126_s0 + $0x2f0] sm:$0xf] }
  0x24   :  { %364 = vst [vmem:[%s1127_s1 + $0xa0] sm:$0xff] %v316_v25  ;;  %v317_v34 = vmax.f32 %v242_v22, %v243_v26  ;;  %v103_v35 = vld [vmem:[%s1126_s0 + $0x2f8] sm:$0xf]  ;;  %v246_v36 = vmax.f32 %v98_v29, %v102_v33  ;;  %v104_v37 = vld [vmem:[%s1126_s0 + $0x300] sm:$0xff]  ;;  %v105_v38 = vld [vmem:[%s1126_s0 + $0x308] sm:$0xff] }
  0x25   :  { %v318_v39 = vmax.f32 %v244_v30, %v245_v31  ;;  %v247_v40 = vmax.f32 %v99_v32, %v103_v35  ;;  %v108_v41 = vld [vmem:[%s1126_s0 + $0x320] sm:$0xff]  ;;  %v109_v42 = vld [vmem:[%s1126_s0 + $0x328] sm:$0xff]  ;;  %v106_v43 = vld [vmem:[%s1126_s0 + $0x310] sm:$0xf] }
  0x26   :  { %365 = vst [vmem:[%s1127_s1 + $0xa8] sm:$0xf] %v317_v34  ;;  %v248_v44 = vmax.f32 %v104_v37, %v108_v41  ;;  %v249_v45 = vmax.f32 %v105_v38, %v109_v42  ;;  %v107_v46 = vld [vmem:[%s1126_s0 + $0x318] sm:$0xf]  ;;  %v110_v47 = vld [vmem:[%s1126_s0 + $0x330] sm:$0xf] }
  0x27   :  { %366 = vst [vmem:[%s1127_s1 + $0xb0] sm:$0xff] %v318_v39  ;;  %v319_v48 = vmax.f32 %v246_v36, %v247_v40  ;;  %v111_v49 = vld [vmem:[%s1126_s0 + $0x338] sm:$0xf]  ;;  %v250_v50 = vmax.f32 %v106_v43, %v110_v47  ;;  %v112_v51 = vld [vmem:[%s1126_s0 + $0x340] sm:$0xff]  ;;  %v113_v52 = vld [vmem:[%s1126_s0 + $0x348] sm:$0xff] }
  0x28   :  { %v320_v53 = vmax.f32 %v248_v44, %v249_v45  ;;  %v251_v54 = vmax.f32 %v107_v46, %v111_v49  ;;  %v116_v55 = vld [vmem:[%s1126_s0 + $0x360] sm:$0xff]  ;;  %v117_v56 = vld [vmem:[%s1126_s0 + $0x368] sm:$0xff]  ;;  %v114_v57 = vld [vmem:[%s1126_s0 + $0x350] sm:$0xf] }
  0x29   :  { %367 = vst [vmem:[%s1127_s1 + $0xb8] sm:$0xf] %v319_v48  ;;  %v252_v58 = vmax.f32 %v112_v51, %v116_v55  ;;  %v253_v59 = vmax.f32 %v113_v52, %v117_v56  ;;  %v115_v60 = vld [vmem:[%s1126_s0 + $0x358] sm:$0xf]  ;;  %v118_v61 = vld [vmem:[%s1126_s0 + $0x370] sm:$0xf] }
  0x2a   :  { %368 = vst [vmem:[%s1127_s1 + $0xc0] sm:$0xff] %v320_v53  ;;  %v321_v62 = vmax.f32 %v250_v50, %v251_v54  ;;  %v119_v63 = vld [vmem:[%s1126_s0 + $0x378] sm:$0xf]  ;;  %v254_v0 = vmax.f32 %v114_v57, %v118_v61  ;;  %v120_v1 = vld [vmem:[%s1126_s0 + $0x380] sm:$0xff]  ;;  %v121_v2 = vld [vmem:[%s1126_s0 + $0x388] sm:$0xff] }
  0x2b   :  { %v322_v3 = vmax.f32 %v252_v58, %v253_v59  ;;  %v255_v4 = vmax.f32 %v115_v60, %v119_v63  ;;  %v124_v5 = vld [vmem:[%s1126_s0 + $0x3a0] sm:$0xff]  ;;  %v125_v6 = vld [vmem:[%s1126_s0 + $0x3a8] sm:$0xff]  ;;  %v122_v7 = vld [vmem:[%s1126_s0 + $0x390] sm:$0xf] }
  0x2c   :  { %369 = vst [vmem:[%s1127_s1 + $0xc8] sm:$0xf] %v321_v62  ;;  %v256_v8 = vmax.f32 %v120_v1, %v124_v5  ;;  %v257_v9 = vmax.f32 %v121_v2, %v125_v6  ;;  %v123_v10 = vld [vmem:[%s1126_s0 + $0x398] sm:$0xf]  ;;  %v126_v11 = vld [vmem:[%s1126_s0 + $0x3b0] sm:$0xf] }
  0x2d   :  { %370 = vst [vmem:[%s1127_s1 + $0xd0] sm:$0xff] %v322_v3  ;;  %v323_v12 = vmax.f32 %v254_v0, %v255_v4  ;;  %v127_v13 = vld [vmem:[%s1126_s0 + $0x3b8] sm:$0xf]  ;;  %v258_v14 = vmax.f32 %v122_v7, %v126_v11  ;;  %v128_v15 = vld [vmem:[%s1126_s0 + $0x3c0] sm:$0xff]  ;;  %v129_v16 = vld [vmem:[%s1126_s0 + $0x3c8] sm:$0xff] }
  0x2e   :  { %v324_v17 = vmax.f32 %v256_v8, %v257_v9  ;;  %v259_v18 = vmax.f32 %v123_v10, %v127_v13  ;;  %v132_v19 = vld [vmem:[%s1126_s0 + $0x3e0] sm:$0xff]  ;;  %v133_v20 = vld [vmem:[%s1126_s0 + $0x3e8] sm:$0xff]  ;;  %v130_v21 = vld [vmem:[%s1126_s0 + $0x3d0] sm:$0xf] }
  0x2f   :  { %371 = vst [vmem:[%s1127_s1 + $0xd8] sm:$0xf] %v323_v12  ;;  %v260_v22 = vmax.f32 %v128_v15, %v132_v19  ;;  %v261_v23 = vmax.f32 %v129_v16, %v133_v20  ;;  %v131_v24 = vld [vmem:[%s1126_s0 + $0x3d8] sm:$0xf]  ;;  %v134_v25 = vld [vmem:[%s1126_s0 + $0x3f0] sm:$0xf] }
  0x30   :  { %372 = vst [vmem:[%s1127_s1 + $0xe0] sm:$0xff] %v324_v17  ;;  %v325_v26 = vmax.f32 %v258_v14, %v259_v18  ;;  %v135_v27 = vld [vmem:[%s1126_s0 + $0x3f8] sm:$0xf]  ;;  %v262_v28 = vmax.f32 %v130_v21, %v134_v25  ;;  %v136_v29 = vld [vmem:[%s1126_s0 + $0x400] sm:$0xff]  ;;  %v137_v30 = vld [vmem:[%s1126_s0 + $0x408] sm:$0xff] }
  0x31   :  { %v326_v31 = vmax.f32 %v260_v22, %v261_v23  ;;  %v263_v32 = vmax.f32 %v131_v24, %v135_v27  ;;  %v140_v33 = vld [vmem:[%s1126_s0 + $0x420] sm:$0xff]  ;;  %v141_v34 = vld [vmem:[%s1126_s0 + $0x428] sm:$0xff]  ;;  %v138_v35 = vld [vmem:[%s1126_s0 + $0x410] sm:$0xf] }
  0x32   :  { %373 = vst [vmem:[%s1127_s1 + $0xe8] sm:$0xf] %v325_v26  ;;  %v264_v36 = vmax.f32 %v136_v29, %v140_v33  ;;  %v265_v37 = vmax.f32 %v137_v30, %v141_v34  ;;  %v139_v38 = vld [vmem:[%s1126_s0 + $0x418] sm:$0xf]  ;;  %v142_v39 = vld [vmem:[%s1126_s0 + $0x430] sm:$0xf] }
  0x33   :  { %374 = vst [vmem:[%s1127_s1 + $0xf0] sm:$0xff] %v326_v31  ;;  %v327_v40 = vmax.f32 %v262_v28, %v263_v32  ;;  %v143_v41 = vld [vmem:[%s1126_s0 + $0x438] sm:$0xf]  ;;  %v266_v42 = vmax.f32 %v138_v35, %v142_v39  ;;  %v144_v43 = vld [vmem:[%s1126_s0 + $0x440] sm:$0xff]  ;;  %v145_v44 = vld [vmem:[%s1126_s0 + $0x448] sm:$0xff] }
  0x34   :  { %v328_v45 = vmax.f32 %v264_v36, %v265_v37  ;;  %v267_v46 = vmax.f32 %v139_v38, %v143_v41  ;;  %v148_v47 = vld [vmem:[%s1126_s0 + $0x460] sm:$0xff]  ;;  %v149_v48 = vld [vmem:[%s1126_s0 + $0x468] sm:$0xff]  ;;  %v146_v49 = vld [vmem:[%s1126_s0 + $0x450] sm:$0xf] }
  0x35   :  { %375 = vst [vmem:[%s1127_s1 + $0xf8] sm:$0xf] %v327_v40  ;;  %v268_v50 = vmax.f32 %v144_v43, %v148_v47  ;;  %v269_v51 = vmax.f32 %v145_v44, %v149_v48  ;;  %v147_v52 = vld [vmem:[%s1126_s0 + $0x458] sm:$0xf]  ;;  %v150_v53 = vld [vmem:[%s1126_s0 + $0x470] sm:$0xf] }
  0x36   :  { %376 = vst [vmem:[%s1127_s1 + $0x100] sm:$0xff] %v328_v45  ;;  %v329_v54 = vmax.f32 %v266_v42, %v267_v46  ;;  %v151_v55 = vld [vmem:[%s1126_s0 + $0x478] sm:$0xf]  ;;  %v270_v56 = vmax.f32 %v146_v49, %v150_v53  ;;  %v152_v57 = vld [vmem:[%s1126_s0 + $0x480] sm:$0xff]  ;;  %v153_v58 = vld [vmem:[%s1126_s0 + $0x488] sm:$0xff] }
  0x37   :  { %v330_v59 = vmax.f32 %v268_v50, %v269_v51  ;;  %v271_v60 = vmax.f32 %v147_v52, %v151_v55  ;;  %v156_v61 = vld [vmem:[%s1126_s0 + $0x4a0] sm:$0xff]  ;;  %v157_v62 = vld [vmem:[%s1126_s0 + $0x4a8] sm:$0xff]  ;;  %v154_v63 = vld [vmem:[%s1126_s0 + $0x490] sm:$0xf] }
  0x38   :  { %377 = vst [vmem:[%s1127_s1 + $0x108] sm:$0xf] %v329_v54  ;;  %v272_v0 = vmax.f32 %v152_v57, %v156_v61  ;;  %v273_v1 = vmax.f32 %v153_v58, %v157_v62  ;;  %v155_v2 = vld [vmem:[%s1126_s0 + $0x498] sm:$0xf]  ;;  %v158_v3 = vld [vmem:[%s1126_s0 + $0x4b0] sm:$0xf] }
  0x39   :  { %378 = vst [vmem:[%s1127_s1 + $0x110] sm:$0xff] %v330_v59  ;;  %v331_v4 = vmax.f32 %v270_v56, %v271_v60  ;;  %v159_v5 = vld [vmem:[%s1126_s0 + $0x4b8] sm:$0xf]  ;;  %v274_v6 = vmax.f32 %v154_v63, %v158_v3  ;;  %v160_v7 = vld [vmem:[%s1126_s0 + $0x4c0] sm:$0xff]  ;;  %v161_v8 = vld [vmem:[%s1126_s0 + $0x4c8] sm:$0xff] }
  0x3a   :  { %v332_v9 = vmax.f32 %v272_v0, %v273_v1  ;;  %v275_v10 = vmax.f32 %v155_v2, %v159_v5  ;;  %v164_v11 = vld [vmem:[%s1126_s0 + $0x4e0] sm:$0xff]  ;;  %v165_v12 = vld [vmem:[%s1126_s0 + $0x4e8] sm:$0xff]  ;;  %v162_v13 = vld [vmem:[%s1126_s0 + $0x4d0] sm:$0xf] }
  0x3b   :  { %379 = vst [vmem:[%s1127_s1 + $0x118] sm:$0xf] %v331_v4  ;;  %v276_v14 = vmax.f32 %v160_v7, %v164_v11  ;;  %v277_v15 = vmax.f32 %v161_v8, %v165_v12  ;;  %v163_v16 = vld [vmem:[%s1126_s0 + $0x4d8] sm:$0xf]  ;;  %v166_v17 = vld [vmem:[%s1126_s0 + $0x4f0] sm:$0xf] }
  0x3c   :  { %380 = vst [vmem:[%s1127_s1 + $0x120] sm:$0xff] %v332_v9  ;;  %v333_v18 = vmax.f32 %v274_v6, %v275_v10  ;;  %v167_v19 = vld [vmem:[%s1126_s0 + $0x4f8] sm:$0xf]  ;;  %v278_v20 = vmax.f32 %v162_v13, %v166_v17  ;;  %v168_v21 = vld [vmem:[%s1126_s0 + $0x500] sm:$0xff]  ;;  %v169_v22 = vld [vmem:[%s1126_s0 + $0x508] sm:$0xff] }
  0x3d   :  { %v334_v23 = vmax.f32 %v276_v14, %v277_v15  ;;  %v279_v24 = vmax.f32 %v163_v16, %v167_v19  ;;  %v172_v25 = vld [vmem:[%s1126_s0 + $0x520] sm:$0xff]  ;;  %v173_v26 = vld [vmem:[%s1126_s0 + $0x528] sm:$0xff]  ;;  %v170_v27 = vld [vmem:[%s1126_s0 + $0x510] sm:$0xf] }
  0x3e   :  { %381 = vst [vmem:[%s1127_s1 + $0x128] sm:$0xf] %v333_v18  ;;  %v280_v28 = vmax.f32 %v168_v21, %v172_v25  ;;  %v281_v29 = vmax.f32 %v169_v22, %v173_v26  ;;  %v171_v30 = vld [vmem:[%s1126_s0 + $0x518] sm:$0xf]  ;;  %v174_v31 = vld [vmem:[%s1126_s0 + $0x530] sm:$0xf] }
  0x3f   :  { %382 = vst [vmem:[%s1127_s1 + $0x130] sm:$0xff] %v334_v23  ;;  %v335_v32 = vmax.f32 %v278_v20, %v279_v24  ;;  %v175_v33 = vld [vmem:[%s1126_s0 + $0x538] sm:$0xf]  ;;  %v282_v34 = vmax.f32 %v170_v27, %v174_v31  ;;  %v176_v35 = vld [vmem:[%s1126_s0 + $0x540] sm:$0xff]  ;;  %v177_v36 = vld [vmem:[%s1126_s0 + $0x548] sm:$0xff] }
  0x40   :  { %v336_v37 = vmax.f32 %v280_v28, %v281_v29  ;;  %v283_v38 = vmax.f32 %v171_v30, %v175_v33  ;;  %v180_v39 = vld [vmem:[%s1126_s0 + $0x560] sm:$0xff]  ;;  %v181_v40 = vld [vmem:[%s1126_s0 + $0x568] sm:$0xff]  ;;  %v178_v41 = vld [vmem:[%s1126_s0 + $0x550] sm:$0xf] }
  0x41   :  { %383 = vst [vmem:[%s1127_s1 + $0x138] sm:$0xf] %v335_v32  ;;  %v284_v42 = vmax.f32 %v176_v35, %v180_v39  ;;  %v285_v43 = vmax.f32 %v177_v36, %v181_v40  ;;  %v179_v44 = vld [vmem:[%s1126_s0 + $0x558] sm:$0xf]  ;;  %v182_v45 = vld [vmem:[%s1126_s0 + $0x570] sm:$0xf] }
  0x42   :  { %384 = vst [vmem:[%s1127_s1 + $0x140] sm:$0xff] %v336_v37  ;;  %v337_v46 = vmax.f32 %v282_v34, %v283_v38  ;;  %v183_v47 = vld [vmem:[%s1126_s0 + $0x578] sm:$0xf]  ;;  %v286_v48 = vmax.f32 %v178_v41, %v182_v45  ;;  %v184_v49 = vld [vmem:[%s1126_s0 + $0x580] sm:$0xff]  ;;  %v185_v50 = vld [vmem:[%s1126_s0 + $0x588] sm:$0xff] }
  0x43   :  { %v338_v51 = vmax.f32 %v284_v42, %v285_v43  ;;  %v287_v52 = vmax.f32 %v179_v44, %v183_v47  ;;  %v188_v53 = vld [vmem:[%s1126_s0 + $0x5a0] sm:$0xff]  ;;  %v189_v54 = vld [vmem:[%s1126_s0 + $0x5a8] sm:$0xff]  ;;  %v186_v55 = vld [vmem:[%s1126_s0 + $0x590] sm:$0xf] }
  0x44   :  { %385 = vst [vmem:[%s1127_s1 + $0x148] sm:$0xf] %v337_v46  ;;  %v288_v56 = vmax.f32 %v184_v49, %v188_v53  ;;  %v289_v57 = vmax.f32 %v185_v50, %v189_v54  ;;  %v187_v58 = vld [vmem:[%s1126_s0 + $0x598] sm:$0xf]  ;;  %v190_v59 = vld [vmem:[%s1126_s0 + $0x5b0] sm:$0xf] }
  0x45   :  { %386 = vst [vmem:[%s1127_s1 + $0x150] sm:$0xff] %v338_v51  ;;  %v339_v60 = vmax.f32 %v286_v48, %v287_v52  ;;  %v191_v61 = vld [vmem:[%s1126_s0 + $0x5b8] sm:$0xf]  ;;  %v290_v62 = vmax.f32 %v186_v55, %v190_v59  ;;  %v192_v63 = vld [vmem:[%s1126_s0 + $0x5c0] sm:$0xff]  ;;  %v193_v0 = vld [vmem:[%s1126_s0 + $0x5c8] sm:$0xff] }
  0x46   :  { %v340_v1 = vmax.f32 %v288_v56, %v289_v57  ;;  %v291_v2 = vmax.f32 %v187_v58, %v191_v61  ;;  %v196_v3 = vld [vmem:[%s1126_s0 + $0x5e0] sm:$0xff]  ;;  %v197_v4 = vld [vmem:[%s1126_s0 + $0x5e8] sm:$0xff]  ;;  %v194_v5 = vld [vmem:[%s1126_s0 + $0x5d0] sm:$0xf] }
  0x47   :  { %387 = vst [vmem:[%s1127_s1 + $0x158] sm:$0xf] %v339_v60  ;;  %v292_v6 = vmax.f32 %v192_v63, %v196_v3  ;;  %v293_v7 = vmax.f32 %v193_v0, %v197_v4  ;;  %v195_v8 = vld [vmem:[%s1126_s0 + $0x5d8] sm:$0xf]  ;;  %v198_v9 = vld [vmem:[%s1126_s0 + $0x5f0] sm:$0xf] }
  0x48   :  { %388 = vst [vmem:[%s1127_s1 + $0x160] sm:$0xff] %v340_v1  ;;  %v341_v10 = vmax.f32 %v290_v62, %v291_v2  ;;  %v199_v11 = vld [vmem:[%s1126_s0 + $0x5f8] sm:$0xf]  ;;  %v294_v12 = vmax.f32 %v194_v5, %v198_v9 }
  0x49   :  { %v342_v13 = vmax.f32 %v292_v6, %v293_v7  ;;  %v295_v14 = vmax.f32 %v195_v8, %v199_v11 }
  0x4a   :  { %389 = vst [vmem:[%s1127_s1 + $0x168] sm:$0xf] %v341_v10 }
  0x4b   :  { %390 = vst [vmem:[%s1127_s1 + $0x170] sm:$0xff] %v342_v13  ;;  %v343_v15 = vmax.f32 %v294_v12, %v295_v14 }
  0x4d   :  { %391 = vst [vmem:[%s1127_s1 + $0x178] sm:$0xf] %v343_v15 }

// kernel: cnn_mnist_forward.8
= control target key start
LH: loop header
LB: loop body
LE: loop exit
PB: predicated region body
PF: predicated region fallthrough
CT: control target
= control target key end

     0   :  { %s158_s0 = inlined_call_operand.vmem [shape: f32[8,2,4,256], index: 0, kind: input, shape index: {}]   ;;  %s159_s1 = inlined_call_operand.vmem [shape: f32[8,4,128], index: 1, kind: output, shape index: {}]  }
   0x1   :  { %v8_v0 = vld [vmem:[%s158_s0] sm:$0xff]  ;;  %v9_v1 = vld [vmem:[%s158_s0 + $0x8] sm:$0xff]  ;;  %v10_v2 = vld [vmem:[%s158_s0 + $0x10] sm:$0xff] }
   0x2   :  { %v24_v3 = vmax.f32 %v8_v0, %v9_v1  ;;  %v11_v4 = vld [vmem:[%s158_s0 + $0x18] sm:$0xff]  ;;  %v12_v5 = vld [vmem:[%s158_s0 + $0x20] sm:$0xff]  ;;  %v13_v6 = vld [vmem:[%s158_s0 + $0x28] sm:$0xff] }
   0x3   :  { %v25_v7 = vmax.f32 %v10_v2, %v11_v4  ;;  %v26_v8 = vmax.f32 %v12_v5, %v13_v6  ;;  %v14_v9 = vld [vmem:[%s158_s0 + $0x30] sm:$0xff]  ;;  %v15_v10 = vld [vmem:[%s158_s0 + $0x38] sm:$0xff]  ;;  %v16_v11 = vld [vmem:[%s158_s0 + $0x40] sm:$0xff] }
   0x4   :  { %v40_v12 = vrot.slane %v24_v3, 4  ;;  %v27_v13 = vmax.f32 %v14_v9, %v15_v10  ;;  %v17_v14 = vld [vmem:[%s158_s0 + $0x48] sm:$0xff]  ;;  %v18_v15 = vld [vmem:[%s158_s0 + $0x50] sm:$0xff]  ;;  %v19_v16 = vld [vmem:[%s158_s0 + $0x58] sm:$0xff] }
   0x5   :  { %v41_v17 = vrot.slane %v25_v7, 4  ;;  %v42_v18 = vrot.slane %v26_v8, 4  ;;  %v28_v19 = vmax.f32 %v16_v11, %v17_v14  ;;  %v29_v20 = vmax.f32 %v18_v15, %v19_v16  ;;  %v20_v21 = vld [vmem:[%s158_s0 + $0x60] sm:$0xff]  ;;  %v21_v22 = vld [vmem:[%s158_s0 + $0x68] sm:$0xff]  ;;  %v22_v23 = vld [vmem:[%s158_s0 + $0x70] sm:$0xff] }
   0x6   :  { %v56_v24 = vmax.f32 %v24_v3, %v40_v12  ;;  %v43_v25 = vrot.slane %v27_v13, 4  ;;  %v30_v26 = vmax.f32 %v20_v21, %v21_v22  ;;  %v23_v27 = vld [vmem:[%s158_s0 + $0x78] sm:$0xff] }
   0x7   :  { %v57_v28 = vmax.f32 %v25_v7, %v41_v17  ;;  %v58_v29 = vmax.f32 %v26_v8, %v42_v18  ;;  %v44_v30 = vrot.slane %v28_v19, 4  ;;  %v45_v31 = vrot.slane %v29_v20, 4 }
   0x8   :  { %64 = vst [vmem:[%s159_s1] sm:$0xf] %v56_v24  ;;  %v59_v32 = vmax.f32 %v27_v13, %v43_v25  ;;  %v46_v33 = vrot.slane %v30_v26, 4  ;;  %v31_v34 = vmax.f32 %v22_v23, %v23_v27 }
   0x9   :  { %65 = vst [vmem:[%s159_s1 + $0x4] sm:$0xf] %v57_v28  ;;  %v60_v35 = vmax.f32 %v28_v19, %v44_v30  ;;  %v61_v36 = vmax.f32 %v29_v20, %v45_v31 }
   0xa   :  { %66 = vst [vmem:[%s159_s1 + $0x8] sm:$0xf] %v58_v29  ;;  %v62_v37 = vmax.f32 %v30_v26, %v46_v33  ;;  %v47_v38 = vrot.slane %v31_v34, 4 }
   0xb   :  { %67 = vst [vmem:[%s159_s1 + $0xc] sm:$0xf] %v59_v32 }
   0xc   :  { %68 = vst [vmem:[%s159_s1 + $0x10] sm:$0xf] %v60_v35  ;;  %v63_v39 = vmax.f32 %v31_v34, %v47_v38 }
   0xd   :  { %69 = vst [vmem:[%s159_s1 + $0x14] sm:$0xf] %v61_v36 }
   0xe   :  { %70 = vst [vmem:[%s159_s1 + $0x18] sm:$0xf] %v62_v37 }
   0xf   :  { %71 = vst [vmem:[%s159_s1 + $0x1c] sm:$0xf] %v63_v39 }

// kernel: cnn_mnist_forward.9
= control target key start
LH: loop header
LB: loop body
LE: loop exit
PB: predicated region body
PF: predicated region fallthrough
CT: control target
= control target key end

     0   :  { %s2800_s1 = inlined_call_operand.vmem [shape: bf16[2048,128], index: 1, kind: input, shape index: {}]   ;;  %s2801_s2 = inlined_call_operand.vmem [shape: f32[1,128], index: 2, kind: input, shape index: {}]   ;;  %s2802_s0 = inlined_call_operand.vmem [shape: bf16[16,2048], index: 0, kind: input, shape index: {}]   ;;  %s2803_s4 = inlined_call_operand.vmem [shape: f32[1,128], index: 4, kind: input, shape index: {}]   ;;  %s2804_s3 = inlined_call_operand.vmem [shape: bf16[128,128], index: 3, kind: input, shape index: {}]   ;;  %s2805_s5 = inlined_call_operand.vmem [shape: f32[16,128], index: 5, kind: output, shape index: {}]  }
   0x1   :  { %v2115_v0 = vld [vmem:[%s2800_s1 + $0x38] sm:$0xff]  ;;  %v2114_v4 = vld [vmem:[%s2800_s1 + $0x30] sm:$0xff]  ;;  %v2113_v8 = vld [vmem:[%s2800_s1 + $0x28] sm:$0xff] }
   0x2   :  { %v2123_v1 = vld [vmem:[%s2800_s1 + $0x78] sm:$0xff]  ;;  %1144 = vmatpush.bf16.msra.mxu0 %v2115_v0  ;;  %v2122_v5 = vld [vmem:[%s2800_s1 + $0x70] sm:$0xff]  ;;  %v2121_v9 = vld [vmem:[%s2800_s1 + $0x68] sm:$0xff] }
   0x3   :  { %v2131_v2 = vld [vmem:[%s2800_s1 + $0xb8] sm:$0xff]  ;;  %1158 = vmatpush.bf16.msra.mxu1 %v2123_v1  ;;  %v2130_v6 = vld [vmem:[%s2800_s1 + $0xb0] sm:$0xff]  ;;  %v2129_v10 = vld [vmem:[%s2800_s1 + $0xa8] sm:$0xff] }
   0x4   :  { %v2139_v3 = vld [vmem:[%s2800_s1 + $0xf8] sm:$0xff]  ;;  %1172 = vmatpush.bf16.msra.mxu2 %v2131_v2  ;;  %v2138_v7 = vld [vmem:[%s2800_s1 + $0xf0] sm:$0xff]  ;;  %v2137_v11 = vld [vmem:[%s2800_s1 + $0xe8] sm:$0xff] }
   0x5   :  { %1186 = vmatpush.bf16.msra.mxu3 %v2139_v3  ;;  %v2112_v12 = vld [vmem:[%s2800_s1 + $0x20] sm:$0xff]  ;;  %v2111_v16 = vld [vmem:[%s2800_s1 + $0x18] sm:$0xff]  ;;  %v2110_v20 = vld [vmem:[%s2800_s1 + $0x10] sm:$0xff] }
   0x6   :  { %1145 = vmatpush.bf16.msra.mxu0 %v2114_v4  ;;  %v2120_v13 = vld [vmem:[%s2800_s1 + $0x60] sm:$0xff]  ;;  %v2119_v17 = vld [vmem:[%s2800_s1 + $0x58] sm:$0xff]  ;;  %v2118_v21 = vld [vmem:[%s2800_s1 + $0x50] sm:$0xff] }
   0x7   :  { %1159 = vmatpush.bf16.msra.mxu1 %v2122_v5  ;;  %v2128_v14 = vld [vmem:[%s2800_s1 + $0xa0] sm:$0xff]  ;;  %v2127_v18 = vld [vmem:[%s2800_s1 + $0x98] sm:$0xff]  ;;  %v2126_v22 = vld [vmem:[%s2800_s1 + $0x90] sm:$0xff] }
   0x8   :  { %1173 = vmatpush.bf16.msra.mxu2 %v2130_v6  ;;  %v2136_v15 = vld [vmem:[%s2800_s1 + $0xe0] sm:$0xff]  ;;  %v2135_v19 = vld [vmem:[%s2800_s1 + $0xd8] sm:$0xff]  ;;  %v2134_v23 = vld [vmem:[%s2800_s1 + $0xd0] sm:$0xff] }
   0x9   :  { %1187 = vmatpush.bf16.msra.mxu3 %v2138_v7  ;;  %v2109_v24 = vld [vmem:[%s2800_s1 + $0x8] sm:$0xff]  ;;  %v2108_v28 = vld [vmem:[%s2800_s1] sm:$0xff]  ;;  %v2147_v32 = vld [vmem:[%s2800_s1 + $0x138] sm:$0xff] }
   0xa   :  { %1146 = vmatpush.bf16.msra.mxu0 %v2113_v8  ;;  %v2117_v25 = vld [vmem:[%s2800_s1 + $0x48] sm:$0xff]  ;;  %v2116_v29 = vld [vmem:[%s2800_s1 + $0x40] sm:$0xff]  ;;  %v2155_v33 = vld [vmem:[%s2800_s1 + $0x178] sm:$0xff] }
   0xb   :  { %1160 = vmatpush.bf16.msra.mxu1 %v2121_v9  ;;  %v2125_v26 = vld [vmem:[%s2800_s1 + $0x88] sm:$0xff]  ;;  %v2124_v30 = vld [vmem:[%s2800_s1 + $0x80] sm:$0xff]  ;;  %v2163_v42 = vld [vmem:[%s2800_s1 + $0x1b8] sm:$0xff] }
   0xc   :  { %1174 = vmatpush.bf16.msra.mxu2 %v2129_v10  ;;  %v2133_v27 = vld [vmem:[%s2800_s1 + $0xc8] sm:$0xff]  ;;  %v2132_v31 = vld [vmem:[%s2800_s1 + $0xc0] sm:$0xff]  ;;  %v2171_v43 = vld [vmem:[%s2800_s1 + $0x1f8] sm:$0xff] }
   0xd   :  { %1188 = vmatpush.bf16.msra.mxu3 %v2137_v11  ;;  %v1486_v34 = vld [vmem:[%s2802_s0] sm:$0xf]  ;;  %v1494_v36 = vld [vmem:[%s2802_s0 + $0x8] sm:$0xf]  ;;  %v2092_v38 = vld [vmem:[%s2802_s0 + $0x4] sm:$0xf] }
   0xe   :  { %1147 = vmatpush.bf16.msra.mxu0 %v2112_v12  ;;  %v2100_v35 = vld [vmem:[%s2802_s0 + $0x3c] sm:$0xf0]  ;;  %v2101_v37 = vld [vmem:[%s2802_s0 + $0x44] sm:$0xf0]  ;;  %v1488_v39 = vld [vmem:[%s2802_s0 + $0x40] sm:$0xf0] }
   0xf   :  { %1161 = vmatpush.bf16.msra.mxu1 %v2120_v13  ;;  %v2093_v40 = vld [vmem:[%s2802_s0 + $0xc] sm:$0xf]  ;;  %v1487_v44 = vor.u32 %v2100_v35, %v1486_v34  ;;  %v1495_v45 = vor.u32 %v2101_v37, %v1494_v36  ;;  %v1491_v46 = vor.u32 %v2092_v38, %v1488_v39  ;;  %v2146_v48 = vld [vmem:[%s2800_s1 + $0x130] sm:$0xff]  ;;  %v2144_v56 = vld [vmem:[%s2800_s1 + $0x120] sm:$0xff] }
  0x10   :  { %1175 = vmatpush.bf16.msra.mxu2 %v2128_v14  ;;  %v1496_v41 = vld [vmem:[%s2802_s0 + $0x48] sm:$0xf0]  ;;  %v2154_v49 = vld [vmem:[%s2800_s1 + $0x170] sm:$0xff]  ;;  %v2152_v57 = vld [vmem:[%s2800_s1 + $0x160] sm:$0xff] }
  0x11   :  { %1189 = vmatpush.bf16.msra.mxu3 %v2136_v15  ;;  %v1499_v47 = vor.u32 %v2093_v40, %v1496_v41  ;;  %v2162_v50 = vld [vmem:[%s2800_s1 + $0x1b0] sm:$0xff]  ;;  %v2145_v52 = vld [vmem:[%s2800_s1 + $0x128] sm:$0xff]  ;;  %v2160_v58 = vld [vmem:[%s2800_s1 + $0x1a0] sm:$0xff] }
  0x12   :  { %1148 = vmatpush.bf16.msra.mxu0 %v2111_v16  ;;  %v2170_v51 = vld [vmem:[%s2800_s1 + $0x1f0] sm:$0xff]  ;;  %v2153_v53 = vld [vmem:[%s2800_s1 + $0x168] sm:$0xff]  ;;  %v2168_v59 = vld [vmem:[%s2800_s1 + $0x1e0] sm:$0xff] }
  0x13   :  { %1162 = vmatpush.bf16.msra.mxu1 %v2119_v17  ;;  %v2161_v54 = vld [vmem:[%s2800_s1 + $0x1a8] sm:$0xff]  ;;  %v2143_v60 = vld [vmem:[%s2800_s1 + $0x118] sm:$0xff]  ;;  %v2142_v0 = vld [vmem:[%s2800_s1 + $0x110] sm:$0xff] }
  0x14   :  { %1176 = vmatpush.bf16.msra.mxu2 %v2127_v18  ;;  %v2169_v55 = vld [vmem:[%s2800_s1 + $0x1e8] sm:$0xff]  ;;  %v2151_v61 = vld [vmem:[%s2800_s1 + $0x158] sm:$0xff]  ;;  %v2150_v1 = vld [vmem:[%s2800_s1 + $0x150] sm:$0xff] }
  0x15   :  { %1190 = vmatpush.bf16.msra.mxu3 %v2135_v19  ;;  %v2159_v62 = vld [vmem:[%s2800_s1 + $0x198] sm:$0xff]  ;;  %v2158_v2 = vld [vmem:[%s2800_s1 + $0x190] sm:$0xff]  ;;  %v2141_v4 = vld [vmem:[%s2800_s1 + $0x108] sm:$0xff] }
  0x16   :  { %1149 = vmatpush.bf16.msra.mxu0 %v2110_v20  ;;  %v2167_v63 = vld [vmem:[%s2800_s1 + $0x1d8] sm:$0xff]  ;;  %v2166_v3 = vld [vmem:[%s2800_s1 + $0x1d0] sm:$0xff]  ;;  %v2149_v5 = vld [vmem:[%s2800_s1 + $0x148] sm:$0xff] }
  0x17   :  { %1163 = vmatpush.bf16.msra.mxu1 %v2118_v21  ;;  %v2157_v6 = vld [vmem:[%s2800_s1 + $0x188] sm:$0xff]  ;;  %v2140_v8 = vld [vmem:[%s2800_s1 + $0x100] sm:$0xff]  ;;  %v2179_v12 = vld [vmem:[%s2800_s1 + $0x238] sm:$0xff] }
  0x18   :  { %1177 = vmatpush.bf16.msra.mxu2 %v2126_v22  ;;  %v2165_v7 = vld [vmem:[%s2800_s1 + $0x1c8] sm:$0xff]  ;;  %v2148_v9 = vld [vmem:[%s2800_s1 + $0x140] sm:$0xff]  ;;  %v2187_v13 = vld [vmem:[%s2800_s1 + $0x278] sm:$0xff] }
  0x19   :  { %1191 = vmatpush.bf16.msra.mxu3 %v2134_v23  ;;  %v2156_v10 = vld [vmem:[%s2800_s1 + $0x180] sm:$0xff]  ;;  %v1502_v14 = vld [vmem:[%s2802_s0 + $0x10] sm:$0xf]  ;;  %v1510_v16 = vld [vmem:[%s2802_s0 + $0x18] sm:$0xf] }
  0x1a   :  { %1150 = vmatpush.bf16.msra.mxu0 %v2109_v24  ;;  %v2164_v11 = vld [vmem:[%s2800_s1 + $0x1c0] sm:$0xff]  ;;  %v2102_v15 = vld [vmem:[%s2802_s0 + $0x4c] sm:$0xf0]  ;;  %v2103_v17 = vld [vmem:[%s2802_s0 + $0x54] sm:$0xf0] }
  0x1b   :  { %1164 = vmatpush.bf16.msra.mxu1 %v2117_v25  ;;  %v2094_v18 = vld [vmem:[%s2802_s0 + $0x14] sm:$0xf]  ;;  %v2095_v20 = vld [vmem:[%s2802_s0 + $0x1c] sm:$0xf]  ;;  %v1503_v24 = vor.u32 %v2102_v15, %v1502_v14  ;;  %v1511_v25 = vor.u32 %v2103_v17, %v1510_v16  ;;  %v2193_v34 = vld [vmem:[%s2800_s1 + $0x2a8] sm:$0xff] }
  0x1c   :  { %1178 = vmatpush.bf16.msra.mxu2 %v2125_v26  ;;  %v1504_v19 = vld [vmem:[%s2802_s0 + $0x50] sm:$0xf0]  ;;  %v1512_v21 = vld [vmem:[%s2802_s0 + $0x58] sm:$0xf0]  ;;  %v2201_v35 = vld [vmem:[%s2800_s1 + $0x2e8] sm:$0xff] }
  0x1d   :  { %1192 = vmatpush.bf16.msra.mxu3 %v2133_v27  ;;  %v2195_v22 = vld [vmem:[%s2800_s1 + $0x2b8] sm:$0xff]  ;;  %v1507_v26 = vor.u32 %v2094_v18, %v1504_v19  ;;  %v1515_v27 = vor.u32 %v2095_v20, %v1512_v21  ;;  %v2176_v36 = vld [vmem:[%s2800_s1 + $0x220] sm:$0xff]  ;;  %v2225_v14 = vld [vmem:[%s2800_s1 + $0x3a8] sm:$0xff] }
  0x1e   :  { %1151 = vmatpush.bf16.msra.mxu0 %v2108_v28  ;;  %v2203_v23 = vld [vmem:[%s2800_s1 + $0x2f8] sm:$0xff]  ;;  %v2178_v28 = vld [vmem:[%s2800_s1 + $0x230] sm:$0xff]  ;;  %v2184_v37 = vld [vmem:[%s2800_s1 + $0x260] sm:$0xff] }
  0x1f   :  { %1165 = vmatpush.bf16.msra.mxu1 %v2116_v29  ;;  %v2186_v29 = vld [vmem:[%s2800_s1 + $0x270] sm:$0xff]  ;;  %v2192_v38 = vld [vmem:[%s2800_s1 + $0x2a0] sm:$0xff]  ;;  %v2175_v40 = vld [vmem:[%s2800_s1 + $0x218] sm:$0xff] }
  0x20   :  { %1179 = vmatpush.bf16.msra.mxu2 %v2124_v30  ;;  %v2194_v30 = vld [vmem:[%s2800_s1 + $0x2b0] sm:$0xff]  ;;  %v2200_v39 = vld [vmem:[%s2800_s1 + $0x2e0] sm:$0xff]  ;;  %v2183_v41 = vld [vmem:[%s2800_s1 + $0x258] sm:$0xff] }
  0x21   :  { %1193 = vmatpush.bf16.msra.mxu3 %v2132_v31  ;;  %1152 = vmatmul.bf16.vlgmr.msra.gmra.mxu0 %v1487_v44  ;;  %v2202_v31 = vld [vmem:[%s2800_s1 + $0x2f0] sm:$0xff]  ;;  %v2233_v15 = vld [vmem:[%s2800_s1 + $0x3e8] sm:$0xff]  ;;  %v2208_v16 = vld [vmem:[%s2800_s1 + $0x320] sm:$0xff] }
  0x22   :  { %1200 = vmatpush.bf16.msrb.mxu0 %v2147_v32  ;;  %1166 = vmatmul.bf16.vlgmr.msra.gmra.mxu1 %v1491_v46  ;;  %v2177_v32 = vld [vmem:[%s2800_s1 + $0x228] sm:$0xff]  ;;  %v2174_v44 = vld [vmem:[%s2800_s1 + $0x210] sm:$0xff]  ;;  %v2216_v17 = vld [vmem:[%s2800_s1 + $0x360] sm:$0xff] }
  0x23   :  { %1214 = vmatpush.bf16.msrb.mxu1 %v2155_v33  ;;  %1180 = vmatmul.bf16.vlgmr.msra.gmra.mxu2 %v1495_v45  ;;  %v2185_v33 = vld [vmem:[%s2800_s1 + $0x268] sm:$0xff]  ;;  %v2182_v45 = vld [vmem:[%s2800_s1 + $0x250] sm:$0xff]  ;;  %v2224_v18 = vld [vmem:[%s2800_s1 + $0x3a0] sm:$0xff] }
  0x24   :  { %1228 = vmatpush.bf16.msrb.mxu2 %v2163_v42  ;;  %1194 = vmatmul.bf16.vlgmr.msra.gmra.mxu3 %v1499_v47  ;;  %v2191_v42 = vld [vmem:[%s2800_s1 + $0x298] sm:$0xff]  ;;  %v2190_v46 = vld [vmem:[%s2800_s1 + $0x290] sm:$0xff]  ;;  %v2232_v19 = vld [vmem:[%s2800_s1 + $0x3e0] sm:$0xff] }
  0x25   :  { %1242 = vmatpush.bf16.msrb.mxu3 %v2171_v43  ;;  %v2199_v43 = vld [vmem:[%s2800_s1 + $0x2d8] sm:$0xff]  ;;  %v2198_v47 = vld [vmem:[%s2800_s1 + $0x2d0] sm:$0xff] }
  0x26   :  { %1201 = vmatpush.bf16.msrb.mxu0 %v2146_v48  ;;  %v2173_v48 = vld [vmem:[%s2800_s1 + $0x208] sm:$0xff]  ;;  %v2207_v20 = vld [vmem:[%s2800_s1 + $0x318] sm:$0xff] }
  0x27   :  { %1215 = vmatpush.bf16.msrb.mxu1 %v2154_v49  ;;  %v2181_v49 = vld [vmem:[%s2800_s1 + $0x248] sm:$0xff]  ;;  %v2215_v21 = vld [vmem:[%s2800_s1 + $0x358] sm:$0xff] }
  0x28   :  { %1229 = vmatpush.bf16.msrb.mxu2 %v2162_v50  ;;  %v2189_v50 = vld [vmem:[%s2800_s1 + $0x288] sm:$0xff] }
  0x29   :  { %1243 = vmatpush.bf16.msrb.mxu3 %v2170_v51  ;;  %v2197_v51 = vld [vmem:[%s2800_s1 + $0x2c8] sm:$0xff] }
  0x2a   :  { %1202 = vmatpush.bf16.msrb.mxu0 %v2145_v52  ;;  %v2172_v52 = vld [vmem:[%s2800_s1 + $0x200] sm:$0xff] }
  0x2b   :  { %1216 = vmatpush.bf16.msrb.mxu1 %v2153_v53  ;;  %v2180_v53 = vld [vmem:[%s2800_s1 + $0x240] sm:$0xff] }
  0x2c   :  { %1230 = vmatpush.bf16.msrb.mxu2 %v2161_v54  ;;  %v2188_v54 = vld [vmem:[%s2800_s1 + $0x280] sm:$0xff] }
  0x2d   :  { %1244 = vmatpush.bf16.msrb.mxu3 %v2169_v55  ;;  %v2196_v55 = vld [vmem:[%s2800_s1 + $0x2c0] sm:$0xff] }
  0x2e   :  { %1203 = vmatpush.bf16.msrb.mxu0 %v2144_v56  ;;  %v2211_v56 = vld [vmem:[%s2800_s1 + $0x338] sm:$0xff] }
  0x2f   :  { %1217 = vmatpush.bf16.msrb.mxu1 %v2152_v57  ;;  %v2219_v57 = vld [vmem:[%s2800_s1 + $0x378] sm:$0xff] }
  0x30   :  { %1231 = vmatpush.bf16.msrb.mxu2 %v2160_v58  ;;  %v1518_v58 = vld [vmem:[%s2802_s0 + $0x20] sm:$0xf] }
  0x31   :  { %1245 = vmatpush.bf16.msrb.mxu3 %v2168_v59  ;;  %v2104_v59 = vld [vmem:[%s2802_s0 + $0x5c] sm:$0xf0] }
  0x32   :  { %1204 = vmatpush.bf16.msrb.mxu0 %v2143_v60  ;;  %v1526_v60 = vld [vmem:[%s2802_s0 + $0x28] sm:$0xf] }
  0x33   :  { %1218 = vmatpush.bf16.msrb.mxu1 %v2151_v61  ;;  %v2105_v61 = vld [vmem:[%s2802_s0 + $0x64] sm:$0xf0] }
  0x34   :  { %1232 = vmatpush.bf16.msrb.mxu2 %v2159_v62  ;;  %v2096_v62 = vld [vmem:[%s2802_s0 + $0x24] sm:$0xf] }
  0x35   :  { %1246 = vmatpush.bf16.msrb.mxu3 %v2167_v63  ;;  %v1520_v63 = vld [vmem:[%s2802_s0 + $0x60] sm:$0xf0] }
  0x36   :  { %1205 = vmatpush.bf16.msrb.mxu0 %v2142_v0  ;;  %v2097_v0 = vld [vmem:[%s2802_s0 + $0x2c] sm:$0xf] }
  0x37   :  { %1219 = vmatpush.bf16.msrb.mxu1 %v2150_v1  ;;  %v1528_v1 = vld [vmem:[%s2802_s0 + $0x68] sm:$0xf0] }
  0x38   :  { %1233 = vmatpush.bf16.msrb.mxu2 %v2158_v2  ;;  %v2227_v2 = vld [vmem:[%s2800_s1 + $0x3b8] sm:$0xff] }
  0x39   :  { %1247 = vmatpush.bf16.msrb.mxu3 %v2166_v3  ;;  %v2235_v3 = vld [vmem:[%s2800_s1 + $0x3f8] sm:$0xff] }
  0x3a   :  { %1206 = vmatpush.bf16.msrb.mxu0 %v2141_v4  ;;  %v1519_v4 = vor.u32 %v2104_v59, %v1518_v58 }
  0x3b   :  { %1220 = vmatpush.bf16.msrb.mxu1 %v2149_v5  ;;  %v1527_v5 = vor.u32 %v2105_v61, %v1526_v60 }
  0x3c   :  { %1234 = vmatpush.bf16.msrb.mxu2 %v2157_v6  ;;  %v1523_v6 = vor.u32 %v2096_v62, %v1520_v63  ;;  %v2241_v62 = vld [vmem:[%s2804_s3 + $0x28] sm:$0xff] }
  0x3d   :  { %1248 = vmatpush.bf16.msrb.mxu3 %v2165_v7  ;;  %v1531_v7 = vor.u32 %v2097_v0, %v1528_v1 }
  0x3e   :  { %1207 = vmatpush.bf16.msrb.mxu0 %v2140_v8  ;;  %v2210_v8 = vld [vmem:[%s2800_s1 + $0x330] sm:$0xff] }
  0x3f   :  { %1221 = vmatpush.bf16.msrb.mxu1 %v2148_v9  ;;  %v2218_v9 = vld [vmem:[%s2800_s1 + $0x370] sm:$0xff] }
  0x40   :  { %1235 = vmatpush.bf16.msrb.mxu2 %v2156_v10  ;;  %v2226_v10 = vld [vmem:[%s2800_s1 + $0x3b0] sm:$0xff] }
  0x41   :  { %1249 = vmatpush.bf16.msrb.mxu3 %v2164_v11  ;;  %1208 = vmatmul.bf16.vlgmr.msrb.gmra.mxu0 %v1503_v24  ;;  %v2234_v11 = vld [vmem:[%s2800_s1 + $0x3f0] sm:$0xff] }
  0x42   :  { %1256 = vmatpush.bf16.msra.mxu0 %v2179_v12  ;;  %1222 = vmatmul.bf16.vlgmr.msrb.gmra.mxu1 %v1507_v26  ;;  %v2209_v12 = vld [vmem:[%s2800_s1 + $0x328] sm:$0xff]  ;;  %v2206_v24 = vld [vmem:[%s2800_s1 + $0x310] sm:$0xff] }
  0x43   :  { %1270 = vmatpush.bf16.msra.mxu1 %v2187_v13  ;;  %1236 = vmatmul.bf16.vlgmr.msrb.gmra.mxu2 %v1511_v25  ;;  %v2217_v13 = vld [vmem:[%s2800_s1 + $0x368] sm:$0xff]  ;;  %v2214_v25 = vld [vmem:[%s2800_s1 + $0x350] sm:$0xff] }
  0x44   :  { %1284 = vmatpush.bf16.msra.mxu2 %v2195_v22  ;;  %1250 = vmatmul.bf16.vlgmr.msrb.gmra.mxu3 %v1515_v27  ;;  %v2223_v22 = vld [vmem:[%s2800_s1 + $0x398] sm:$0xff]  ;;  %v2222_v26 = vld [vmem:[%s2800_s1 + $0x390] sm:$0xff] }
  0x45   :  { %1298 = vmatpush.bf16.msra.mxu3 %v2203_v23  ;;  %v2231_v23 = vld [vmem:[%s2800_s1 + $0x3d8] sm:$0xff]  ;;  %v2230_v27 = vld [vmem:[%s2800_s1 + $0x3d0] sm:$0xff] }
  0x46   :  { %1257 = vmatpush.bf16.msra.mxu0 %v2178_v28  ;;  %v2205_v28 = vld [vmem:[%s2800_s1 + $0x308] sm:$0xff] }
  0x47   :  { %1271 = vmatpush.bf16.msra.mxu1 %v2186_v29  ;;  %v2213_v29 = vld [vmem:[%s2800_s1 + $0x348] sm:$0xff] }
  0x48   :  { %1285 = vmatpush.bf16.msra.mxu2 %v2194_v30  ;;  %v2221_v30 = vld [vmem:[%s2800_s1 + $0x388] sm:$0xff] }
  0x49   :  { %1299 = vmatpush.bf16.msra.mxu3 %v2202_v31  ;;  %v2229_v31 = vld [vmem:[%s2800_s1 + $0x3c8] sm:$0xff] }
  0x4a   :  { %1258 = vmatpush.bf16.msra.mxu0 %v2177_v32  ;;  %v2204_v32 = vld [vmem:[%s2800_s1 + $0x300] sm:$0xff] }
  0x4b   :  { %1272 = vmatpush.bf16.msra.mxu1 %v2185_v33  ;;  %v2212_v33 = vld [vmem:[%s2800_s1 + $0x340] sm:$0xff] }
  0x4c   :  { %1286 = vmatpush.bf16.msra.mxu2 %v2193_v34  ;;  %v2220_v34 = vld [vmem:[%s2800_s1 + $0x380] sm:$0xff] }
  0x4d   :  { %1300 = vmatpush.bf16.msra.mxu3 %v2201_v35  ;;  %v2228_v35 = vld [vmem:[%s2800_s1 + $0x3c0] sm:$0xff] }
  0x4e   :  { %1259 = vmatpush.bf16.msra.mxu0 %v2176_v36  ;;  %v1534_v36 = vld [vmem:[%s2802_s0 + $0x30] sm:$0xf] }
  0x4f   :  { %1273 = vmatpush.bf16.msra.mxu1 %v2184_v37  ;;  %v2106_v37 = vld [vmem:[%s2802_s0 + $0x6c] sm:$0xf0] }
  0x50   :  { %1287 = vmatpush.bf16.msra.mxu2 %v2192_v38  ;;  %v2098_v38 = vld [vmem:[%s2802_s0 + $0x34] sm:$0xf] }
  0x51   :  { %1301 = vmatpush.bf16.msra.mxu3 %v2200_v39  ;;  %v1536_v39 = vld [vmem:[%s2802_s0 + $0x70] sm:$0xf0] }
  0x52   :  { %1260 = vmatpush.bf16.msra.mxu0 %v2175_v40  ;;  %v1542_v40 = vld [vmem:[%s2802_s0 + $0x38] sm:$0xf] }
  0x53   :  { %1274 = vmatpush.bf16.msra.mxu1 %v2183_v41  ;;  %v2107_v41 = vld [vmem:[%s2802_s0 + $0x74] sm:$0xf0] }
  0x54   :  { %1288 = vmatpush.bf16.msra.mxu2 %v2191_v42  ;;  %v2099_v42 = vld [vmem:[%s2802_s0 + $0x3c] sm:$0xf] }
  0x55   :  { %1302 = vmatpush.bf16.msra.mxu3 %v2199_v43  ;;  %v1544_v43 = vld [vmem:[%s2802_s0 + $0x78] sm:$0xf0] }
  0x56   :  { %1261 = vmatpush.bf16.msra.mxu0 %v2174_v44  ;;  %v1535_v44 = vor.u32 %v2106_v37, %v1534_v36 }
  0x57   :  { %1275 = vmatpush.bf16.msra.mxu1 %v2182_v45  ;;  %v1539_v45 = vor.u32 %v2098_v38, %v1536_v39 }
  0x58   :  { %1289 = vmatpush.bf16.msra.mxu2 %v2190_v46  ;;  %v1543_v46 = vor.u32 %v2107_v41, %v1542_v40 }
  0x59   :  { %1303 = vmatpush.bf16.msra.mxu3 %v2198_v47  ;;  %v1547_v47 = vor.u32 %v2099_v42, %v1544_v43 }
  0x5a   :  { %1262 = vmatpush.bf16.msra.mxu0 %v2173_v48 }
  0x5b   :  { %1276 = vmatpush.bf16.msra.mxu1 %v2181_v49 }
  0x5c   :  { %1290 = vmatpush.bf16.msra.mxu2 %v2189_v50 }
  0x5d   :  { %1304 = vmatpush.bf16.msra.mxu3 %v2197_v51 }
  0x5e   :  { %1263 = vmatpush.bf16.msra.mxu0 %v2172_v52 }
  0x5f   :  { %1277 = vmatpush.bf16.msra.mxu1 %v2180_v53  ;;  %v2243_v53 = vld [vmem:[%s2804_s3 + $0x38] sm:$0xff] }
  0x60   :  { %1291 = vmatpush.bf16.msra.mxu2 %v2188_v54 }
  0x61   :  { %1305 = vmatpush.bf16.msra.mxu3 %v2196_v55  ;;  %1264 = vmatmul.bf16.vlgmr.msra.gmra.mxu0 %v1519_v4  ;;  %v2242_v55 = vld [vmem:[%s2804_s3 + $0x30] sm:$0xff] }
  0x62   :  { %1312 = vmatpush.bf16.msrb.mxu0 %v2211_v56  ;;  %1278 = vmatmul.bf16.vlgmr.msra.gmra.mxu1 %v1523_v6  ;;  %v2244_v56 = vld [vmem:[%s2801_s2] ss:$0 sm:$0xff] }
  0x63   :  { %1326 = vmatpush.bf16.msrb.mxu1 %v2219_v57  ;;  %1292 = vmatmul.bf16.vlgmr.msra.gmra.mxu2 %v1527_v5 }
  0x64   :  { %1340 = vmatpush.bf16.msrb.mxu2 %v2227_v2  ;;  %1306 = vmatmul.bf16.vlgmr.msra.gmra.mxu3 %v1531_v7  ;;  %v2239_v7 = vld [vmem:[%s2804_s3 + $0x18] sm:$0xff] }
  0x65   :  { %1354 = vmatpush.bf16.msrb.mxu3 %v2235_v3  ;;  %v2240_v3 = vld [vmem:[%s2804_s3 + $0x20] sm:$0xff] }
  0x66   :  { %1313 = vmatpush.bf16.msrb.mxu0 %v2210_v8 }
  0x67   :  { %1327 = vmatpush.bf16.msrb.mxu1 %v2218_v9 }
  0x68   :  { %1341 = vmatpush.bf16.msrb.mxu2 %v2226_v10 }
  0x69   :  { %1355 = vmatpush.bf16.msrb.mxu3 %v2234_v11  ;;  %v2238_v11 = vld [vmem:[%s2804_s3 + $0x10] sm:$0xff] }
  0x6a   :  { %1314 = vmatpush.bf16.msrb.mxu0 %v2209_v12 }
  0x6b   :  { %1328 = vmatpush.bf16.msrb.mxu1 %v2217_v13 }
  0x6c   :  { %1342 = vmatpush.bf16.msrb.mxu2 %v2225_v14 }
  0x6d   :  { %1356 = vmatpush.bf16.msrb.mxu3 %v2233_v15 }
  0x6e   :  { %1315 = vmatpush.bf16.msrb.mxu0 %v2208_v16 }
  0x6f   :  { %1329 = vmatpush.bf16.msrb.mxu1 %v2216_v17  ;;  %v2237_v17 = vld [vmem:[%s2804_s3 + $0x8] sm:$0xff] }
  0x70   :  { %1343 = vmatpush.bf16.msrb.mxu2 %v2224_v18 }
  0x71   :  { %1357 = vmatpush.bf16.msrb.mxu3 %v2232_v19 }
  0x72   :  { %1316 = vmatpush.bf16.msrb.mxu0 %v2207_v20 }
  0x73   :  { %1330 = vmatpush.bf16.msrb.mxu1 %v2215_v21  ;;  %v2236_v21 = vld [vmem:[%s2804_s3] sm:$0xff] }
  0x74   :  { %1344 = vmatpush.bf16.msrb.mxu2 %v2223_v22 }
  0x75   :  { %1358 = vmatpush.bf16.msrb.mxu3 %v2231_v23 }
  0x76   :  { %1317 = vmatpush.bf16.msrb.mxu0 %v2206_v24 }
  0x77   :  { %1331 = vmatpush.bf16.msrb.mxu1 %v2214_v25 }
  0x78   :  { %1345 = vmatpush.bf16.msrb.mxu2 %v2222_v26 }
  0x79   :  { %1359 = vmatpush.bf16.msrb.mxu3 %v2230_v27 }
  0x7a   :  { %1318 = vmatpush.bf16.msrb.mxu0 %v2205_v28 }
  0x7b   :  { %1332 = vmatpush.bf16.msrb.mxu1 %v2213_v29 }
  0x7c   :  { %1346 = vmatpush.bf16.msrb.mxu2 %v2221_v30 }
  0x7d   :  { %1360 = vmatpush.bf16.msrb.mxu3 %v2229_v31 }
  0x7e   :  { %1319 = vmatpush.bf16.msrb.mxu0 %v2204_v32 }
  0x7f   :  { %1333 = vmatpush.bf16.msrb.mxu1 %v2212_v33 }
  0x80   :  { %1347 = vmatpush.bf16.msrb.mxu2 %v2220_v34 }
  0x81   :  { %1361 = vmatpush.bf16.msrb.mxu3 %v2228_v35  ;;  %1320 = vmatmul.bf16.vlgmr.msrb.gmra.mxu0 %v1535_v44 }
  0x82   :  { %1334 = vmatmul.bf16.vlgmr.msrb.gmra.mxu1 %v1539_v45  ;;  %1439 = vmatpush.bf16.msra.mxu0 %v2243_v53 }
  0x83   :  { %1348 = vmatmul.bf16.vlgmr.msrb.gmra.mxu2 %v1543_v46 }
  0x84   :  { %1362 = vmatmul.bf16.vlgmr.msrb.gmra.mxu3 %v1547_v47 }
  0x86   :  { %1440 = vmatpush.bf16.msra.mxu0 %v2242_v55 }
  0x8a   :  { %1441 = vmatpush.bf16.msra.mxu0 %v2241_v62  ;;  %v2245_v62 = vld [vmem:[%s2803_s4] ss:$0 sm:$0xff] }
  0x8e   :  { %1442 = vmatpush.bf16.msra.mxu0 %v2240_v3 }
  0x92   :  { %1443 = vmatpush.bf16.msra.mxu0 %v2239_v7 }
  0x96   :  { %1444 = vmatpush.bf16.msra.mxu0 %v2238_v11 }
  0x9a   :  { %1445 = vmatpush.bf16.msra.mxu0 %v2237_v17 }
  0x9e   :  { %v1153_v48 = vpop.f32.mrf.mxu0  ;;  %1446 = vmatpush.bf16.msra.mxu0 %v2236_v21 }
  0x9f   :  { %v1167_v49 = vpop.f32.mrf.mxu1  ;;  %v1154_v59 = vadd.f32 %v2244_v56, %v1153_v48 }
  0xa1   :  { %v1168_v63 = vadd.f32 %v1167_v49, %v1154_v59 }
  0xa6   :  { %v1181_v50 = vpop.f32.mrf.mxu2  ;;  %v1155_v52 = vpop.f32.mrf.mxu0 }
  0xa7   :  { %v1195_v51 = vpop.f32.mrf.mxu3  ;;  %v1169_v54 = vpop.f32.mrf.mxu1  ;;  %v1156_v0 = vadd.f32 %v2244_v56, %v1155_v52  ;;  %v1182_v4 = vadd.f32 %v1181_v50, %v1168_v63 }
  0xa9   :  { %v1170_v5 = vadd.f32 %v1169_v54, %v1156_v0  ;;  %v1196_v8 = vadd.f32 %v1195_v51, %v1182_v4 }
  0xae   :  { %v1183_v57 = vpop.f32.mrf.mxu2 }
  0xaf   :  { %v1197_v58 = vpop.f32.mrf.mxu3  ;;  %v1184_v10 = vadd.f32 %v1183_v57, %v1170_v5 }
  0xb1   :  { %v1198_v15 = vadd.f32 %v1197_v58, %v1184_v10 }
  0xbe   :  { %v1209_v60 = vpop.f32.mrf.mxu0 }
  0xbf   :  { %v1223_v61 = vpop.f32.mrf.mxu1  ;;  %v1210_v12 = vadd.f32 %v1209_v60, %v1196_v8  ;;  %v1453_v60 = vlaneseq }
  0xc1   :  { %v1224_v18 = vadd.f32 %v1223_v61, %v1210_v12  ;;  %v1454_v61 = vand.u32 127, %v1453_v60 }
  0xc3   :  { %vm1455_vm0 = vcmp.lt.s32.totalorder %v1454_v61, 10 }
  0xc6   :  { %v1237_v1 = vpop.f32.mrf.mxu2  ;;  %v1211_v6 = vpop.f32.mrf.mxu0 }
  0xc7   :  { %v1251_v2 = vpop.f32.mrf.mxu3  ;;  %v1225_v9 = vpop.f32.mrf.mxu1  ;;  %v1212_v20 = vadd.f32 %v1211_v6, %v1198_v15  ;;  %v1238_v22 = vadd.f32 %v1237_v1, %v1224_v18 }
  0xc9   :  { %v1226_v25 = vadd.f32 %v1225_v9, %v1212_v20  ;;  %v1252_v26 = vadd.f32 %v1251_v2, %v1238_v22 }
  0xce   :  { %v1239_v13 = vpop.f32.mrf.mxu2 }
  0xcf   :  { %v1253_v14 = vpop.f32.mrf.mxu3  ;;  %v1240_v27 = vadd.f32 %v1239_v13, %v1226_v25 }
  0xd1   :  { %v1254_v31 = vadd.f32 %v1253_v14, %v1240_v27 }
  0xde   :  { %v1265_v16 = vpop.f32.mrf.mxu0 }
  0xdf   :  { %v1279_v19 = vpop.f32.mrf.mxu1  ;;  %v1266_v29 = vadd.f32 %v1265_v16, %v1252_v26 }
  0xe1   :  { %v1280_v32 = vadd.f32 %v1279_v19, %v1266_v29 }
  0xe6   :  { %v1293_v23 = vpop.f32.mrf.mxu2  ;;  %v1267_v28 = vpop.f32.mrf.mxu0 }
  0xe7   :  { %v1307_v24 = vpop.f32.mrf.mxu3  ;;  %v1281_v30 = vpop.f32.mrf.mxu1  ;;  %v1268_v33 = vadd.f32 %v1267_v28, %v1254_v31  ;;  %v1294_v36 = vadd.f32 %v1293_v23, %v1280_v32 }
  0xe9   :  { %v1282_v38 = vadd.f32 %v1281_v30, %v1268_v33  ;;  %v1308_v40 = vadd.f32 %v1307_v24, %v1294_v36 }
  0xee   :  { %v1295_v34 = vpop.f32.mrf.mxu2 }
  0xef   :  { %v1309_v35 = vpop.f32.mrf.mxu3  ;;  %v1296_v41 = vadd.f32 %v1295_v34, %v1282_v38 }
  0xf1   :  { %v1310_v45 = vadd.f32 %v1309_v35, %v1296_v41 }
  0xfe   :  { %v1321_v37 = vpop.f32.mrf.mxu0 }
  0xff   :  { %v1335_v39 = vpop.f32.mrf.mxu1  ;;  %v1322_v42 = vadd.f32 %v1321_v37, %v1308_v40 }
 0x101   :  { %v1336_v47 = vadd.f32 %v1335_v39, %v1322_v42 }
 0x106   :  { %v1349_v43 = vpop.f32.mrf.mxu2  ;;  %v1323_v46 = vpop.f32.mrf.mxu0 }
 0x107   :  { %v1363_v44 = vpop.f32.mrf.mxu3  ;;  %v1324_v48 = vadd.f32 %v1323_v46, %v1310_v45  ;;  %v1350_v49 = vadd.f32 %v1349_v43, %v1336_v47  ;;  %v1337_v50 = vpop.f32.mrf.mxu1 }
 0x109   :  { %v1338_v51 = vadd.f32 %v1337_v50, %v1324_v48  ;;  %v1364_v53 = vadd.f32 %v1363_v44, %v1350_v49 }
 0x10b   :  { %v1368_v57 = vmax.f32 %v1364_v53, 0.0 }
 0x10e   :  { %v1351_v52 = vpop.f32.mrf.mxu2 }
 0x10f   :  { %v1352_v54 = vadd.f32 %v1351_v52, %v1338_v51  ;;  %v1365_v55 = vpop.f32.mrf.mxu3 }
 0x111   :  { %v1366_v56 = vadd.f32 %v1365_v55, %v1352_v54 }
 0x113   :  { %v1369_v58 = vmax.f32 %v1366_v56, 0.0 }
 0x115   :  { %v1370_v59 = vpack.c.bf16 %v1369_v58, %v1368_v57 }
 0x117   :  { %1447 = vmatmul.bf16.vlgmr.msra.gmra.mxu0 %v1370_v59 }
 0x194   :  { %v1448_v63 = vpop.f32.mrf.mxu0 }
 0x195   :  { %v1449_v0 = vadd.f32 %v2245_v62, %v1448_v63 }
 0x197   :  { %v1456_v1 = vsel %vm1455_vm0, %v1449_v0, -1e+30 }
 0x198   :  { %1458 = vmax.xlane.f32.xlu0 %v1456_v1 }
 0x19c   :  { %v1450_v2 = vpop.f32.mrf.mxu0 }
 0x19d   :  { %v1451_v3 = vadd.f32 %v2245_v62, %v1450_v2 }
 0x19f   :  { %v1457_v4 = vsel %vm1455_vm0, %v1451_v3, -1e+30 }
 0x1a0   :  { %1460 = vmax.xlane.f32.xlu0 %v1457_v4 }
 0x20b   :  { %v1459_v5 = vpop.xlane.xlu0 %1458 }
 0x20c   :  { %v1462_v6 = vsub.f32 %v1456_v1, %v1459_v5 }
 0x20e   :  { %v1464_v7 = vmul.f32 1.442695, %v1462_v6 }
 0x210   :  { %2246 = vpow2.f32 %v1464_v7 }
 0x213   :  { %v1461_v8 = vpop.xlane.xlu0 %1460 }
 0x214   :  { %v1463_v9 = vsub.f32 %v1457_v4, %v1461_v8 }
 0x216   :  { %v2247_v10 = vpop.eup %2246  ;;  %v1466_v11 = vmul.f32 1.442695, %v1463_v9 }
 0x217   :  { %1468 = vadd.xlane.f32.xlu1 %v2247_v10 }
 0x218   :  { %2248 = vpow2.f32 %v1466_v11 }
 0x21e   :  { %v2249_v12 = vpop.eup %2248 }
 0x21f   :  { %1470 = vadd.xlane.f32.xlu1 %v2249_v12 }
 0x28a   :  { %v1469_v13 = vpop.xlane.xlu1 %1468 }
 0x28b   :  { %2250 = vlog2.f32 %v1469_v13 }
 0x291   :  { %v2251_v14 = vpop.eup %2250 }
 0x292   :  { %v1473_v15 = vmul.f32 0.6931472, %v2251_v14  ;;  %v1471_v16 = vpop.xlane.xlu1 %1470 }
 0x293   :  { %2252 = vlog2.f32 %v1471_v16 }
 0x294   :  { %v1476_v17 = vsub.f32 %v1462_v6, %v1473_v15 }
 0x296   :  { %1478 = vst [vmem:[%s2805_s5] sm:$0xff] %v1476_v17 }
 0x299   :  { %v2253_v18 = vpop.eup %2252 }
 0x29a   :  { %v1475_v19 = vmul.f32 0.6931472, %v2253_v18 }
 0x29c   :  { %v1477_v20 = vsub.f32 %v1463_v9, %v1475_v19 }
 0x29e   :  { %1479 = vst [vmem:[%s2805_s5 + $0x8] sm:$0xff] %v1477_v20 }

// kernel: cnn_mnist_forward.7
= control target key start
LH: loop header
LB: loop body
LE: loop exit
PB: predicated region body
PF: predicated region fallthrough
CT: control target
= control target key end

     0   :  { %s8297_s1 = inlined_call_operand.vmem [shape: bf16[3200,128], index: 1, kind: input, shape index: {}]   ;;  %s8298_s2 = inlined_call_operand.vmem [shape: f32[1,128], index: 2, kind: input, shape index: {}]   ;;  %s8299_s0 = inlined_call_operand.vmem [shape: bf16[128,3200], index: 0, kind: input, shape index: {}]   ;;  %s8300_s3 = inlined_call_operand.vmem [shape: f32[128,128], index: 3, kind: output, shape index: {}]  }
   0x1   :  { %v5902_v0 = vld [vmem:[%s8297_s1 + $0x38] sm:$0xff]  ;;  %v5901_v1 = vld [vmem:[%s8297_s1 + $0x30] sm:$0xff]  ;;  %v5900_v2 = vld [vmem:[%s8297_s1 + $0x28] sm:$0xff] }
   0x2   :  { %6095 = vmatpush.bf16.msra.mxu1 %v5902_v0  ;;  %6096 = vmatpush.bf16.msra.mxu2 %v5902_v0  ;;  %v5899_v3 = vld [vmem:[%s8297_s1 + $0x20] sm:$0xff]  ;;  %v5898_v4 = vld [vmem:[%s8297_s1 + $0x18] sm:$0xff]  ;;  %v5897_v5 = vld [vmem:[%s8297_s1 + $0x10] sm:$0xff] }
   0x3   :  { %6097 = vmatpush.bf16.msra.mxu3 %v5902_v0  ;;  %2834 = vmatpush.bf16.msra.mxu0 %v5902_v0  ;;  %v5896_v6 = vld [vmem:[%s8297_s1 + $0x8] sm:$0xff]  ;;  %v5895_v7 = vld [vmem:[%s8297_s1] sm:$0xff]  ;;  %v4297_v8 = vld [vmem:[%s8299_s0 + $0x190] sm:$0xf] }
   0x4   :  { %v5757_v9 = vld [vmem:[%s8299_s0 + $0x1f0] sm:$0xf0]  ;;  %v4497_v10 = vld [vmem:[%s8299_s0 + $0x320] sm:$0xf]  ;;  %v5807_v11 = vld [vmem:[%s8299_s0 + $0x380] sm:$0xf0] }
   0x5   :  { %v4697_v12 = vld [vmem:[%s8299_s0 + $0x4b0] sm:$0xf]  ;;  %v5857_v13 = vld [vmem:[%s8299_s0 + $0x510] sm:$0xf0]  ;;  %v4097_v14 = vld [vmem:[%s8299_s0] sm:$0xf]  ;;  %v4298_v18 = vor.u32 %v5757_v9, %v4297_v8  ;;  %v4498_v19 = vor.u32 %v5807_v11, %v4497_v10 }
   0x6   :  { %6098 = vmatpush.bf16.msra.mxu1 %v5901_v1  ;;  %6099 = vmatpush.bf16.msra.mxu2 %v5901_v1  ;;  %v5707_v15 = vld [vmem:[%s8299_s0 + $0x60] sm:$0xf0]  ;;  %v5918_v16 = vld [vmem:[%s8297_s1 + $0xb8] sm:$0xff]  ;;  %v4698_v20 = vor.u32 %v5857_v13, %v4697_v12  ;;  %v5917_v24 = vld [vmem:[%s8297_s1 + $0xb0] sm:$0xff] }
   0x7   :  { %6100 = vmatpush.bf16.msra.mxu3 %v5901_v1  ;;  %2835 = vmatpush.bf16.msra.mxu0 %v5901_v1  ;;  %v5910_v17 = vld [vmem:[%s8297_s1 + $0x78] sm:$0xff]  ;;  %v4098_v21 = vor.u32 %v5707_v15, %v4097_v14  ;;  %v5909_v25 = vld [vmem:[%s8297_s1 + $0x70] sm:$0xff]  ;;  %v5916_v28 = vld [vmem:[%s8297_s1 + $0xa8] sm:$0xff] }
   0x8   :  { %v5926_v22 = vld [vmem:[%s8297_s1 + $0xf8] sm:$0xff]  ;;  %v5925_v26 = vld [vmem:[%s8297_s1 + $0xf0] sm:$0xff]  ;;  %v5908_v29 = vld [vmem:[%s8297_s1 + $0x68] sm:$0xff] }
   0x9   :  { %v5934_v23 = vld [vmem:[%s8297_s1 + $0x138] sm:$0xff]  ;;  %v5933_v27 = vld [vmem:[%s8297_s1 + $0x130] sm:$0xff]  ;;  %v5924_v30 = vld [vmem:[%s8297_s1 + $0xe8] sm:$0xff] }
   0xa   :  { %6101 = vmatpush.bf16.msra.mxu1 %v5900_v2  ;;  %6102 = vmatpush.bf16.msra.mxu2 %v5900_v2  ;;  %v5932_v31 = vld [vmem:[%s8297_s1 + $0x128] sm:$0xff]  ;;  %v5915_v32 = vld [vmem:[%s8297_s1 + $0xa0] sm:$0xff]  ;;  %v4397_v36 = vld [vmem:[%s8299_s0 + $0x258] sm:$0xf] }
   0xb   :  { %6103 = vmatpush.bf16.msra.mxu3 %v5900_v2  ;;  %2836 = vmatpush.bf16.msra.mxu0 %v5900_v2  ;;  %v5907_v33 = vld [vmem:[%s8297_s1 + $0x60] sm:$0xff]  ;;  %v5782_v37 = vld [vmem:[%s8299_s0 + $0x2b8] sm:$0xf0]  ;;  %v4597_v38 = vld [vmem:[%s8299_s0 + $0x3e8] sm:$0xf] }
   0xc   :  { %v5923_v34 = vld [vmem:[%s8297_s1 + $0xe0] sm:$0xff]  ;;  %v5832_v39 = vld [vmem:[%s8299_s0 + $0x448] sm:$0xf0]  ;;  %v4797_v40 = vld [vmem:[%s8299_s0 + $0x578] sm:$0xf]  ;;  %v4398_v46 = vor.u32 %v5782_v37, %v4397_v36 }
   0xd   :  { %v5931_v35 = vld [vmem:[%s8297_s1 + $0x120] sm:$0xff]  ;;  %v5882_v41 = vld [vmem:[%s8299_s0 + $0x5d8] sm:$0xf0]  ;;  %v4197_v42 = vld [vmem:[%s8299_s0 + $0xc8] sm:$0xf]  ;;  %v4598_v47 = vor.u32 %v5832_v39, %v4597_v38 }
   0xe   :  { %6104 = vmatpush.bf16.msra.mxu1 %v5899_v3  ;;  %6105 = vmatpush.bf16.msra.mxu2 %v5899_v3  ;;  %v5732_v43 = vld [vmem:[%s8299_s0 + $0x128] sm:$0xf0]  ;;  %v5914_v44 = vld [vmem:[%s8297_s1 + $0x98] sm:$0xff]  ;;  %v4798_v48 = vor.u32 %v5882_v41, %v4797_v40  ;;  %v5913_v52 = vld [vmem:[%s8297_s1 + $0x90] sm:$0xff] }
   0xf   :  { %6106 = vmatpush.bf16.msra.mxu3 %v5899_v3  ;;  %2837 = vmatpush.bf16.msra.mxu0 %v5899_v3  ;;  %v5906_v45 = vld [vmem:[%s8297_s1 + $0x58] sm:$0xff]  ;;  %v4198_v49 = vor.u32 %v5732_v43, %v4197_v42  ;;  %v5905_v53 = vld [vmem:[%s8297_s1 + $0x50] sm:$0xff]  ;;  %v5912_v56 = vld [vmem:[%s8297_s1 + $0x88] sm:$0xff] }
  0x10   :  { %v5922_v50 = vld [vmem:[%s8297_s1 + $0xd8] sm:$0xff]  ;;  %v5921_v54 = vld [vmem:[%s8297_s1 + $0xd0] sm:$0xff]  ;;  %v5904_v57 = vld [vmem:[%s8297_s1 + $0x48] sm:$0xff] }
  0x11   :  { %v5930_v51 = vld [vmem:[%s8297_s1 + $0x118] sm:$0xff]  ;;  %v5929_v55 = vld [vmem:[%s8297_s1 + $0x110] sm:$0xff]  ;;  %v5920_v58 = vld [vmem:[%s8297_s1 + $0xc8] sm:$0xff] }
  0x12   :  { %6107 = vmatpush.bf16.msra.mxu1 %v5898_v4  ;;  %6108 = vmatpush.bf16.msra.mxu2 %v5898_v4  ;;  %v5928_v59 = vld [vmem:[%s8297_s1 + $0x108] sm:$0xff]  ;;  %v5911_v60 = vld [vmem:[%s8297_s1 + $0x80] sm:$0xff]  ;;  %v5950_v2 = vld [vmem:[%s8297_s1 + $0x1b8] sm:$0xff] }
  0x13   :  { %6109 = vmatpush.bf16.msra.mxu3 %v5898_v4  ;;  %2838 = vmatpush.bf16.msra.mxu0 %v5898_v4  ;;  %v5903_v61 = vld [vmem:[%s8297_s1 + $0x40] sm:$0xff]  ;;  %v4099_v1 = vld [vmem:[%s8299_s0 + $0x64] sm:$0xf0]  ;;  %v5942_v3 = vld [vmem:[%s8297_s1 + $0x178] sm:$0xff] }
  0x14   :  { %v5695_v62 = vld [vmem:[%s8299_s0 + $0x4] sm:$0xf]  ;;  %v4105_v4 = vld [vmem:[%s8299_s0 + $0x8] sm:$0xf]  ;;  %v4113_v8 = vld [vmem:[%s8299_s0 + $0x10] sm:$0xf] }
  0x15   :  { %v5919_v63 = vld [vmem:[%s8297_s1 + $0xc0] sm:$0xff]  ;;  %v5709_v9 = vld [vmem:[%s8299_s0 + $0x70] sm:$0xf0]  ;;  %v5958_v10 = vld [vmem:[%s8297_s1 + $0x1f8] sm:$0xff]  ;;  %v4102_v12 = vor.u32 %v5695_v62, %v4099_v1 }
  0x16   :  { %6110 = vmatpush.bf16.msra.mxu1 %v5897_v5  ;;  %6111 = vmatpush.bf16.msra.mxu2 %v5897_v5  ;;  %v5927_v0 = vld [vmem:[%s8297_s1 + $0x100] sm:$0xff]  ;;  %v5966_v11 = vld [vmem:[%s8297_s1 + $0x238] sm:$0xff]  ;;  %v4114_v15 = vor.u32 %v5709_v9, %v4113_v8  ;;  %v5745_v40 = vld [vmem:[%s8299_s0 + $0x194] sm:$0xf] }
  0x17   :  { %6112 = vmatpush.bf16.msra.mxu3 %v5897_v5  ;;  %2839 = vmatpush.bf16.msra.mxu0 %v5897_v5  ;;  %v5708_v5 = vld [vmem:[%s8299_s0 + $0x68] sm:$0xf0]  ;;  %v5947_v36 = vld [vmem:[%s8297_s1 + $0x1a0] sm:$0xff]  ;;  %v4299_v41 = vld [vmem:[%s8299_s0 + $0x1f4] sm:$0xf0] }
  0x18   :  { %v4106_v13 = vor.u32 %v5708_v5, %v4105_v4  ;;  %v5955_v37 = vld [vmem:[%s8297_s1 + $0x1e0] sm:$0xff]  ;;  %v4305_v42 = vld [vmem:[%s8299_s0 + $0x198] sm:$0xf]  ;;  %v5758_v43 = vld [vmem:[%s8299_s0 + $0x1f8] sm:$0xf0] }
  0x19   :  { %v5939_v38 = vld [vmem:[%s8297_s1 + $0x160] sm:$0xff]  ;;  %v4413_v62 = vld [vmem:[%s8299_s0 + $0x268] sm:$0xf]  ;;  %v5945_v4 = vld [vmem:[%s8297_s1 + $0x190] sm:$0xff] }
  0x1a   :  { %6113 = vmatpush.bf16.msra.mxu1 %v5896_v6  ;;  %6114 = vmatpush.bf16.msra.mxu2 %v5896_v6  ;;  %v5963_v39 = vld [vmem:[%s8297_s1 + $0x220] sm:$0xff]  ;;  %v5953_v5 = vld [vmem:[%s8297_s1 + $0x1d0] sm:$0xff]  ;;  %v4499_v9 = vld [vmem:[%s8299_s0 + $0x384] sm:$0xf0] }
  0x1b   :  { %6115 = vmatpush.bf16.msra.mxu3 %v5896_v6  ;;  %2840 = vmatpush.bf16.msra.mxu0 %v5896_v6  ;;  %v5696_v6 = vld [vmem:[%s8299_s0 + $0xc] sm:$0xf]  ;;  %v5795_v8 = vld [vmem:[%s8299_s0 + $0x324] sm:$0xf] }
  0x1e   :  { %6116 = vmatpush.bf16.msra.mxu1 %v5895_v7  ;;  %6117 = vmatpush.bf16.msra.mxu2 %v5895_v7 }
  0x1f   :  { %6118 = vmatpush.bf16.msra.mxu3 %v5895_v7  ;;  %2841 = vmatpush.bf16.msra.mxu0 %v5895_v7  ;;  %v4107_v7 = vld [vmem:[%s8299_s0 + $0x6c] sm:$0xf0] }
  0x20   :  { %v4110_v14 = vor.u32 %v5696_v6, %v4107_v7  ;;  %v5937_v6 = vld [vmem:[%s8297_s1 + $0x150] sm:$0xff] }
  0x21   :  { %2852 = vmatmul.bf16.vlgmr.msra.gmra.mxu1 %v4298_v18  ;;  %2862 = vmatmul.bf16.vlgmr.msra.gmra.mxu2 %v4498_v19  ;;  %v5957_v18 = vld [vmem:[%s8297_s1 + $0x1f0] sm:$0xff] }
  0x22   :  { %2932 = vmatpush.bf16.msrb.mxu2 %v5918_v16  ;;  %2883 = vmatpush.bf16.msrb.mxu1 %v5910_v17  ;;  %v5949_v16 = vld [vmem:[%s8297_s1 + $0x1b0] sm:$0xff] }
  0x23   :  { %2872 = vmatmul.bf16.vlgmr.msra.gmra.mxu3 %v4698_v20  ;;  %2842 = vmatmul.bf16.vlgmr.msra.gmra.mxu0 %v4098_v21  ;;  %v5941_v17 = vld [vmem:[%s8297_s1 + $0x170] sm:$0xff]  ;;  %v5948_v20 = vld [vmem:[%s8297_s1 + $0x1a8] sm:$0xff] }
  0x24   :  { %2981 = vmatpush.bf16.msrb.mxu3 %v5926_v22  ;;  %3030 = vmatpush.bf16.msrb.mxu0 %v5934_v23  ;;  %v5965_v19 = vld [vmem:[%s8297_s1 + $0x230] sm:$0xff]  ;;  %v5940_v21 = vld [vmem:[%s8297_s1 + $0x168] sm:$0xff] }
  0x25   :  { %v5956_v22 = vld [vmem:[%s8297_s1 + $0x1e8] sm:$0xff]  ;;  %v5961_v7 = vld [vmem:[%s8297_s1 + $0x210] sm:$0xff] }
  0x26   :  { %2933 = vmatpush.bf16.msrb.mxu2 %v5917_v24  ;;  %2884 = vmatpush.bf16.msrb.mxu1 %v5909_v25  ;;  %v5964_v23 = vld [vmem:[%s8297_s1 + $0x228] sm:$0xff]  ;;  %v4199_v25 = vld [vmem:[%s8299_s0 + $0x12c] sm:$0xf0] }
  0x27   :  { %v5720_v24 = vld [vmem:[%s8299_s0 + $0xcc] sm:$0xf] }
  0x28   :  { %2982 = vmatpush.bf16.msrb.mxu3 %v5925_v26  ;;  %3031 = vmatpush.bf16.msrb.mxu0 %v5933_v27  ;;  %v4205_v26 = vld [vmem:[%s8299_s0 + $0xd0] sm:$0xf]  ;;  %v5733_v27 = vld [vmem:[%s8299_s0 + $0x130] sm:$0xf0] }
  0x2a   :  { %2934 = vmatpush.bf16.msrb.mxu2 %v5916_v28  ;;  %2885 = vmatpush.bf16.msrb.mxu1 %v5908_v29  ;;  %v5721_v28 = vld [vmem:[%s8299_s0 + $0xd4] sm:$0xf]  ;;  %v4207_v29 = vld [vmem:[%s8299_s0 + $0x134] sm:$0xf0] }
  0x2c   :  { %2983 = vmatpush.bf16.msrb.mxu3 %v5924_v30  ;;  %3032 = vmatpush.bf16.msrb.mxu0 %v5932_v31  ;;  %v4213_v30 = vld [vmem:[%s8299_s0 + $0xd8] sm:$0xf]  ;;  %v5734_v31 = vld [vmem:[%s8299_s0 + $0x138] sm:$0xf0] }
  0x2e   :  { %2935 = vmatpush.bf16.msrb.mxu2 %v5915_v32  ;;  %2886 = vmatpush.bf16.msrb.mxu1 %v5907_v33  ;;  %v4202_v32 = vor.u32 %v5720_v24, %v4199_v25  ;;  %v4206_v33 = vor.u32 %v5733_v27, %v4205_v26  ;;  %v5820_v24 = vld [vmem:[%s8299_s0 + $0x3ec] sm:$0xf]  ;;  %v4599_v25 = vld [vmem:[%s8299_s0 + $0x44c] sm:$0xf0]  ;;  %v5833_v27 = vld [vmem:[%s8299_s0 + $0x450] sm:$0xf0] }
  0x2f   :  { %v4605_v26 = vld [vmem:[%s8299_s0 + $0x3f0] sm:$0xf] }
  0x30   :  { %2984 = vmatpush.bf16.msrb.mxu3 %v5923_v34  ;;  %3033 = vmatpush.bf16.msrb.mxu0 %v5931_v35  ;;  %v4210_v34 = vor.u32 %v5721_v28, %v4207_v29  ;;  %v4214_v35 = vor.u32 %v5734_v31, %v4213_v30  ;;  %v5821_v28 = vld [vmem:[%s8299_s0 + $0x3f4] sm:$0xf]  ;;  %v4607_v29 = vld [vmem:[%s8299_s0 + $0x454] sm:$0xf0]  ;;  %v5834_v31 = vld [vmem:[%s8299_s0 + $0x458] sm:$0xf0] }
  0x31   :  { %2857 = vmatmul.bf16.gmra.mxu1 %v4398_v46  ;;  %2867 = vmatmul.bf16.gmra.mxu2 %v4598_v47  ;;  %v4313_v46 = vld [vmem:[%s8299_s0 + $0x1a0] sm:$0xf]  ;;  %v5759_v47 = vld [vmem:[%s8299_s0 + $0x200] sm:$0xf0]  ;;  %v4613_v30 = vld [vmem:[%s8299_s0 + $0x3f8] sm:$0xf] }
  0x32   :  { %2936 = vmatpush.bf16.msrb.mxu2 %v5914_v44  ;;  %2887 = vmatpush.bf16.msrb.mxu1 %v5906_v45  ;;  %v5746_v44 = vld [vmem:[%s8299_s0 + $0x19c] sm:$0xf]  ;;  %v4307_v45 = vld [vmem:[%s8299_s0 + $0x1fc] sm:$0xf0] }
  0x33   :  { %2877 = vmatmul.bf16.gmra.mxu3 %v4798_v48  ;;  %2847 = vmatmul.bf16.gmra.mxu0 %v4198_v49  ;;  %v4302_v48 = vor.u32 %v5745_v40, %v4299_v41  ;;  %v4306_v49 = vor.u32 %v5758_v43, %v4305_v42  ;;  %v5845_v40 = vld [vmem:[%s8299_s0 + $0x4b4] sm:$0xf]  ;;  %v4699_v41 = vld [vmem:[%s8299_s0 + $0x514] sm:$0xf0]  ;;  %v5858_v43 = vld [vmem:[%s8299_s0 + $0x518] sm:$0xf0] }
  0x34   :  { %2985 = vmatpush.bf16.msrb.mxu3 %v5922_v50  ;;  %3034 = vmatpush.bf16.msrb.mxu0 %v5930_v51  ;;  %v4310_v50 = vor.u32 %v5746_v44, %v4307_v45  ;;  %v4314_v51 = vor.u32 %v5759_v47, %v4313_v46  ;;  %v4705_v42 = vld [vmem:[%s8299_s0 + $0x4b8] sm:$0xf]  ;;  %v5846_v44 = vld [vmem:[%s8299_s0 + $0x4bc] sm:$0xf]  ;;  %v4707_v45 = vld [vmem:[%s8299_s0 + $0x51c] sm:$0xf0] }
  0x35   :  { %v4713_v46 = vld [vmem:[%s8299_s0 + $0x4c0] sm:$0xf]  ;;  %v5859_v47 = vld [vmem:[%s8299_s0 + $0x520] sm:$0xf0] }
  0x36   :  { %2937 = vmatpush.bf16.msrb.mxu2 %v5913_v52  ;;  %2888 = vmatpush.bf16.msrb.mxu1 %v5905_v53  ;;  %v5946_v52 = vld [vmem:[%s8297_s1 + $0x198] sm:$0xff] }
  0x37   :  { %v5954_v53 = vld [vmem:[%s8297_s1 + $0x1d8] sm:$0xff] }
  0x38   :  { %2986 = vmatpush.bf16.msrb.mxu3 %v5921_v54  ;;  %3035 = vmatpush.bf16.msrb.mxu0 %v5929_v55  ;;  %v5938_v54 = vld [vmem:[%s8297_s1 + $0x158] sm:$0xff] }
  0x39   :  { %v5962_v55 = vld [vmem:[%s8297_s1 + $0x218] sm:$0xff] }
  0x3a   :  { %2938 = vmatpush.bf16.msrb.mxu2 %v5912_v56  ;;  %2889 = vmatpush.bf16.msrb.mxu1 %v5904_v57  ;;  %v5770_v56 = vld [vmem:[%s8299_s0 + $0x25c] sm:$0xf]  ;;  %v4399_v57 = vld [vmem:[%s8299_s0 + $0x2bc] sm:$0xf0] }
  0x3c   :  { %2987 = vmatpush.bf16.msrb.mxu3 %v5920_v58  ;;  %3036 = vmatpush.bf16.msrb.mxu0 %v5928_v59  ;;  %v4405_v58 = vld [vmem:[%s8299_s0 + $0x260] sm:$0xf]  ;;  %v5783_v59 = vld [vmem:[%s8299_s0 + $0x2c0] sm:$0xf0] }
  0x3d   :  { %v4406_v1 = vor.u32 %v5783_v59, %v4405_v58 }
  0x3e   :  { %2939 = vmatpush.bf16.msrb.mxu2 %v5911_v60  ;;  %2890 = vmatpush.bf16.msrb.mxu1 %v5903_v61  ;;  %v5771_v60 = vld [vmem:[%s8299_s0 + $0x264] sm:$0xf]  ;;  %v4407_v61 = vld [vmem:[%s8299_s0 + $0x2c4] sm:$0xf0] }
  0x40   :  { %2988 = vmatpush.bf16.msrb.mxu3 %v5919_v63  ;;  %3037 = vmatpush.bf16.msrb.mxu0 %v5927_v0  ;;  %v5784_v63 = vld [vmem:[%s8299_s0 + $0x2c8] sm:$0xf0]  ;;  %v4402_v0 = vor.u32 %v5770_v56, %v4399_v57  ;;  %v6585_v56 = vld [vmem:[%s8298_s2] ss:$0 sm:$0xff] }
  0x41   :  { %2891 = vmatmul.bf16.vlgmr.msrb.gmra.mxu1 %v4102_v12  ;;  %2940 = vmatmul.bf16.vlgmr.msrb.gmra.mxu2 %v4106_v13  ;;  %v5796_v12 = vld [vmem:[%s8299_s0 + $0x32c] sm:$0xf]  ;;  %v4507_v13 = vld [vmem:[%s8299_s0 + $0x38c] sm:$0xf0] }
  0x42   :  { %3128 = vmatpush.bf16.msra.mxu2 %v5950_v2  ;;  %3079 = vmatpush.bf16.msra.mxu1 %v5942_v3  ;;  %v4410_v2 = vor.u32 %v5771_v60, %v4407_v61  ;;  %v4414_v3 = vor.u32 %v5784_v63, %v4413_v62  ;;  %v5974_v63 = vld [vmem:[%s8297_s1 + $0x278] sm:$0xff] }
  0x43   :  { %2989 = vmatmul.bf16.vlgmr.msrb.gmra.mxu3 %v4110_v14  ;;  %3038 = vmatmul.bf16.vlgmr.msrb.gmra.mxu0 %v4114_v15  ;;  %v4513_v14 = vld [vmem:[%s8299_s0 + $0x330] sm:$0xf]  ;;  %v5809_v15 = vld [vmem:[%s8299_s0 + $0x390] sm:$0xf0] }
  0x44   :  { %3177 = vmatpush.bf16.msra.mxu3 %v5958_v10  ;;  %3226 = vmatpush.bf16.msra.mxu0 %v5966_v11  ;;  %v4505_v10 = vld [vmem:[%s8299_s0 + $0x328] sm:$0xf]  ;;  %v5808_v11 = vld [vmem:[%s8299_s0 + $0x388] sm:$0xf0] }
  0x46   :  { %3129 = vmatpush.bf16.msra.mxu2 %v5949_v16  ;;  %3080 = vmatpush.bf16.msra.mxu1 %v5941_v17  ;;  %v4502_v16 = vor.u32 %v5795_v8, %v4499_v9  ;;  %v4506_v17 = vor.u32 %v5808_v11, %v4505_v10  ;;  %v5884_v8 = vld [vmem:[%s8299_s0 + $0x5e8] sm:$0xf0] }
  0x48   :  { %3178 = vmatpush.bf16.msra.mxu3 %v5957_v18  ;;  %3227 = vmatpush.bf16.msra.mxu0 %v5965_v19  ;;  %v4510_v18 = vor.u32 %v5796_v12, %v4507_v13  ;;  %v4514_v19 = vor.u32 %v5809_v15, %v4513_v14 }
  0x4a   :  { %3130 = vmatpush.bf16.msra.mxu2 %v5948_v20  ;;  %3081 = vmatpush.bf16.msra.mxu1 %v5940_v21  ;;  %v5944_v20 = vld [vmem:[%s8297_s1 + $0x188] sm:$0xff] }
  0x4b   :  { %v5952_v21 = vld [vmem:[%s8297_s1 + $0x1c8] sm:$0xff] }
  0x4c   :  { %3179 = vmatpush.bf16.msra.mxu3 %v5956_v22  ;;  %3228 = vmatpush.bf16.msra.mxu0 %v5964_v23  ;;  %v5936_v22 = vld [vmem:[%s8297_s1 + $0x148] sm:$0xff] }
  0x4d   :  { %v5960_v23 = vld [vmem:[%s8297_s1 + $0x208] sm:$0xff] }
  0x4e   :  { %3131 = vmatpush.bf16.msra.mxu2 %v5947_v36  ;;  %3082 = vmatpush.bf16.msra.mxu1 %v5939_v38  ;;  %v5943_v36 = vld [vmem:[%s8297_s1 + $0x180] sm:$0xff] }
  0x4f   :  { %v5935_v38 = vld [vmem:[%s8297_s1 + $0x140] sm:$0xff] }
  0x50   :  { %3180 = vmatpush.bf16.msra.mxu3 %v5955_v37  ;;  %3229 = vmatpush.bf16.msra.mxu0 %v5963_v39  ;;  %v5951_v37 = vld [vmem:[%s8297_s1 + $0x1c0] sm:$0xff] }
  0x51   :  { %2896 = vmatmul.bf16.gmra.mxu1 %v4202_v32  ;;  %2945 = vmatmul.bf16.gmra.mxu2 %v4206_v33  ;;  %v4602_v32 = vor.u32 %v5820_v24, %v4599_v25  ;;  %v4606_v33 = vor.u32 %v5833_v27, %v4605_v26  ;;  %v5959_v39 = vld [vmem:[%s8297_s1 + $0x200] sm:$0xff]  ;;  %v5973_v27 = vld [vmem:[%s8297_s1 + $0x270] sm:$0xff] }
  0x52   :  { %3132 = vmatpush.bf16.msra.mxu2 %v5946_v52  ;;  %3083 = vmatpush.bf16.msra.mxu1 %v5938_v54  ;;  %v4714_v52 = vor.u32 %v5859_v47, %v4713_v46  ;;  %v5982_v54 = vld [vmem:[%s8297_s1 + $0x2b8] sm:$0xff] }
  0x53   :  { %2994 = vmatmul.bf16.gmra.mxu3 %v4210_v34  ;;  %3043 = vmatmul.bf16.gmra.mxu0 %v4214_v35  ;;  %v4610_v34 = vor.u32 %v5821_v28, %v4607_v29  ;;  %v4614_v35 = vor.u32 %v5834_v31, %v4613_v30  ;;  %v5997_v28 = vld [vmem:[%s8297_s1 + $0x330] sm:$0xff]  ;;  %v4115_v30 = vld [vmem:[%s8299_s0 + $0x74] sm:$0xf0] }
  0x54   :  { %3181 = vmatpush.bf16.msra.mxu3 %v5954_v53  ;;  %3230 = vmatpush.bf16.msra.mxu0 %v5962_v55  ;;  %v5990_v55 = vld [vmem:[%s8297_s1 + $0x2f8] sm:$0xff]  ;;  %v5697_v29 = vld [vmem:[%s8299_s0 + $0x14] sm:$0xf] }
  0x55   :  { %v4121_v31 = vld [vmem:[%s8299_s0 + $0x18] sm:$0xf] }
  0x56   :  { %3133 = vmatpush.bf16.msra.mxu2 %v5945_v4  ;;  %3084 = vmatpush.bf16.msra.mxu1 %v5937_v6  ;;  %v5883_v4 = vld [vmem:[%s8299_s0 + $0x5e0] sm:$0xf0]  ;;  %v4807_v6 = vld [vmem:[%s8299_s0 + $0x5e4] sm:$0xf0] }
  0x58   :  { %3182 = vmatpush.bf16.msra.mxu3 %v5953_v5  ;;  %3231 = vmatpush.bf16.msra.mxu0 %v5961_v7  ;;  %v5871_v5 = vld [vmem:[%s8299_s0 + $0x584] sm:$0xf]  ;;  %v4813_v7 = vld [vmem:[%s8299_s0 + $0x588] sm:$0xf] }
  0x5a   :  { %3134 = vmatpush.bf16.msra.mxu2 %v5944_v20  ;;  %3085 = vmatpush.bf16.msra.mxu1 %v5936_v22  ;;  %v5989_v20 = vld [vmem:[%s8297_s1 + $0x2f0] sm:$0xff] }
  0x5c   :  { %3183 = vmatpush.bf16.msra.mxu3 %v5952_v21  ;;  %3232 = vmatpush.bf16.msra.mxu0 %v5960_v23 }
  0x5e   :  { %3135 = vmatpush.bf16.msra.mxu2 %v5943_v36  ;;  %3086 = vmatpush.bf16.msra.mxu1 %v5935_v38  ;;  %v5711_v36 = vld [vmem:[%s8299_s0 + $0x80] sm:$0xf0] }
  0x60   :  { %3184 = vmatpush.bf16.msra.mxu3 %v5951_v37  ;;  %3233 = vmatpush.bf16.msra.mxu0 %v5959_v39 }
  0x61   :  { %2901 = vmatmul.bf16.gmra.mxu1 %v4302_v48  ;;  %2950 = vmatmul.bf16.gmra.mxu2 %v4306_v49  ;;  %v4702_v48 = vor.u32 %v5845_v40, %v4699_v41  ;;  %v4706_v49 = vor.u32 %v5858_v43, %v4705_v42  ;;  %v4118_v41 = vor.u32 %v5697_v29, %v4115_v30 }
  0x62   :  { %3324 = vmatpush.bf16.msrb.mxu2 %v5982_v54  ;;  %3275 = vmatpush.bf16.msrb.mxu1 %v5974_v63 }
  0x63   :  { %2999 = vmatmul.bf16.gmra.mxu3 %v4310_v50  ;;  %3048 = vmatmul.bf16.gmra.mxu0 %v4314_v51  ;;  %v4710_v51 = vor.u32 %v5846_v44, %v4707_v45 }
  0x64   :  { %3373 = vmatpush.bf16.msrb.mxu3 %v5990_v55 }
  0x66   :  { %3276 = vmatpush.bf16.msrb.mxu1 %v5973_v27 }
  0x68   :  { %3374 = vmatpush.bf16.msrb.mxu3 %v5989_v20 }
  0x71   :  { %2906 = vmatmul.bf16.gmra.mxu1 %v4402_v0  ;;  %2955 = vmatmul.bf16.gmra.mxu2 %v4406_v1  ;;  %v5998_v0 = vld [vmem:[%s8297_s1 + $0x338] sm:$0xff] }
  0x72   :  { %v5870_v1 = vld [vmem:[%s8299_s0 + $0x57c] sm:$0xf]  ;;  %3422 = vmatpush.bf16.msrb.mxu0 %v5998_v0 }
  0x73   :  { %3004 = vmatmul.bf16.gmra.mxu3 %v4410_v2  ;;  %3053 = vmatmul.bf16.gmra.mxu0 %v4414_v3  ;;  %v4799_v2 = vld [vmem:[%s8299_s0 + $0x5dc] sm:$0xf0] }
  0x74   :  { %v4805_v3 = vld [vmem:[%s8299_s0 + $0x580] sm:$0xf]  ;;  %v4802_v12 = vor.u32 %v5870_v1, %v4799_v2  ;;  %v5972_v1 = vld [vmem:[%s8297_s1 + $0x268] sm:$0xff] }
  0x75   :  { %v4806_v13 = vor.u32 %v5883_v4, %v4805_v3  ;;  %v5996_v2 = vld [vmem:[%s8297_s1 + $0x328] sm:$0xff]  ;;  %v5722_v3 = vld [vmem:[%s8299_s0 + $0xdc] sm:$0xf]  ;;  %3277 = vmatpush.bf16.msrb.mxu1 %v5972_v1 }
  0x76   :  { %3423 = vmatpush.bf16.msrb.mxu0 %v5997_v28 }
  0x7a   :  { %3424 = vmatpush.bf16.msrb.mxu0 %v5996_v2 }
  0x81   :  { %2911 = vmatmul.bf16.gmra.mxu1 %v4502_v16  ;;  %2960 = vmatmul.bf16.gmra.mxu2 %v4506_v17  ;;  %v4810_v16 = vor.u32 %v5871_v5, %v4807_v6  ;;  %v4814_v17 = vor.u32 %v5884_v8, %v4813_v7  ;;  %v4221_v5 = vld [vmem:[%s8299_s0 + $0xe0] sm:$0xf]  ;;  %v5735_v6 = vld [vmem:[%s8299_s0 + $0x140] sm:$0xf0]  ;;  %v4223_v8 = vld [vmem:[%s8299_s0 + $0x144] sm:$0xf0] }
  0x82   :  { %v5723_v7 = vld [vmem:[%s8299_s0 + $0xe4] sm:$0xf]  ;;  %v4222_v20 = vor.u32 %v5735_v6, %v4221_v5 }
  0x83   :  { %3009 = vmatmul.bf16.gmra.mxu3 %v4510_v18  ;;  %3058 = vmatmul.bf16.gmra.mxu0 %v4514_v19  ;;  %v5981_v19 = vld [vmem:[%s8297_s1 + $0x2b0] sm:$0xff] }
  0x84   :  { %3325 = vmatpush.bf16.msrb.mxu2 %v5981_v19 }
  0x91   :  { %2916 = vmatmul.bf16.gmra.mxu1 %v4602_v32  ;;  %2965 = vmatmul.bf16.gmra.mxu2 %v4606_v33  ;;  %v5710_v32 = vld [vmem:[%s8299_s0 + $0x78] sm:$0xf0] }
  0x92   :  { %v5698_v33 = vld [vmem:[%s8299_s0 + $0x1c] sm:$0xf]  ;;  %v4122_v42 = vor.u32 %v5710_v32, %v4121_v31  ;;  %v5987_v32 = vld [vmem:[%s8297_s1 + $0x2e0] sm:$0xff] }
  0x93   :  { %3014 = vmatmul.bf16.gmra.mxu3 %v4610_v34  ;;  %3063 = vmatmul.bf16.gmra.mxu0 %v4614_v35  ;;  %v4123_v34 = vld [vmem:[%s8299_s0 + $0x7c] sm:$0xf0] }
  0x94   :  { %v4129_v35 = vld [vmem:[%s8299_s0 + $0x20] sm:$0xf]  ;;  %v4126_v45 = vor.u32 %v5698_v33, %v4123_v34 }
  0x95   :  { %v4130_v46 = vor.u32 %v5711_v36, %v4129_v35 }
  0x9e   :  { %v6572_v50 = vpop.f32.mrf.mxu1 }
  0xa0   :  { %v6574_v53 = vpop.f32.mrf.mxu0 }
  0xa1   :  { %2921 = vmatmul.bf16.gmra.mxu1 %v4702_v48  ;;  %2970 = vmatmul.bf16.gmra.mxu2 %v4706_v49  ;;  %v2844_v38 = vadd.f32 %v6585_v56, %v6574_v53  ;;  %v5980_v49 = vld [vmem:[%s8297_s1 + $0x2a8] sm:$0xff] }
  0xa2   :  { %3326 = vmatpush.bf16.msrb.mxu2 %v5980_v49  ;;  %v5748_v49 = vld [vmem:[%s8299_s0 + $0x1ac] sm:$0xf] }
  0xa3   :  { %3019 = vmatmul.bf16.gmra.mxu3 %v4710_v51  ;;  %3068 = vmatmul.bf16.gmra.mxu0 %v4714_v52  ;;  %v5988_v51 = vld [vmem:[%s8297_s1 + $0x2e8] sm:$0xff] }
  0xa4   :  { %v2863_v57 = vpop.f32.mrf.mxu2  ;;  %3375 = vmatpush.bf16.msrb.mxu3 %v5988_v51  ;;  %v4323_v51 = vld [vmem:[%s8299_s0 + $0x20c] sm:$0xf0] }
  0xa5   :  { %v6588_v58 = vadd.f32 %v6585_v56, %v2863_v57  ;;  %v4326_v2 = vor.u32 %v5748_v49, %v4323_v51  ;;  %v5985_v51 = vld [vmem:[%s8297_s1 + $0x2d0] sm:$0xff] }
  0xa6   :  { %v2873_v59 = vpop.f32.mrf.mxu3  ;;  %v6593_v61 = vpop.f32.mrf.mxu1 }
  0xa7   :  { %v6591_v60 = vadd.f32 %v6585_v56, %v2873_v59 }
  0xa8   :  { %v6595_v62 = vpop.f32.mrf.mxu0  ;;  %3376 = vmatpush.bf16.msrb.mxu3 %v5987_v32  ;;  %v4423_v32 = vld [vmem:[%s8299_s0 + $0x2d4] sm:$0xf0] }
  0xa9   :  { %v2846_v53 = vadd.f32 %v6585_v56, %v6595_v62  ;;  %v4215_v62 = vld [vmem:[%s8299_s0 + $0x13c] sm:$0xf0] }
  0xaa   :  { %v4218_v19 = vor.u32 %v5722_v3, %v4215_v62 }
  0xac   :  { %v2865_v9 = vpop.f32.mrf.mxu2 }
  0xad   :  { %v6628_v10 = vadd.f32 %v6585_v56, %v2865_v9  ;;  %v4229_v9 = vld [vmem:[%s8299_s0 + $0xe8] sm:$0xf] }
  0xae   :  { %v2875_v11 = vpop.f32.mrf.mxu3  ;;  %v6633_v15 = vpop.f32.mrf.mxu1 }
  0xaf   :  { %v6631_v14 = vadd.f32 %v6585_v56, %v2875_v11  ;;  %v5736_v11 = vld [vmem:[%s8299_s0 + $0x148] sm:$0xf0] }
  0xb0   :  { %v6635_v18 = vpop.f32.mrf.mxu0  ;;  %v4230_v27 = vor.u32 %v5736_v11, %v4229_v9  ;;  %v2856_v11 = vadd.f32 %v6585_v56, %v6593_v61  ;;  %v4415_v61 = vld [vmem:[%s8299_s0 + $0x2cc] sm:$0xf0] }
  0xb1   :  { %2926 = vmatmul.bf16.gmra.mxu1 %v4802_v12  ;;  %2975 = vmatmul.bf16.gmra.mxu2 %v4806_v13  ;;  %v2849_v13 = vadd.f32 %v6585_v56, %v6635_v18  ;;  %v5979_v18 = vld [vmem:[%s8297_s1 + $0x2a0] sm:$0xff] }
  0xb2   :  { %3327 = vmatpush.bf16.msrb.mxu2 %v5979_v18  ;;  %v5773_v18 = vld [vmem:[%s8299_s0 + $0x274] sm:$0xf] }
  0xb3   :  { %3024 = vmatmul.bf16.gmra.mxu3 %v4810_v16  ;;  %3073 = vmatmul.bf16.gmra.mxu0 %v4814_v17 }
  0xb4   :  { %v2868_v21 = vpop.f32.mrf.mxu2 }
  0xb5   :  { %v6644_v22 = vadd.f32 %v6585_v56, %v2868_v21 }
  0xb6   :  { %v2878_v23 = vpop.f32.mrf.mxu3  ;;  %v6649_v25 = vpop.f32.mrf.mxu1 }
  0xb7   :  { %v6647_v24 = vadd.f32 %v6585_v56, %v2878_v23  ;;  %v4226_v23 = vor.u32 %v5723_v7, %v4223_v8  ;;  %v5986_v8 = vld [vmem:[%s8297_s1 + $0x2d8] sm:$0xff] }
  0xb8   :  { %v6651_v26 = vpop.f32.mrf.mxu0  ;;  %3377 = vmatpush.bf16.msrb.mxu3 %v5986_v8  ;;  %v4529_v8 = vld [vmem:[%s8299_s0 + $0x340] sm:$0xf] }
  0xb9   :  { %v2851_v34 = vadd.f32 %v6585_v56, %v6651_v26  ;;  %v4315_v26 = vld [vmem:[%s8299_s0 + $0x204] sm:$0xf0] }
  0xbc   :  { %v2870_v37 = vpop.f32.mrf.mxu2  ;;  %3378 = vmatpush.bf16.msrb.mxu3 %v5985_v51 }
  0xbd   :  { %v6686_v39 = vadd.f32 %v6585_v56, %v2870_v37 }
  0xbe   :  { %v2880_v40 = vpop.f32.mrf.mxu3  ;;  %v2892_v44 = vpop.f32.mrf.mxu1 }
  0xbf   :  { %v6689_v43 = vadd.f32 %v6585_v56, %v2880_v40  ;;  %v2893_v47 = vadd.f32 %v2892_v44, %v2844_v38  ;;  %v5995_v44 = vld [vmem:[%s8297_s1 + $0x320] sm:$0xff] }
  0xc0   :  { %v3039_v48 = vpop.f32.mrf.mxu0  ;;  %3425 = vmatpush.bf16.msrb.mxu0 %v5995_v44  ;;  %v4426_v44 = vor.u32 %v5773_v18, %v4423_v32  ;;  %v5984_v18 = vld [vmem:[%s8297_s1 + $0x2c8] sm:$0xff] }
  0xc1   :  { %3087 = vmatmul.bf16.vlgmr.msra.gmra.mxu1 %v4118_v41  ;;  %3136 = vmatmul.bf16.vlgmr.msra.gmra.mxu2 %v4122_v42  ;;  %v5971_v42 = vld [vmem:[%s8297_s1 + $0x260] sm:$0xff] }
  0xc2   :  { %3278 = vmatpush.bf16.msrb.mxu1 %v5971_v42  ;;  %3379 = vmatpush.bf16.msrb.mxu3 %v5984_v18 }
  0xc3   :  { %3185 = vmatmul.bf16.vlgmr.msra.gmra.mxu3 %v4126_v45  ;;  %3234 = vmatmul.bf16.vlgmr.msra.gmra.mxu0 %v4130_v46  ;;  %v5747_v45 = vld [vmem:[%s8299_s0 + $0x1a4] sm:$0xf] }
  0xc4   :  { %v2941_v52 = vpop.f32.mrf.mxu2 }
  0xc5   :  { %v2942_v54 = vadd.f32 %v2941_v52, %v2893_v47  ;;  %v4321_v47 = vld [vmem:[%s8299_s0 + $0x1a8] sm:$0xf]  ;;  %v4329_v52 = vld [vmem:[%s8299_s0 + $0x1b0] sm:$0xf] }
  0xc6   :  { %v2990_v55 = vpop.f32.mrf.mxu3  ;;  %v2894_v57 = vpop.f32.mrf.mxu1 }
  0xc7   :  { %v2991_v59 = vadd.f32 %v2990_v55, %v2942_v54  ;;  %v2895_v63 = vadd.f32 %v2894_v57, %v2846_v53  ;;  %v5761_v53 = vld [vmem:[%s8299_s0 + $0x210] sm:$0xf0]  ;;  %v2854_v55 = vadd.f32 %v6585_v56, %v6572_v50  ;;  %v5978_v50 = vld [vmem:[%s8297_s1 + $0x298] sm:$0xff] }
  0xc8   :  { %v3041_v0 = vpop.f32.mrf.mxu0  ;;  %v4330_v3 = vor.u32 %v5761_v53, %v4329_v52  ;;  %3328 = vmatpush.bf16.msrb.mxu2 %v5978_v50  ;;  %v2861_v53 = vadd.f32 %v6585_v56, %v6649_v25  ;;  %v4523_v50 = vld [vmem:[%s8299_s0 + $0x39c] sm:$0xf0] }
  0xc9   :  { %v6711_v4 = vadd.f32 %v3039_v48, %v2991_v59  ;;  %v5760_v48 = vld [vmem:[%s8299_s0 + $0x208] sm:$0xf0] }
  0xcc   :  { %v2943_v12 = vpop.f32.mrf.mxu2 }
  0xcd   :  { %v2944_v16 = vadd.f32 %v2943_v12, %v2895_v63  ;;  %v4318_v63 = vor.u32 %v5747_v45, %v4315_v26 }
  0xce   :  { %v2992_v17 = vpop.f32.mrf.mxu3  ;;  %v2897_v21 = vpop.f32.mrf.mxu1 }
  0xcf   :  { %v2993_v28 = vadd.f32 %v2992_v17, %v2944_v16  ;;  %v2898_v29 = vadd.f32 %v2897_v21, %v2849_v13  ;;  %v5970_v21 = vld [vmem:[%s8297_s1 + $0x258] sm:$0xff] }
  0xd0   :  { %v3044_v30 = vpop.f32.mrf.mxu0  ;;  %3279 = vmatpush.bf16.msrb.mxu1 %v5970_v21 }
  0xd1   :  { %3092 = vmatmul.bf16.gmra.mxu1 %v4218_v19  ;;  %3141 = vmatmul.bf16.gmra.mxu2 %v4222_v20  ;;  %v6733_v31 = vadd.f32 %v3041_v0, %v2993_v28  ;;  %v4322_v0 = vor.u32 %v5760_v48, %v4321_v47 }
  0xd3   :  { %3190 = vmatmul.bf16.gmra.mxu3 %v4226_v23  ;;  %3239 = vmatmul.bf16.gmra.mxu0 %v4230_v27  ;;  %v5994_v23 = vld [vmem:[%s8297_s1 + $0x318] sm:$0xff]  ;;  %v5772_v27 = vld [vmem:[%s8299_s0 + $0x26c] sm:$0xf] }
  0xd4   :  { %v2946_v33 = vpop.f32.mrf.mxu2  ;;  %3426 = vmatpush.bf16.msrb.mxu0 %v5994_v23 }
  0xd5   :  { %v2947_v35 = vadd.f32 %v2946_v33, %v2898_v29  ;;  %v4421_v29 = vld [vmem:[%s8299_s0 + $0x270] sm:$0xf]  ;;  %v4429_v33 = vld [vmem:[%s8299_s0 + $0x278] sm:$0xf] }
  0xd6   :  { %v2995_v36 = vpop.f32.mrf.mxu3  ;;  %v2899_v37 = vpop.f32.mrf.mxu1 }
  0xd7   :  { %v2996_v38 = vadd.f32 %v2995_v36, %v2947_v35  ;;  %v2900_v40 = vadd.f32 %v2899_v37, %v2851_v34  ;;  %v5786_v34 = vld [vmem:[%s8299_s0 + $0x2d8] sm:$0xf0]  ;;  %v2859_v36 = vadd.f32 %v6585_v56, %v6633_v15  ;;  %v5977_v15 = vld [vmem:[%s8297_s1 + $0x290] sm:$0xff]  ;;  %v4515_v56 = vld [vmem:[%s8299_s0 + $0x394] sm:$0xf0] }
  0xd8   :  { %v3046_v41 = vpop.f32.mrf.mxu0  ;;  %v4430_v45 = vor.u32 %v5786_v34, %v4429_v33  ;;  %3329 = vmatpush.bf16.msrb.mxu2 %v5977_v15  ;;  %v5836_v15 = vld [vmem:[%s8299_s0 + $0x468] sm:$0xf0] }
  0xd9   :  { %v6755_v46 = vadd.f32 %v3044_v30, %v2996_v38  ;;  %v5785_v30 = vld [vmem:[%s8299_s0 + $0x2d0] sm:$0xf0] }
  0xdc   :  { %v2948_v54 = vpop.f32.mrf.mxu2 }
  0xdd   :  { %v2949_v57 = vadd.f32 %v2948_v54, %v2900_v40  ;;  %v4418_v40 = vor.u32 %v5772_v27, %v4415_v61 }
  0xde   :  { %v2997_v59 = vpop.f32.mrf.mxu3  ;;  %v2902_v1 = vpop.f32.mrf.mxu1 }
  0xdf   :  { %v2998_v62 = vadd.f32 %v2997_v59, %v2949_v57  ;;  %v2903_v5 = vadd.f32 %v2902_v1, %v2854_v55  ;;  %v5969_v1 = vld [vmem:[%s8297_s1 + $0x250] sm:$0xff] }
  0xe0   :  { %v3049_v6 = vpop.f32.mrf.mxu0  ;;  %3280 = vmatpush.bf16.msrb.mxu1 %v5969_v1 }
  0xe1   :  { %3097 = vmatmul.bf16.gmra.mxu1 %v4318_v63  ;;  %3146 = vmatmul.bf16.gmra.mxu2 %v4322_v0  ;;  %v6777_v7 = vadd.f32 %v3046_v41, %v2998_v62  ;;  %v4422_v41 = vor.u32 %v5785_v30, %v4421_v29  ;;  %v4521_v62 = vld [vmem:[%s8299_s0 + $0x338] sm:$0xf]  ;;  %v5976_v30 = vld [vmem:[%s8297_s1 + $0x288] sm:$0xff] }
  0xe2   :  { %3330 = vmatpush.bf16.msrb.mxu2 %v5976_v30 }
  0xe3   :  { %3195 = vmatmul.bf16.gmra.mxu3 %v4326_v2  ;;  %3244 = vmatmul.bf16.gmra.mxu0 %v4330_v3  ;;  %v5993_v2 = vld [vmem:[%s8297_s1 + $0x310] sm:$0xff] }
  0xe4   :  { %v2951_v9 = vpop.f32.mrf.mxu2  ;;  %v5797_v3 = vld [vmem:[%s8299_s0 + $0x334] sm:$0xf]  ;;  %3427 = vmatpush.bf16.msrb.mxu0 %v5993_v2 }
  0xe5   :  { %v2952_v12 = vadd.f32 %v2951_v9, %v2903_v5  ;;  %v5810_v5 = vld [vmem:[%s8299_s0 + $0x398] sm:$0xf0]  ;;  %v5811_v9 = vld [vmem:[%s8299_s0 + $0x3a0] sm:$0xf0] }
  0xe6   :  { %v3000_v13 = vpop.f32.mrf.mxu3  ;;  %v2904_v16 = vpop.f32.mrf.mxu1  ;;  %v4530_v21 = vor.u32 %v5811_v9, %v4529_v8 }
  0xe7   :  { %v3001_v17 = vadd.f32 %v3000_v13, %v2952_v12  ;;  %v2905_v19 = vadd.f32 %v2904_v16, %v2856_v11  ;;  %v4518_v16 = vor.u32 %v5797_v3, %v4515_v56  ;;  %v5975_v56 = vld [vmem:[%s8297_s1 + $0x280] sm:$0xff] }
  0xe8   :  { %v3051_v20 = vpop.f32.mrf.mxu0  ;;  %3331 = vmatpush.bf16.msrb.mxu2 %v5975_v56 }
  0xe9   :  { %v6799_v28 = vadd.f32 %v3049_v6, %v3001_v17  ;;  %v5798_v6 = vld [vmem:[%s8299_s0 + $0x33c] sm:$0xf]  ;;  %v4522_v17 = vor.u32 %v5810_v5, %v4521_v62  ;;  %v5983_v62 = vld [vmem:[%s8297_s1 + $0x2c0] sm:$0xff] }
  0xea   :  { %3380 = vmatpush.bf16.msrb.mxu3 %v5983_v62 }
  0xec   :  { %v2953_v35 = vpop.f32.mrf.mxu2 }
  0xed   :  { %v2954_v37 = vadd.f32 %v2953_v35, %v2905_v19 }
  0xee   :  { %v3002_v38 = vpop.f32.mrf.mxu3  ;;  %v2907_v42 = vpop.f32.mrf.mxu1 }
  0xef   :  { %v3003_v26 = vadd.f32 %v3002_v38, %v2954_v37  ;;  %v2908_v47 = vadd.f32 %v2907_v42, %v2859_v36  ;;  %v5968_v38 = vld [vmem:[%s8297_s1 + $0x248] sm:$0xff]  ;;  %v4615_v42 = vld [vmem:[%s8299_s0 + $0x45c] sm:$0xf0] }
  0xf0   :  { %v3054_v48 = vpop.f32.mrf.mxu0  ;;  %3281 = vmatpush.bf16.msrb.mxu1 %v5968_v38 }
  0xf1   :  { %3102 = vmatmul.bf16.gmra.mxu1 %v4418_v40  ;;  %3151 = vmatmul.bf16.gmra.mxu2 %v4422_v41  ;;  %v6821_v49 = vadd.f32 %v3051_v20, %v3003_v26  ;;  %v4526_v20 = vor.u32 %v5798_v6, %v4523_v50  ;;  %v5992_v40 = vld [vmem:[%s8297_s1 + $0x308] sm:$0xff]  ;;  %v5822_v41 = vld [vmem:[%s8299_s0 + $0x3fc] sm:$0xf]  ;;  %v5823_v26 = vld [vmem:[%s8299_s0 + $0x404] sm:$0xf] }
  0xf2   :  { %3428 = vmatpush.bf16.msrb.mxu0 %v5992_v40 }
  0xf3   :  { %3200 = vmatmul.bf16.gmra.mxu3 %v4426_v44  ;;  %3249 = vmatmul.bf16.gmra.mxu0 %v4430_v45  ;;  %v4621_v44 = vld [vmem:[%s8299_s0 + $0x400] sm:$0xf]  ;;  %v5835_v45 = vld [vmem:[%s8299_s0 + $0x460] sm:$0xf0] }
  0xf4   :  { %v2956_v52 = vpop.f32.mrf.mxu2 }
  0xf5   :  { %v2957_v54 = vadd.f32 %v2956_v52, %v2908_v47  ;;  %v4623_v47 = vld [vmem:[%s8299_s0 + $0x464] sm:$0xf0] }
  0xf6   :  { %v3005_v55 = vpop.f32.mrf.mxu3  ;;  %v2909_v57 = vpop.f32.mrf.mxu1 }
  0xf7   :  { %v3006_v59 = vadd.f32 %v3005_v55, %v2957_v54  ;;  %v2910_v63 = vadd.f32 %v2909_v57, %v2861_v53  ;;  %v4618_v54 = vor.u32 %v5822_v41, %v4615_v42  ;;  %v4622_v55 = vor.u32 %v5835_v45, %v4621_v44  ;;  %v6014_v42 = vld [vmem:[%s8297_s1 + $0x3b8] sm:$0xff] }
  0xf8   :  { %v3056_v0 = vpop.f32.mrf.mxu0  ;;  %v6022_v44 = vld [vmem:[%s8297_s1 + $0x3f8] sm:$0xff]  ;;  %3520 = vmatpush.bf16.msra.mxu2 %v6014_v42 }
  0xf9   :  { %v6843_v25 = vadd.f32 %v3054_v48, %v3006_v59  ;;  %v4629_v48 = vld [vmem:[%s8299_s0 + $0x408] sm:$0xf]  ;;  %v4626_v59 = vor.u32 %v5823_v26, %v4623_v47  ;;  %3569 = vmatpush.bf16.msra.mxu3 %v6022_v44 }
  0xfc   :  { %v2958_v11 = vpop.f32.mrf.mxu2 }
  0xfd   :  { %v2959_v12 = vadd.f32 %v2958_v11, %v2910_v63  ;;  %v4630_v63 = vor.u32 %v5836_v15, %v4629_v48 }
  0xfe   :  { %v3007_v13 = vpop.f32.mrf.mxu3  ;;  %v2912_v19 = vpop.f32.mrf.mxu1 }
  0xff   :  { %v3008_v23 = vadd.f32 %v3007_v13, %v2959_v12  ;;  %v2913_v27 = vadd.f32 %v2912_v19, %v6588_v58  ;;  %v5967_v12 = vld [vmem:[%s8297_s1 + $0x240] sm:$0xff]  ;;  %v4721_v19 = vld [vmem:[%s8299_s0 + $0x4c8] sm:$0xf] }
 0x100   :  { %v3059_v61 = vpop.f32.mrf.mxu0  ;;  %v5991_v13 = vld [vmem:[%s8297_s1 + $0x300] sm:$0xff]  ;;  %3282 = vmatpush.bf16.msrb.mxu1 %v5967_v12 }
 0x101   :  { %3107 = vmatmul.bf16.gmra.mxu1 %v4518_v16  ;;  %3156 = vmatmul.bf16.gmra.mxu2 %v4522_v17  ;;  %v6864_v29 = vadd.f32 %v3056_v0, %v3008_v23  ;;  %v5847_v16 = vld [vmem:[%s8299_s0 + $0x4c4] sm:$0xf]  ;;  %v4715_v17 = vld [vmem:[%s8299_s0 + $0x524] sm:$0xf0]  ;;  %v4723_v23 = vld [vmem:[%s8299_s0 + $0x52c] sm:$0xf0] }
 0x102   :  { %3429 = vmatpush.bf16.msrb.mxu0 %v5991_v13 }
 0x103   :  { %3205 = vmatmul.bf16.gmra.mxu3 %v4526_v20  ;;  %3254 = vmatmul.bf16.gmra.mxu0 %v4530_v21  ;;  %v5860_v20 = vld [vmem:[%s8299_s0 + $0x528] sm:$0xf0] }
 0x104   :  { %v2961_v32 = vpop.f32.mrf.mxu2  ;;  %v5848_v21 = vld [vmem:[%s8299_s0 + $0x4cc] sm:$0xf] }
 0x105   :  { %v2962_v33 = vadd.f32 %v2961_v32, %v2913_v27  ;;  %v4729_v27 = vld [vmem:[%s8299_s0 + $0x4d0] sm:$0xf] }
 0x106   :  { %v3010_v58 = vpop.f32.mrf.mxu3  ;;  %v2914_v34 = vpop.f32.mrf.mxu1 }
 0x107   :  { %v3011_v35 = vadd.f32 %v3010_v58, %v2962_v33  ;;  %v2915_v36 = vadd.f32 %v2914_v34, %v6628_v10  ;;  %v4718_v33 = vor.u32 %v5847_v16, %v4715_v17  ;;  %v4722_v58 = vor.u32 %v5860_v20, %v4721_v19  ;;  %v6013_v17 = vld [vmem:[%s8297_s1 + $0x3b0] sm:$0xff] }
 0x108   :  { %v3061_v37 = vpop.f32.mrf.mxu0  ;;  %v6021_v19 = vld [vmem:[%s8297_s1 + $0x3f0] sm:$0xff]  ;;  %3521 = vmatpush.bf16.msra.mxu2 %v6013_v17 }
 0x109   :  { %v6885_v10 = vadd.f32 %v3059_v61, %v3011_v35  ;;  %v5861_v61 = vld [vmem:[%s8299_s0 + $0x530] sm:$0xf0]  ;;  %v4726_v35 = vor.u32 %v5848_v21, %v4723_v23  ;;  %3570 = vmatpush.bf16.msra.mxu3 %v6021_v19 }
 0x10c   :  { %v2963_v51 = vpop.f32.mrf.mxu2 }
 0x10d   :  { %v2964_v52 = vadd.f32 %v2963_v51, %v2915_v36  ;;  %v4730_v36 = vor.u32 %v5861_v61, %v4729_v27 }
 0x10e   :  { %v3012_v53 = vpop.f32.mrf.mxu3  ;;  %v2917_v57 = vpop.f32.mrf.mxu1 }
 0x10f   :  { %v3013_v0 = vadd.f32 %v3012_v53, %v2964_v52  ;;  %v2918_v1 = vadd.f32 %v2917_v57, %v6644_v22  ;;  %v6006_v52 = vld [vmem:[%s8297_s1 + $0x378] sm:$0xff]  ;;  %v4821_v57 = vld [vmem:[%s8299_s0 + $0x590] sm:$0xf] }
 0x110   :  { %v3064_v2 = vpop.f32.mrf.mxu0  ;;  %v6030_v53 = vld [vmem:[%s8297_s1 + $0x438] sm:$0xff]  ;;  %3471 = vmatpush.bf16.msra.mxu1 %v6006_v52 }
 0x111   :  { %3112 = vmatmul.bf16.gmra.mxu1 %v4618_v54  ;;  %3161 = vmatmul.bf16.gmra.mxu2 %v4622_v55  ;;  %v6906_v3 = vadd.f32 %v3061_v37, %v3013_v0  ;;  %v5872_v54 = vld [vmem:[%s8299_s0 + $0x58c] sm:$0xf]  ;;  %v4815_v55 = vld [vmem:[%s8299_s0 + $0x5ec] sm:$0xf0]  ;;  %v4823_v0 = vld [vmem:[%s8299_s0 + $0x5f4] sm:$0xf0] }
 0x112   :  { %3618 = vmatpush.bf16.msra.mxu0 %v6030_v53 }
 0x113   :  { %3210 = vmatmul.bf16.gmra.mxu3 %v4626_v59  ;;  %3259 = vmatmul.bf16.gmra.mxu0 %v4630_v63  ;;  %v5885_v59 = vld [vmem:[%s8299_s0 + $0x5f0] sm:$0xf0] }
 0x114   :  { %v2966_v5 = vpop.f32.mrf.mxu2  ;;  %v5873_v63 = vld [vmem:[%s8299_s0 + $0x594] sm:$0xf] }
 0x115   :  { %v2967_v6 = vadd.f32 %v2966_v5, %v2918_v1  ;;  %v4829_v1 = vld [vmem:[%s8299_s0 + $0x598] sm:$0xf] }
 0x116   :  { %v3015_v22 = vpop.f32.mrf.mxu3  ;;  %v2919_v50 = vpop.f32.mrf.mxu1 }
 0x117   :  { %v3016_v8 = vadd.f32 %v3015_v22, %v2967_v6  ;;  %v2920_v9 = vadd.f32 %v2919_v50, %v6686_v39  ;;  %v4818_v6 = vor.u32 %v5872_v54, %v4815_v55  ;;  %v4822_v22 = vor.u32 %v5885_v59, %v4821_v57  ;;  %v6012_v55 = vld [vmem:[%s8297_s1 + $0x3a8] sm:$0xff] }
 0x118   :  { %v3066_v11 = vpop.f32.mrf.mxu0  ;;  %v6020_v57 = vld [vmem:[%s8297_s1 + $0x3e8] sm:$0xff]  ;;  %3522 = vmatpush.bf16.msra.mxu2 %v6012_v55 }
 0x119   :  { %v6927_v39 = vadd.f32 %v3064_v2, %v3016_v8  ;;  %v5886_v2 = vld [vmem:[%s8299_s0 + $0x5f8] sm:$0xf0]  ;;  %v4826_v8 = vor.u32 %v5873_v63, %v4823_v0  ;;  %3571 = vmatpush.bf16.msra.mxu3 %v6020_v57 }
 0x11c   :  { %v2968_v30 = vpop.f32.mrf.mxu2 }
 0x11d   :  { %v2969_v18 = vadd.f32 %v2968_v30, %v2920_v9  ;;  %v4830_v9 = vor.u32 %v5886_v2, %v4829_v1 }
 0x11e   :  { %v3017_v32 = vpop.f32.mrf.mxu3  ;;  %v2922_v34 = vpop.f32.mrf.mxu1 }
 0x11f   :  { %v3018_v37 = vadd.f32 %v3017_v32, %v2969_v18  ;;  %v2923_v38 = vadd.f32 %v2922_v34, %v6591_v60  ;;  %v6005_v18 = vld [vmem:[%s8297_s1 + $0x370] sm:$0xff]  ;;  %v4137_v34 = vld [vmem:[%s8299_s0 + $0x28] sm:$0xf] }
 0x120   :  { %v3069_v40 = vpop.f32.mrf.mxu0  ;;  %v6029_v32 = vld [vmem:[%s8297_s1 + $0x430] sm:$0xff]  ;;  %3472 = vmatpush.bf16.msra.mxu1 %v6005_v18 }
 0x121   :  { %3117 = vmatmul.bf16.gmra.mxu1 %v4718_v33  ;;  %3166 = vmatmul.bf16.gmra.mxu2 %v4722_v58  ;;  %v6948_v41 = vadd.f32 %v3066_v11, %v3018_v37  ;;  %v5699_v33 = vld [vmem:[%s8299_s0 + $0x24] sm:$0xf]  ;;  %v4131_v58 = vld [vmem:[%s8299_s0 + $0x84] sm:$0xf0]  ;;  %v4139_v37 = vld [vmem:[%s8299_s0 + $0x8c] sm:$0xf0] }
 0x122   :  { %3619 = vmatpush.bf16.msra.mxu0 %v6029_v32 }
 0x123   :  { %3215 = vmatmul.bf16.gmra.mxu3 %v4726_v35  ;;  %3264 = vmatmul.bf16.gmra.mxu0 %v4730_v36  ;;  %v5712_v35 = vld [vmem:[%s8299_s0 + $0x88] sm:$0xf0] }
 0x124   :  { %v2971_v45 = vpop.f32.mrf.mxu2  ;;  %v5700_v36 = vld [vmem:[%s8299_s0 + $0x2c] sm:$0xf] }
 0x125   :  { %v2972_v26 = vadd.f32 %v2971_v45, %v2923_v38  ;;  %v4145_v38 = vld [vmem:[%s8299_s0 + $0x30] sm:$0xf] }
 0x126   :  { %v3020_v60 = vpop.f32.mrf.mxu3  ;;  %v2924_v47 = vpop.f32.mrf.mxu1 }
 0x127   :  { %v3021_v48 = vadd.f32 %v3020_v60, %v2972_v26  ;;  %v2925_v15 = vadd.f32 %v2924_v47, %v6631_v14  ;;  %v4134_v26 = vor.u32 %v5699_v33, %v4131_v58  ;;  %v4138_v60 = vor.u32 %v5712_v35, %v4137_v34  ;;  %v6011_v58 = vld [vmem:[%s8297_s1 + $0x3a0] sm:$0xff] }
 0x128   :  { %v3071_v51 = vpop.f32.mrf.mxu0  ;;  %v6019_v34 = vld [vmem:[%s8297_s1 + $0x3e0] sm:$0xff]  ;;  %3523 = vmatpush.bf16.msra.mxu2 %v6011_v58 }
 0x129   :  { %v6969_v14 = vadd.f32 %v3069_v40, %v3021_v48  ;;  %v5713_v40 = vld [vmem:[%s8299_s0 + $0x90] sm:$0xf0]  ;;  %v4142_v48 = vor.u32 %v5700_v36, %v4139_v37  ;;  %3572 = vmatpush.bf16.msra.mxu3 %v6019_v34 }
 0x12c   :  { %v2973_v56 = vpop.f32.mrf.mxu2 }
 0x12d   :  { %v2974_v62 = vadd.f32 %v2973_v56, %v2925_v15  ;;  %v4146_v15 = vor.u32 %v5713_v40, %v4145_v38 }
 0x12e   :  { %v3022_v5 = vpop.f32.mrf.mxu3  ;;  %v2927_v50 = vpop.f32.mrf.mxu1 }
 0x12f   :  { %v3023_v11 = vadd.f32 %v3022_v5, %v2974_v62  ;;  %v2928_v12 = vadd.f32 %v2927_v50, %v6647_v24  ;;  %v6004_v62 = vld [vmem:[%s8297_s1 + $0x368] sm:$0xff]  ;;  %v4237_v50 = vld [vmem:[%s8299_s0 + $0xf0] sm:$0xf] }
 0x130   :  { %v3074_v13 = vpop.f32.mrf.mxu0  ;;  %v6028_v5 = vld [vmem:[%s8297_s1 + $0x428] sm:$0xff]  ;;  %3473 = vmatpush.bf16.msra.mxu1 %v6004_v62 }
 0x131   :  { %3122 = vmatmul.bf16.gmra.mxu1 %v4818_v6  ;;  %3171 = vmatmul.bf16.gmra.mxu2 %v4822_v22  ;;  %v6990_v16 = vadd.f32 %v3071_v51, %v3023_v11  ;;  %v5724_v6 = vld [vmem:[%s8299_s0 + $0xec] sm:$0xf]  ;;  %v4231_v22 = vld [vmem:[%s8299_s0 + $0x14c] sm:$0xf0]  ;;  %v4239_v11 = vld [vmem:[%s8299_s0 + $0x154] sm:$0xf0] }
 0x132   :  { %3620 = vmatpush.bf16.msra.mxu0 %v6028_v5 }
 0x133   :  { %3220 = vmatmul.bf16.gmra.mxu3 %v4826_v8  ;;  %3269 = vmatmul.bf16.gmra.mxu0 %v4830_v9  ;;  %v5737_v8 = vld [vmem:[%s8299_s0 + $0x150] sm:$0xf0] }
 0x134   :  { %v2976_v20 = vpop.f32.mrf.mxu2  ;;  %v5725_v9 = vld [vmem:[%s8299_s0 + $0xf4] sm:$0xf] }
 0x135   :  { %v2977_v21 = vadd.f32 %v2976_v20, %v2928_v12  ;;  %v4245_v12 = vld [vmem:[%s8299_s0 + $0xf8] sm:$0xf] }
 0x136   :  { %v3025_v24 = vpop.f32.mrf.mxu3  ;;  %v2929_v23 = vpop.f32.mrf.mxu1 }
 0x137   :  { %v3026_v27 = vadd.f32 %v3025_v24, %v2977_v21  ;;  %v2930_v61 = vadd.f32 %v2929_v23, %v6689_v43  ;;  %v4234_v21 = vor.u32 %v5724_v6, %v4231_v22  ;;  %v4238_v24 = vor.u32 %v5737_v8, %v4237_v50  ;;  %v6010_v22 = vld [vmem:[%s8297_s1 + $0x398] sm:$0xff] }
 0x138   :  { %v3076_v30 = vpop.f32.mrf.mxu0  ;;  %v6018_v50 = vld [vmem:[%s8297_s1 + $0x3d8] sm:$0xff]  ;;  %3524 = vmatpush.bf16.msra.mxu2 %v6010_v22 }
 0x139   :  { %v7011_v43 = vadd.f32 %v3074_v13, %v3026_v27  ;;  %v5738_v13 = vld [vmem:[%s8299_s0 + $0x158] sm:$0xf0]  ;;  %v4242_v27 = vor.u32 %v5725_v9, %v4239_v11  ;;  %3573 = vmatpush.bf16.msra.mxu3 %v6018_v50 }
 0x13c   :  { %v2978_v42 = vpop.f32.mrf.mxu2 }
 0x13d   :  { %v2979_v44 = vadd.f32 %v2978_v42, %v2930_v61  ;;  %v4246_v61 = vor.u32 %v5738_v13, %v4245_v12 }
 0x13e   :  { %v3027_v45 = vpop.f32.mrf.mxu3  ;;  %v3088_v47 = vpop.f32.mrf.mxu1 }
 0x13f   :  { %v3028_v51 = vadd.f32 %v3027_v45, %v2979_v44  ;;  %v3089_v52 = vadd.f32 %v3088_v47, %v6711_v4  ;;  %v6003_v44 = vld [vmem:[%s8297_s1 + $0x360] sm:$0xff]  ;;  %v4337_v47 = vld [vmem:[%s8299_s0 + $0x1b8] sm:$0xf] }
 0x140   :  { %v3235_v53 = vpop.f32.mrf.mxu0  ;;  %v6027_v45 = vld [vmem:[%s8297_s1 + $0x420] sm:$0xff]  ;;  %3474 = vmatpush.bf16.msra.mxu1 %v6003_v44 }
 0x141   :  { %3283 = vmatmul.bf16.vlgmr.msrb.gmra.mxu1 %v4134_v26  ;;  %3332 = vmatmul.bf16.vlgmr.msrb.gmra.mxu2 %v4138_v60  ;;  %v7032_v54 = vadd.f32 %v3076_v30, %v3028_v51  ;;  %v5749_v26 = vld [vmem:[%s8299_s0 + $0x1b4] sm:$0xf]  ;;  %v4331_v60 = vld [vmem:[%s8299_s0 + $0x214] sm:$0xf0]  ;;  %v4339_v51 = vld [vmem:[%s8299_s0 + $0x21c] sm:$0xf0] }
 0x142   :  { %3621 = vmatpush.bf16.msra.mxu0 %v6027_v45 }
 0x143   :  { %3381 = vmatmul.bf16.vlgmr.msrb.gmra.mxu3 %v4142_v48  ;;  %3430 = vmatmul.bf16.vlgmr.msrb.gmra.mxu0 %v4146_v15  ;;  %v5762_v48 = vld [vmem:[%s8299_s0 + $0x218] sm:$0xf0] }
 0x144   :  { %v3137_v59 = vpop.f32.mrf.mxu2  ;;  %v5750_v15 = vld [vmem:[%s8299_s0 + $0x1bc] sm:$0xf] }
 0x145   :  { %v3138_v63 = vadd.f32 %v3137_v59, %v3089_v52  ;;  %v4345_v52 = vld [vmem:[%s8299_s0 + $0x1c0] sm:$0xf] }
 0x146   :  { %v3186_v4 = vpop.f32.mrf.mxu3  ;;  %v3090_v0 = vpop.f32.mrf.mxu1 }
 0x147   :  { %v3187_v1 = vadd.f32 %v3186_v4, %v3138_v63  ;;  %v3091_v2 = vadd.f32 %v3090_v0, %v6733_v31  ;;  %v4334_v63 = vor.u32 %v5749_v26, %v4331_v60  ;;  %v4338_v4 = vor.u32 %v5762_v48, %v4337_v47  ;;  %v6009_v60 = vld [vmem:[%s8297_s1 + $0x390] sm:$0xff] }
 0x148   :  { %v3237_v56 = vpop.f32.mrf.mxu0  ;;  %v6017_v47 = vld [vmem:[%s8297_s1 + $0x3d0] sm:$0xff]  ;;  %3525 = vmatpush.bf16.msra.mxu2 %v6009_v60 }
 0x149   :  { %v7053_v31 = vadd.f32 %v3235_v53, %v3187_v1  ;;  %v5763_v53 = vld [vmem:[%s8299_s0 + $0x220] sm:$0xf0]  ;;  %v4342_v1 = vor.u32 %v5750_v15, %v4339_v51  ;;  %3574 = vmatpush.bf16.msra.mxu3 %v6017_v47 }
 0x14c   :  { %v3139_v17 = vpop.f32.mrf.mxu2 }
 0x14d   :  { %v3140_v19 = vadd.f32 %v3139_v17, %v3091_v2  ;;  %v4346_v2 = vor.u32 %v5763_v53, %v4345_v52 }
 0x14e   :  { %v3188_v20 = vpop.f32.mrf.mxu3  ;;  %v3093_v23 = vpop.f32.mrf.mxu1 }
 0x14f   :  { %v3189_v30 = vadd.f32 %v3188_v20, %v3140_v19  ;;  %v3094_v18 = vadd.f32 %v3093_v23, %v6755_v46  ;;  %v6002_v19 = vld [vmem:[%s8297_s1 + $0x358] sm:$0xff]  ;;  %v4437_v23 = vld [vmem:[%s8299_s0 + $0x280] sm:$0xf] }
 0x150   :  { %v3240_v32 = vpop.f32.mrf.mxu0  ;;  %v6026_v20 = vld [vmem:[%s8297_s1 + $0x418] sm:$0xff]  ;;  %3475 = vmatpush.bf16.msra.mxu1 %v6002_v19 }
 0x151   :  { %3288 = vmatmul.bf16.gmra.mxu1 %v4234_v21  ;;  %3337 = vmatmul.bf16.gmra.mxu2 %v4238_v24  ;;  %v7074_v33 = vadd.f32 %v3237_v56, %v3189_v30  ;;  %v5774_v21 = vld [vmem:[%s8299_s0 + $0x27c] sm:$0xf]  ;;  %v4431_v24 = vld [vmem:[%s8299_s0 + $0x2dc] sm:$0xf0]  ;;  %v4439_v30 = vld [vmem:[%s8299_s0 + $0x2e4] sm:$0xf0] }
 0x152   :  { %3622 = vmatpush.bf16.msra.mxu0 %v6026_v20 }
 0x153   :  { %3386 = vmatmul.bf16.gmra.mxu3 %v4242_v27  ;;  %3435 = vmatmul.bf16.gmra.mxu0 %v4246_v61  ;;  %v5787_v27 = vld [vmem:[%s8299_s0 + $0x2e0] sm:$0xf0] }
 0x154   :  { %v3142_v35 = vpop.f32.mrf.mxu2  ;;  %v5775_v61 = vld [vmem:[%s8299_s0 + $0x284] sm:$0xf] }
 0x155   :  { %v3143_v36 = vadd.f32 %v3142_v35, %v3094_v18  ;;  %v4445_v18 = vld [vmem:[%s8299_s0 + $0x288] sm:$0xf] }
 0x156   :  { %v3191_v46 = vpop.f32.mrf.mxu3  ;;  %v3095_v37 = vpop.f32.mrf.mxu1 }
 0x157   :  { %v3192_v38 = vadd.f32 %v3191_v46, %v3143_v36  ;;  %v3096_v40 = vadd.f32 %v3095_v37, %v6777_v7  ;;  %v4434_v36 = vor.u32 %v5774_v21, %v4431_v24  ;;  %v4438_v46 = vor.u32 %v5787_v27, %v4437_v23  ;;  %v6008_v24 = vld [vmem:[%s8297_s1 + $0x388] sm:$0xff] }
 0x158   :  { %v3242_v42 = vpop.f32.mrf.mxu0  ;;  %v6016_v23 = vld [vmem:[%s8297_s1 + $0x3c8] sm:$0xff]  ;;  %3526 = vmatpush.bf16.msra.mxu2 %v6008_v24 }
 0x159   :  { %v7095_v7 = vadd.f32 %v3240_v32, %v3192_v38  ;;  %v5788_v32 = vld [vmem:[%s8299_s0 + $0x2e8] sm:$0xf0]  ;;  %v4442_v38 = vor.u32 %v5775_v61, %v4439_v30  ;;  %3575 = vmatpush.bf16.msra.mxu3 %v6016_v23 }
 0x15c   :  { %v3144_v55 = vpop.f32.mrf.mxu2 }
 0x15d   :  { %v3145_v57 = vadd.f32 %v3144_v55, %v3096_v40  ;;  %v4446_v40 = vor.u32 %v5788_v32, %v4445_v18 }
 0x15e   :  { %v3193_v59 = vpop.f32.mrf.mxu3  ;;  %v3098_v0 = vpop.f32.mrf.mxu1 }
 0x15f   :  { %v3194_v56 = vadd.f32 %v3193_v59, %v3145_v57  ;;  %v3099_v62 = vadd.f32 %v3098_v0, %v6799_v28  ;;  %v6001_v57 = vld [vmem:[%s8297_s1 + $0x350] sm:$0xff]  ;;  %v4537_v0 = vld [vmem:[%s8299_s0 + $0x348] sm:$0xf] }
 0x160   :  { %v3245_v5 = vpop.f32.mrf.mxu0  ;;  %v6025_v59 = vld [vmem:[%s8297_s1 + $0x410] sm:$0xff]  ;;  %3476 = vmatpush.bf16.msra.mxu1 %v6001_v57 }
 0x161   :  { %3293 = vmatmul.bf16.gmra.mxu1 %v4334_v63  ;;  %3342 = vmatmul.bf16.gmra.mxu2 %v4338_v4  ;;  %v7116_v6 = vadd.f32 %v3242_v42, %v3194_v56  ;;  %v5799_v63 = vld [vmem:[%s8299_s0 + $0x344] sm:$0xf]  ;;  %v4531_v4 = vld [vmem:[%s8299_s0 + $0x3a4] sm:$0xf0]  ;;  %v4539_v56 = vld [vmem:[%s8299_s0 + $0x3ac] sm:$0xf0] }
 0x162   :  { %3623 = vmatpush.bf16.msra.mxu0 %v6025_v59 }
 0x163   :  { %3391 = vmatmul.bf16.gmra.mxu3 %v4342_v1  ;;  %3440 = vmatmul.bf16.gmra.mxu0 %v4346_v2  ;;  %v5812_v1 = vld [vmem:[%s8299_s0 + $0x3a8] sm:$0xf0] }
 0x164   :  { %v3147_v8 = vpop.f32.mrf.mxu2  ;;  %v5800_v2 = vld [vmem:[%s8299_s0 + $0x34c] sm:$0xf] }
 0x165   :  { %v3148_v9 = vadd.f32 %v3147_v8, %v3099_v62  ;;  %v4545_v62 = vld [vmem:[%s8299_s0 + $0x350] sm:$0xf] }
 0x166   :  { %v3196_v28 = vpop.f32.mrf.mxu3  ;;  %v3100_v11 = vpop.f32.mrf.mxu1 }
 0x167   :  { %v3197_v12 = vadd.f32 %v3196_v28, %v3148_v9  ;;  %v3101_v13 = vadd.f32 %v3100_v11, %v6821_v49  ;;  %v4534_v9 = vor.u32 %v5799_v63, %v4531_v4  ;;  %v4538_v28 = vor.u32 %v5812_v1, %v4537_v0  ;;  %v6007_v4 = vld [vmem:[%s8297_s1 + $0x380] sm:$0xff] }
 0x168   :  { %v3247_v17 = vpop.f32.mrf.mxu0  ;;  %v6015_v0 = vld [vmem:[%s8297_s1 + $0x3c0] sm:$0xff]  ;;  %3527 = vmatpush.bf16.msra.mxu2 %v6007_v4 }
 0x169   :  { %v7137_v49 = vadd.f32 %v3245_v5, %v3197_v12  ;;  %v5813_v5 = vld [vmem:[%s8299_s0 + $0x3b0] sm:$0xf0]  ;;  %v4542_v12 = vor.u32 %v5800_v2, %v4539_v56  ;;  %3576 = vmatpush.bf16.msra.mxu3 %v6015_v0 }
 0x16c   :  { %v3149_v58 = vpop.f32.mrf.mxu2 }
 0x16d   :  { %v3150_v34 = vadd.f32 %v3149_v58, %v3101_v13  ;;  %v4546_v13 = vor.u32 %v5813_v5, %v4545_v62 }
 0x16e   :  { %v3198_v35 = vpop.f32.mrf.mxu3  ;;  %v3103_v37 = vpop.f32.mrf.mxu1 }
 0x16f   :  { %v3199_v42 = vadd.f32 %v3198_v35, %v3150_v34  ;;  %v3104_v44 = vadd.f32 %v3103_v37, %v6843_v25  ;;  %v6000_v34 = vld [vmem:[%s8297_s1 + $0x348] sm:$0xff]  ;;  %v4637_v37 = vld [vmem:[%s8299_s0 + $0x410] sm:$0xf] }
 0x170   :  { %v3250_v45 = vpop.f32.mrf.mxu0  ;;  %v6024_v35 = vld [vmem:[%s8297_s1 + $0x408] sm:$0xff]  ;;  %3477 = vmatpush.bf16.msra.mxu1 %v6000_v34 }
 0x171   :  { %3298 = vmatmul.bf16.gmra.mxu1 %v4434_v36  ;;  %3347 = vmatmul.bf16.gmra.mxu2 %v4438_v46  ;;  %v7158_v26 = vadd.f32 %v3247_v17, %v3199_v42  ;;  %v5824_v36 = vld [vmem:[%s8299_s0 + $0x40c] sm:$0xf]  ;;  %v4631_v46 = vld [vmem:[%s8299_s0 + $0x46c] sm:$0xf0]  ;;  %v4639_v42 = vld [vmem:[%s8299_s0 + $0x474] sm:$0xf0] }
 0x172   :  { %3624 = vmatpush.bf16.msra.mxu0 %v6024_v35 }
 0x173   :  { %3396 = vmatmul.bf16.gmra.mxu3 %v4442_v38  ;;  %3445 = vmatmul.bf16.gmra.mxu0 %v4446_v40  ;;  %v5837_v38 = vld [vmem:[%s8299_s0 + $0x470] sm:$0xf0] }
 0x174   :  { %v3152_v48 = vpop.f32.mrf.mxu2  ;;  %v5825_v40 = vld [vmem:[%s8299_s0 + $0x414] sm:$0xf] }
 0x175   :  { %v3153_v15 = vadd.f32 %v3152_v48, %v3104_v44  ;;  %v4645_v44 = vld [vmem:[%s8299_s0 + $0x418] sm:$0xf] }
 0x176   :  { %v3201_v25 = vpop.f32.mrf.mxu3  ;;  %v3105_v51 = vpop.f32.mrf.mxu1 }
 0x177   :  { %v3202_v52 = vadd.f32 %v3201_v25, %v3153_v15  ;;  %v3106_v53 = vadd.f32 %v3105_v51, %v6864_v29  ;;  %v4634_v15 = vor.u32 %v5824_v36, %v4631_v46  ;;  %v4638_v25 = vor.u32 %v5837_v38, %v4637_v37  ;;  %v6046_v46 = vld [vmem:[%s8297_s1 + $0x4b8] sm:$0xff] }
 0x178   :  { %v3252_v55 = vpop.f32.mrf.mxu0  ;;  %v6054_v37 = vld [vmem:[%s8297_s1 + $0x4f8] sm:$0xff]  ;;  %3716 = vmatpush.bf16.msrb.mxu2 %v6046_v46 }
 0x179   :  { %v7179_v29 = vadd.f32 %v3250_v45, %v3202_v52  ;;  %v5838_v45 = vld [vmem:[%s8299_s0 + $0x478] sm:$0xf0]  ;;  %v4642_v52 = vor.u32 %v5825_v40, %v4639_v42  ;;  %3765 = vmatpush.bf16.msrb.mxu3 %v6054_v37 }
 0x17c   :  { %v3154_v22 = vpop.f32.mrf.mxu2 }
 0x17d   :  { %v3155_v50 = vadd.f32 %v3154_v22, %v3106_v53  ;;  %v4646_v53 = vor.u32 %v5838_v45, %v4645_v44 }
 0x17e   :  { %v3203_v8 = vpop.f32.mrf.mxu3  ;;  %v3108_v11 = vpop.f32.mrf.mxu1 }
 0x17f   :  { %v3204_v17 = vadd.f32 %v3203_v8, %v3155_v50  ;;  %v3109_v19 = vadd.f32 %v3108_v11, %v6885_v10  ;;  %v5999_v50 = vld [vmem:[%s8297_s1 + $0x340] sm:$0xff]  ;;  %v4737_v11 = vld [vmem:[%s8299_s0 + $0x4d8] sm:$0xf] }
 0x180   :  { %v3255_v20 = vpop.f32.mrf.mxu0  ;;  %v6023_v8 = vld [vmem:[%s8297_s1 + $0x400] sm:$0xff]  ;;  %3478 = vmatpush.bf16.msra.mxu1 %v5999_v50 }
 0x181   :  { %3303 = vmatmul.bf16.gmra.mxu1 %v4534_v9  ;;  %3352 = vmatmul.bf16.gmra.mxu2 %v4538_v28  ;;  %v7200_v21 = vadd.f32 %v3252_v55, %v3204_v17  ;;  %v5849_v9 = vld [vmem:[%s8299_s0 + $0x4d4] sm:$0xf]  ;;  %v4731_v28 = vld [vmem:[%s8299_s0 + $0x534] sm:$0xf0]  ;;  %v4739_v17 = vld [vmem:[%s8299_s0 + $0x53c] sm:$0xf0] }
 0x182   :  { %3625 = vmatpush.bf16.msra.mxu0 %v6023_v8 }
 0x183   :  { %3401 = vmatmul.bf16.gmra.mxu3 %v4542_v12  ;;  %3450 = vmatmul.bf16.gmra.mxu0 %v4546_v13  ;;  %v5862_v12 = vld [vmem:[%s8299_s0 + $0x538] sm:$0xf0] }
 0x184   :  { %v3157_v27 = vpop.f32.mrf.mxu2  ;;  %v5850_v13 = vld [vmem:[%s8299_s0 + $0x4dc] sm:$0xf] }
 0x185   :  { %v3158_v61 = vadd.f32 %v3157_v27, %v3109_v19  ;;  %v4745_v19 = vld [vmem:[%s8299_s0 + $0x4e0] sm:$0xf] }
 0x186   :  { %v3206_v10 = vpop.f32.mrf.mxu3  ;;  %v3110_v30 = vpop.f32.mrf.mxu1 }
 0x187   :  { %v3207_v18 = vadd.f32 %v3206_v10, %v3158_v61  ;;  %v3111_v32 = vadd.f32 %v3110_v30, %v6906_v3  ;;  %v4734_v61 = vor.u32 %v5849_v9, %v4731_v28  ;;  %v4738_v10 = vor.u32 %v5862_v12, %v4737_v11  ;;  %v6045_v28 = vld [vmem:[%s8297_s1 + $0x4b0] sm:$0xff] }
 0x188   :  { %v3257_v58 = vpop.f32.mrf.mxu0  ;;  %v6053_v11 = vld [vmem:[%s8297_s1 + $0x4f0] sm:$0xff]  ;;  %3717 = vmatpush.bf16.msrb.mxu2 %v6045_v28 }
 0x189   :  { %v7221_v3 = vadd.f32 %v3255_v20, %v3207_v18  ;;  %v5863_v20 = vld [vmem:[%s8299_s0 + $0x540] sm:$0xf0]  ;;  %v4742_v18 = vor.u32 %v5850_v13, %v4739_v17  ;;  %3766 = vmatpush.bf16.msrb.mxu3 %v6053_v11 }
 0x18c   :  { %v3159_v60 = vpop.f32.mrf.mxu2 }
 0x18d   :  { %v3160_v47 = vadd.f32 %v3159_v60, %v3111_v32  ;;  %v4746_v32 = vor.u32 %v5863_v20, %v4745_v19 }
 0x18e   :  { %v3208_v48 = vpop.f32.mrf.mxu3  ;;  %v3113_v51 = vpop.f32.mrf.mxu1 }
 0x18f   :  { %v3209_v55 = vadd.f32 %v3208_v48, %v3160_v47  ;;  %v3114_v57 = vadd.f32 %v3113_v51, %v6927_v39  ;;  %v6038_v47 = vld [vmem:[%s8297_s1 + $0x478] sm:$0xff]  ;;  %v4837_v51 = vld [vmem:[%s8299_s0 + $0x5a0] sm:$0xf] }
 0x190   :  { %v3260_v59 = vpop.f32.mrf.mxu0  ;;  %v6062_v48 = vld [vmem:[%s8297_s1 + $0x538] sm:$0xff]  ;;  %3667 = vmatpush.bf16.msrb.mxu1 %v6038_v47 }
 0x191   :  { %3308 = vmatmul.bf16.gmra.mxu1 %v4634_v15  ;;  %3357 = vmatmul.bf16.gmra.mxu2 %v4638_v25  ;;  %v7242_v63 = vadd.f32 %v3257_v58, %v3209_v55  ;;  %v5874_v15 = vld [vmem:[%s8299_s0 + $0x59c] sm:$0xf]  ;;  %v4831_v25 = vld [vmem:[%s8299_s0 + $0x5fc] sm:$0xf0]  ;;  %v4839_v55 = vld [vmem:[%s8299_s0 + $0x604] sm:$0xf0] }
 0x192   :  { %3814 = vmatpush.bf16.msrb.mxu0 %v6062_v48 }
 0x193   :  { %3406 = vmatmul.bf16.gmra.mxu3 %v4642_v52  ;;  %3455 = vmatmul.bf16.gmra.mxu0 %v4646_v53  ;;  %v5887_v52 = vld [vmem:[%s8299_s0 + $0x600] sm:$0xf0] }
 0x194   :  { %v3162_v1 = vpop.f32.mrf.mxu2  ;;  %v5875_v53 = vld [vmem:[%s8299_s0 + $0x5a4] sm:$0xf] }
 0x195   :  { %v3163_v2 = vadd.f32 %v3162_v1, %v3114_v57  ;;  %v4845_v57 = vld [vmem:[%s8299_s0 + $0x5a8] sm:$0xf] }
 0x196   :  { %v3211_v39 = vpop.f32.mrf.mxu3  ;;  %v3115_v56 = vpop.f32.mrf.mxu1 }
 0x197   :  { %v3212_v62 = vadd.f32 %v3211_v39, %v3163_v2  ;;  %v3116_v5 = vadd.f32 %v3115_v56, %v6948_v41  ;;  %v4834_v2 = vor.u32 %v5874_v15, %v4831_v25  ;;  %v4838_v39 = vor.u32 %v5887_v52, %v4837_v51  ;;  %v6044_v25 = vld [vmem:[%s8297_s1 + $0x4a8] sm:$0xff] }
 0x198   :  { %v3262_v22 = vpop.f32.mrf.mxu0  ;;  %v6052_v51 = vld [vmem:[%s8297_s1 + $0x4e8] sm:$0xff]  ;;  %3718 = vmatpush.bf16.msrb.mxu2 %v6044_v25 }
 0x199   :  { %v7263_v41 = vadd.f32 %v3260_v59, %v3212_v62  ;;  %v5888_v59 = vld [vmem:[%s8299_s0 + $0x608] sm:$0xf0]  ;;  %v4842_v62 = vor.u32 %v5875_v53, %v4839_v55  ;;  %3767 = vmatpush.bf16.msrb.mxu3 %v6052_v51 }
 0x19c   :  { %v3164_v24 = vpop.f32.mrf.mxu2 }
 0x19d   :  { %v3165_v23 = vadd.f32 %v3164_v24, %v3116_v5  ;;  %v4846_v5 = vor.u32 %v5888_v59, %v4845_v57 }
 0x19e   :  { %v3213_v27 = vpop.f32.mrf.mxu3  ;;  %v3118_v30 = vpop.f32.mrf.mxu1 }
 0x19f   :  { %v3214_v58 = vadd.f32 %v3213_v27, %v3165_v23  ;;  %v3119_v34 = vadd.f32 %v3118_v30, %v6969_v14  ;;  %v6037_v23 = vld [vmem:[%s8297_s1 + $0x470] sm:$0xff]  ;;  %v4153_v30 = vld [vmem:[%s8299_s0 + $0x38] sm:$0xf] }
 0x1a0   :  { %v3265_v35 = vpop.f32.mrf.mxu0  ;;  %v6061_v27 = vld [vmem:[%s8297_s1 + $0x530] sm:$0xff]  ;;  %3668 = vmatpush.bf16.msrb.mxu1 %v6037_v23 }
 0x1a1   :  { %3313 = vmatmul.bf16.gmra.mxu1 %v4734_v61  ;;  %3362 = vmatmul.bf16.gmra.mxu2 %v4738_v10  ;;  %v7284_v36 = vadd.f32 %v3262_v22, %v3214_v58  ;;  %v5701_v61 = vld [vmem:[%s8299_s0 + $0x34] sm:$0xf]  ;;  %v4147_v10 = vld [vmem:[%s8299_s0 + $0x94] sm:$0xf0]  ;;  %v4155_v58 = vld [vmem:[%s8299_s0 + $0x9c] sm:$0xf0] }
 0x1a2   :  { %3815 = vmatpush.bf16.msrb.mxu0 %v6061_v27 }
 0x1a3   :  { %3411 = vmatmul.bf16.gmra.mxu3 %v4742_v18  ;;  %3460 = vmatmul.bf16.gmra.mxu0 %v4746_v32  ;;  %v5714_v18 = vld [vmem:[%s8299_s0 + $0x98] sm:$0xf0] }
 0x1a4   :  { %v3167_v38 = vpop.f32.mrf.mxu2  ;;  %v5702_v32 = vld [vmem:[%s8299_s0 + $0x3c] sm:$0xf] }
 0x1a5   :  { %v3168_v40 = vadd.f32 %v3167_v38, %v3119_v34  ;;  %v4161_v34 = vld [vmem:[%s8299_s0 + $0x40] sm:$0xf] }
 0x1a6   :  { %v3216_v14 = vpop.f32.mrf.mxu3  ;;  %v3120_v42 = vpop.f32.mrf.mxu1 }
 0x1a7   :  { %v3217_v44 = vadd.f32 %v3216_v14, %v3168_v40  ;;  %v3121_v45 = vadd.f32 %v3120_v42, %v6990_v16  ;;  %v4150_v40 = vor.u32 %v5701_v61, %v4147_v10  ;;  %v4154_v14 = vor.u32 %v5714_v18, %v4153_v30  ;;  %v6043_v10 = vld [vmem:[%s8297_s1 + $0x4a0] sm:$0xff] }
 0x1a8   :  { %v3267_v60 = vpop.f32.mrf.mxu0  ;;  %v6051_v30 = vld [vmem:[%s8297_s1 + $0x4e0] sm:$0xff]  ;;  %3719 = vmatpush.bf16.msrb.mxu2 %v6043_v10 }
 0x1a9   :  { %v7305_v16 = vadd.f32 %v3265_v35, %v3217_v44  ;;  %v5715_v35 = vld [vmem:[%s8299_s0 + $0xa0] sm:$0xf0]  ;;  %v4158_v44 = vor.u32 %v5702_v32, %v4155_v58  ;;  %3768 = vmatpush.bf16.msrb.mxu3 %v6051_v30 }
 0x1ac   :  { %v3169_v4 = vpop.f32.mrf.mxu2 }
 0x1ad   :  { %v3170_v0 = vadd.f32 %v3169_v4, %v3121_v45  ;;  %v4162_v45 = vor.u32 %v5715_v35, %v4161_v34 }
 0x1ae   :  { %v3218_v1 = vpop.f32.mrf.mxu3  ;;  %v3123_v56 = vpop.f32.mrf.mxu1 }
 0x1af   :  { %v3219_v22 = vadd.f32 %v3218_v1, %v3170_v0  ;;  %v3124_v50 = vadd.f32 %v3123_v56, %v7011_v43  ;;  %v6036_v0 = vld [vmem:[%s8297_s1 + $0x468] sm:$0xff]  ;;  %v4253_v56 = vld [vmem:[%s8299_s0 + $0x100] sm:$0xf] }
 0x1b0   :  { %v3270_v8 = vpop.f32.mrf.mxu0  ;;  %v6060_v1 = vld [vmem:[%s8297_s1 + $0x528] sm:$0xff]  ;;  %3669 = vmatpush.bf16.msrb.mxu1 %v6036_v0 }
 0x1b1   :  { %3318 = vmatmul.bf16.gmra.mxu1 %v4834_v2  ;;  %3367 = vmatmul.bf16.gmra.mxu2 %v4838_v39  ;;  %v7326_v9 = vadd.f32 %v3267_v60, %v3219_v22  ;;  %v5726_v2 = vld [vmem:[%s8299_s0 + $0xfc] sm:$0xf]  ;;  %v4247_v39 = vld [vmem:[%s8299_s0 + $0x15c] sm:$0xf0]  ;;  %v4255_v22 = vld [vmem:[%s8299_s0 + $0x164] sm:$0xf0] }
 0x1b2   :  { %3816 = vmatpush.bf16.msrb.mxu0 %v6060_v1 }
 0x1b3   :  { %3416 = vmatmul.bf16.gmra.mxu3 %v4842_v62  ;;  %3465 = vmatmul.bf16.gmra.mxu0 %v4846_v5  ;;  %v5739_v62 = vld [vmem:[%s8299_s0 + $0x160] sm:$0xf0] }
 0x1b4   :  { %v3172_v12 = vpop.f32.mrf.mxu2  ;;  %v5727_v5 = vld [vmem:[%s8299_s0 + $0x104] sm:$0xf] }
 0x1b5   :  { %v3173_v13 = vadd.f32 %v3172_v12, %v3124_v50  ;;  %v4261_v50 = vld [vmem:[%s8299_s0 + $0x108] sm:$0xf] }
 0x1b6   :  { %v3221_v43 = vpop.f32.mrf.mxu3  ;;  %v3125_v17 = vpop.f32.mrf.mxu1 }
 0x1b7   :  { %v3222_v19 = vadd.f32 %v3221_v43, %v3173_v13  ;;  %v3126_v20 = vadd.f32 %v3125_v17, %v7032_v54  ;;  %v4250_v13 = vor.u32 %v5726_v2, %v4247_v39  ;;  %v4254_v43 = vor.u32 %v5739_v62, %v4253_v56  ;;  %v6042_v39 = vld [vmem:[%s8297_s1 + $0x498] sm:$0xff] }
 0x1b8   :  { %v3272_v24 = vpop.f32.mrf.mxu0  ;;  %v6050_v56 = vld [vmem:[%s8297_s1 + $0x4d8] sm:$0xff]  ;;  %3720 = vmatpush.bf16.msrb.mxu2 %v6042_v39 }
 0x1b9   :  { %v7347_v54 = vadd.f32 %v3270_v8, %v3222_v19  ;;  %v5740_v8 = vld [vmem:[%s8299_s0 + $0x168] sm:$0xf0]  ;;  %v4258_v19 = vor.u32 %v5727_v5, %v4255_v22  ;;  %3769 = vmatpush.bf16.msrb.mxu3 %v6050_v56 }
 0x1bc   :  { %v3174_v46 = vpop.f32.mrf.mxu2 }
 0x1bd   :  { %v3175_v37 = vadd.f32 %v3174_v46, %v3126_v20  ;;  %v4262_v20 = vor.u32 %v5740_v8, %v4261_v50 }
 0x1be   :  { %v3223_v38 = vpop.f32.mrf.mxu3  ;;  %v3284_v42 = vpop.f32.mrf.mxu1 }
 0x1bf   :  { %v3224_v60 = vadd.f32 %v3223_v38, %v3175_v37  ;;  %v3285_v47 = vadd.f32 %v3284_v42, %v7053_v31  ;;  %v6035_v37 = vld [vmem:[%s8297_s1 + $0x460] sm:$0xff]  ;;  %v4353_v42 = vld [vmem:[%s8299_s0 + $0x1c8] sm:$0xf] }
 0x1c0   :  { %v3431_v48 = vpop.f32.mrf.mxu0  ;;  %v6059_v38 = vld [vmem:[%s8297_s1 + $0x520] sm:$0xff]  ;;  %3670 = vmatpush.bf16.msrb.mxu1 %v6035_v37 }
 0x1c1   :  { %3479 = vmatmul.bf16.vlgmr.msra.gmra.mxu1 %v4150_v40  ;;  %3528 = vmatmul.bf16.vlgmr.msra.gmra.mxu2 %v4154_v14  ;;  %v7368_v15 = vadd.f32 %v3272_v24, %v3224_v60  ;;  %v5751_v40 = vld [vmem:[%s8299_s0 + $0x1c4] sm:$0xf]  ;;  %v4347_v14 = vld [vmem:[%s8299_s0 + $0x224] sm:$0xf0]  ;;  %v4355_v60 = vld [vmem:[%s8299_s0 + $0x22c] sm:$0xf0] }
 0x1c2   :  { %3817 = vmatpush.bf16.msrb.mxu0 %v6059_v38 }
 0x1c3   :  { %3577 = vmatmul.bf16.vlgmr.msra.gmra.mxu3 %v4158_v44  ;;  %3626 = vmatmul.bf16.vlgmr.msra.gmra.mxu0 %v4162_v45  ;;  %v5764_v44 = vld [vmem:[%s8299_s0 + $0x228] sm:$0xf0] }
 0x1c4   :  { %v3333_v52 = vpop.f32.mrf.mxu2  ;;  %v5752_v45 = vld [vmem:[%s8299_s0 + $0x1cc] sm:$0xf] }
 0x1c5   :  { %v3334_v53 = vadd.f32 %v3333_v52, %v3285_v47  ;;  %v4361_v47 = vld [vmem:[%s8299_s0 + $0x1d0] sm:$0xf] }
 0x1c6   :  { %v3382_v31 = vpop.f32.mrf.mxu3  ;;  %v3286_v55 = vpop.f32.mrf.mxu1 }
 0x1c7   :  { %v3383_v57 = vadd.f32 %v3382_v31, %v3334_v53  ;;  %v3287_v59 = vadd.f32 %v3286_v55, %v7074_v33  ;;  %v4350_v53 = vor.u32 %v5751_v40, %v4347_v14  ;;  %v4354_v31 = vor.u32 %v5764_v44, %v4353_v42  ;;  %v6041_v14 = vld [vmem:[%s8297_s1 + $0x490] sm:$0xff] }
 0x1c8   :  { %v3433_v4 = vpop.f32.mrf.mxu0  ;;  %v6049_v42 = vld [vmem:[%s8297_s1 + $0x4d0] sm:$0xff]  ;;  %3721 = vmatpush.bf16.msrb.mxu2 %v6041_v14 }
 0x1c9   :  { %v7389_v33 = vadd.f32 %v3431_v48, %v3383_v57  ;;  %v5765_v48 = vld [vmem:[%s8299_s0 + $0x230] sm:$0xf0]  ;;  %v4358_v57 = vor.u32 %v5752_v45, %v4355_v60  ;;  %3770 = vmatpush.bf16.msrb.mxu3 %v6049_v42 }
 0x1cc   :  { %v3335_v28 = vpop.f32.mrf.mxu2 }
 0x1cd   :  { %v3336_v11 = vadd.f32 %v3335_v28, %v3287_v59  ;;  %v4362_v59 = vor.u32 %v5765_v48, %v4361_v47 }
 0x1ce   :  { %v3384_v12 = vpop.f32.mrf.mxu3  ;;  %v3289_v17 = vpop.f32.mrf.mxu1 }
 0x1cf   :  { %v3385_v24 = vadd.f32 %v3384_v12, %v3336_v11  ;;  %v3290_v23 = vadd.f32 %v3289_v17, %v7095_v7  ;;  %v6034_v11 = vld [vmem:[%s8297_s1 + $0x458] sm:$0xff]  ;;  %v4453_v17 = vld [vmem:[%s8299_s0 + $0x290] sm:$0xf] }
 0x1d0   :  { %v3436_v27 = vpop.f32.mrf.mxu0  ;;  %v6058_v12 = vld [vmem:[%s8297_s1 + $0x518] sm:$0xff]  ;;  %3671 = vmatpush.bf16.msrb.mxu1 %v6034_v11 }
 0x1d1   :  { %3484 = vmatmul.bf16.gmra.mxu1 %v4250_v13  ;;  %3533 = vmatmul.bf16.gmra.mxu2 %v4254_v43  ;;  %v7410_v61 = vadd.f32 %v3433_v4, %v3385_v24  ;;  %v5776_v13 = vld [vmem:[%s8299_s0 + $0x28c] sm:$0xf]  ;;  %v4447_v43 = vld [vmem:[%s8299_s0 + $0x2ec] sm:$0xf0]  ;;  %v4455_v24 = vld [vmem:[%s8299_s0 + $0x2f4] sm:$0xf0] }
 0x1d2   :  { %3818 = vmatpush.bf16.msrb.mxu0 %v6058_v12 }
 0x1d3   :  { %3582 = vmatmul.bf16.gmra.mxu3 %v4258_v19  ;;  %3631 = vmatmul.bf16.gmra.mxu0 %v4262_v20  ;;  %v5789_v19 = vld [vmem:[%s8299_s0 + $0x2f0] sm:$0xf0] }
 0x1d4   :  { %v3338_v18 = vpop.f32.mrf.mxu2  ;;  %v5777_v20 = vld [vmem:[%s8299_s0 + $0x294] sm:$0xf] }
 0x1d5   :  { %v3339_v32 = vadd.f32 %v3338_v18, %v3290_v23  ;;  %v4461_v23 = vld [vmem:[%s8299_s0 + $0x298] sm:$0xf] }
 0x1d6   :  { %v3387_v7 = vpop.f32.mrf.mxu3  ;;  %v3291_v58 = vpop.f32.mrf.mxu1 }
 0x1d7   :  { %v3388_v34 = vadd.f32 %v3387_v7, %v3339_v32  ;;  %v3292_v35 = vadd.f32 %v3291_v58, %v7116_v6  ;;  %v4450_v32 = vor.u32 %v5776_v13, %v4447_v43  ;;  %v4454_v7 = vor.u32 %v5789_v19, %v4453_v17  ;;  %v6040_v43 = vld [vmem:[%s8297_s1 + $0x488] sm:$0xff] }
 0x1d8   :  { %v3438_v46 = vpop.f32.mrf.mxu0  ;;  %v6048_v17 = vld [vmem:[%s8297_s1 + $0x4c8] sm:$0xff]  ;;  %3722 = vmatpush.bf16.msrb.mxu2 %v6040_v43 }
 0x1d9   :  { %v7431_v6 = vadd.f32 %v3436_v27, %v3388_v34  ;;  %v5790_v27 = vld [vmem:[%s8299_s0 + $0x2f8] sm:$0xf0]  ;;  %v4458_v34 = vor.u32 %v5777_v20, %v4455_v24  ;;  %3771 = vmatpush.bf16.msrb.mxu3 %v6048_v17 }
 0x1dc   :  { %v3340_v25 = vpop.f32.mrf.mxu2 }
 0x1dd   :  { %v3341_v51 = vadd.f32 %v3340_v25, %v3292_v35  ;;  %v4462_v35 = vor.u32 %v5790_v27, %v4461_v23 }
 0x1de   :  { %v3389_v52 = vpop.f32.mrf.mxu3  ;;  %v3294_v55 = vpop.f32.mrf.mxu1 }
 0x1df   :  { %v3390_v4 = vadd.f32 %v3389_v52, %v3341_v51  ;;  %v3295_v0 = vadd.f32 %v3294_v55, %v7137_v49  ;;  %v6033_v51 = vld [vmem:[%s8297_s1 + $0x450] sm:$0xff]  ;;  %v4553_v55 = vld [vmem:[%s8299_s0 + $0x358] sm:$0xf] }
 0x1e0   :  { %v3441_v1 = vpop.f32.mrf.mxu0  ;;  %v6057_v52 = vld [vmem:[%s8297_s1 + $0x510] sm:$0xff]  ;;  %3672 = vmatpush.bf16.msrb.mxu1 %v6033_v51 }
 0x1e1   :  { %3489 = vmatmul.bf16.gmra.mxu1 %v4350_v53  ;;  %3538 = vmatmul.bf16.gmra.mxu2 %v4354_v31  ;;  %v7452_v2 = vadd.f32 %v3438_v46, %v3390_v4  ;;  %v5801_v53 = vld [vmem:[%s8299_s0 + $0x354] sm:$0xf]  ;;  %v4547_v31 = vld [vmem:[%s8299_s0 + $0x3b4] sm:$0xf0]  ;;  %v4555_v4 = vld [vmem:[%s8299_s0 + $0x3bc] sm:$0xf0] }
 0x1e2   :  { %3819 = vmatpush.bf16.msrb.mxu0 %v6057_v52 }
 0x1e3   :  { %3587 = vmatmul.bf16.gmra.mxu3 %v4358_v57  ;;  %3636 = vmatmul.bf16.gmra.mxu0 %v4362_v59  ;;  %v5814_v57 = vld [vmem:[%s8299_s0 + $0x3b8] sm:$0xf0] }
 0x1e4   :  { %v3343_v62 = vpop.f32.mrf.mxu2  ;;  %v5802_v59 = vld [vmem:[%s8299_s0 + $0x35c] sm:$0xf] }
 0x1e5   :  { %v3344_v5 = vadd.f32 %v3343_v62, %v3295_v0  ;;  %v4561_v0 = vld [vmem:[%s8299_s0 + $0x360] sm:$0xf] }
 0x1e6   :  { %v3392_v49 = vpop.f32.mrf.mxu3  ;;  %v3296_v22 = vpop.f32.mrf.mxu1 }
 0x1e7   :  { %v3393_v50 = vadd.f32 %v3392_v49, %v3344_v5  ;;  %v3297_v8 = vadd.f32 %v3296_v22, %v7158_v26  ;;  %v4550_v5 = vor.u32 %v5801_v53, %v4547_v31  ;;  %v4554_v49 = vor.u32 %v5814_v57, %v4553_v55  ;;  %v6039_v31 = vld [vmem:[%s8297_s1 + $0x480] sm:$0xff] }
 0x1e8   :  { %v3443_v28 = vpop.f32.mrf.mxu0  ;;  %v6047_v55 = vld [vmem:[%s8297_s1 + $0x4c0] sm:$0xff]  ;;  %3723 = vmatpush.bf16.msrb.mxu2 %v6039_v31 }
 0x1e9   :  { %v7473_v26 = vadd.f32 %v3441_v1, %v3393_v50  ;;  %v5815_v1 = vld [vmem:[%s8299_s0 + $0x3c0] sm:$0xf0]  ;;  %v4558_v50 = vor.u32 %v5802_v59, %v4555_v4  ;;  %3772 = vmatpush.bf16.msrb.mxu3 %v6047_v55 }
 0x1ec   :  { %v3345_v10 = vpop.f32.mrf.mxu2 }
 0x1ed   :  { %v3346_v30 = vadd.f32 %v3345_v10, %v3297_v8  ;;  %v4562_v8 = vor.u32 %v5815_v1, %v4561_v0 }
 0x1ee   :  { %v3394_v18 = vpop.f32.mrf.mxu3  ;;  %v3299_v58 = vpop.f32.mrf.mxu1 }
 0x1ef   :  { %v3395_v46 = vadd.f32 %v3394_v18, %v3346_v30  ;;  %v3300_v37 = vadd.f32 %v3299_v58, %v7179_v29  ;;  %v6032_v30 = vld [vmem:[%s8297_s1 + $0x448] sm:$0xff]  ;;  %v4653_v58 = vld [vmem:[%s8299_s0 + $0x420] sm:$0xf] }
 0x1f0   :  { %v3446_v38 = vpop.f32.mrf.mxu0  ;;  %v6056_v18 = vld [vmem:[%s8297_s1 + $0x508] sm:$0xff]  ;;  %3673 = vmatpush.bf16.msrb.mxu1 %v6032_v30 }
 0x1f1   :  { %3494 = vmatmul.bf16.gmra.mxu1 %v4450_v32  ;;  %3543 = vmatmul.bf16.gmra.mxu2 %v4454_v7  ;;  %v7494_v40 = vadd.f32 %v3443_v28, %v3395_v46  ;;  %v5826_v32 = vld [vmem:[%s8299_s0 + $0x41c] sm:$0xf]  ;;  %v4647_v7 = vld [vmem:[%s8299_s0 + $0x47c] sm:$0xf0]  ;;  %v4655_v46 = vld [vmem:[%s8299_s0 + $0x484] sm:$0xf0] }
 0x1f2   :  { %3820 = vmatpush.bf16.msrb.mxu0 %v6056_v18 }
 0x1f3   :  { %3592 = vmatmul.bf16.gmra.mxu3 %v4458_v34  ;;  %3641 = vmatmul.bf16.gmra.mxu0 %v4462_v35  ;;  %v5839_v34 = vld [vmem:[%s8299_s0 + $0x480] sm:$0xf0] }
 0x1f4   :  { %v3348_v44 = vpop.f32.mrf.mxu2  ;;  %v5827_v35 = vld [vmem:[%s8299_s0 + $0x424] sm:$0xf] }
 0x1f5   :  { %v3349_v45 = vadd.f32 %v3348_v44, %v3300_v37  ;;  %v4661_v37 = vld [vmem:[%s8299_s0 + $0x428] sm:$0xf] }
 0x1f6   :  { %v3397_v29 = vpop.f32.mrf.mxu3  ;;  %v3301_v60 = vpop.f32.mrf.mxu1 }
 0x1f7   :  { %v3398_v47 = vadd.f32 %v3397_v29, %v3349_v45  ;;  %v3302_v48 = vadd.f32 %v3301_v60, %v7200_v21  ;;  %v4650_v45 = vor.u32 %v5826_v32, %v4647_v7  ;;  %v4654_v29 = vor.u32 %v5839_v34, %v4653_v58  ;;  %v6078_v7 = vld [vmem:[%s8297_s1 + $0x5b8] sm:$0xff] }
 0x1f8   :  { %v3448_v25 = vpop.f32.mrf.mxu0  ;;  %v6086_v58 = vld [vmem:[%s8297_s1 + $0x5f8] sm:$0xff]  ;;  %3912 = vmatpush.bf16.msra.mxu2 %v6078_v7 }
 0x1f9   :  { %v7515_v21 = vadd.f32 %v3446_v38, %v3398_v47  ;;  %v5840_v38 = vld [vmem:[%s8299_s0 + $0x488] sm:$0xf0]  ;;  %v4658_v47 = vor.u32 %v5827_v35, %v4655_v46  ;;  %3961 = vmatpush.bf16.msra.mxu3 %v6086_v58 }
 0x1fc   :  { %v3350_v39 = vpop.f32.mrf.mxu2 }
 0x1fd   :  { %v3351_v56 = vadd.f32 %v3350_v39, %v3302_v48  ;;  %v4662_v48 = vor.u32 %v5840_v38, %v4661_v37 }
 0x1fe   :  { %v3399_v62 = vpop.f32.mrf.mxu3  ;;  %v3304_v22 = vpop.f32.mrf.mxu1 }
 0x1ff   :  { %v3400_v28 = vadd.f32 %v3399_v62, %v3351_v56  ;;  %v3305_v11 = vadd.f32 %v3304_v22, %v7221_v3  ;;  %v6031_v56 = vld [vmem:[%s8297_s1 + $0x440] sm:$0xff]  ;;  %v4753_v22 = vld [vmem:[%s8299_s0 + $0x4e8] sm:$0xf] }
 0x200   :  { %v3451_v12 = vpop.f32.mrf.mxu0  ;;  %v6055_v62 = vld [vmem:[%s8297_s1 + $0x500] sm:$0xff]  ;;  %3674 = vmatpush.bf16.msrb.mxu1 %v6031_v56 }
 0x201   :  { %3499 = vmatmul.bf16.gmra.mxu1 %v4550_v5  ;;  %3548 = vmatmul.bf16.gmra.mxu2 %v4554_v49  ;;  %v7536_v13 = vadd.f32 %v3448_v25, %v3400_v28  ;;  %v5851_v5 = vld [vmem:[%s8299_s0 + $0x4e4] sm:$0xf]  ;;  %v4747_v49 = vld [vmem:[%s8299_s0 + $0x544] sm:$0xf0]  ;;  %v4755_v28 = vld [vmem:[%s8299_s0 + $0x54c] sm:$0xf0] }
 0x202   :  { %3821 = vmatpush.bf16.msrb.mxu0 %v6055_v62 }
 0x203   :  { %3597 = vmatmul.bf16.gmra.mxu3 %v4558_v50  ;;  %3646 = vmatmul.bf16.gmra.mxu0 %v4562_v8  ;;  %v5864_v50 = vld [vmem:[%s8299_s0 + $0x548] sm:$0xf0] }
 0x204   :  { %v3353_v19 = vpop.f32.mrf.mxu2  ;;  %v5852_v8 = vld [vmem:[%s8299_s0 + $0x4ec] sm:$0xf] }
 0x205   :  { %v3354_v20 = vadd.f32 %v3353_v19, %v3305_v11  ;;  %v4761_v11 = vld [vmem:[%s8299_s0 + $0x4f0] sm:$0xf] }
 0x206   :  { %v3402_v3 = vpop.f32.mrf.mxu3  ;;  %v3306_v24 = vpop.f32.mrf.mxu1 }
 0x207   :  { %v3403_v23 = vadd.f32 %v3402_v3, %v3354_v20  ;;  %v3307_v27 = vadd.f32 %v3306_v24, %v7242_v63  ;;  %v4750_v20 = vor.u32 %v5851_v5, %v4747_v49  ;;  %v4754_v3 = vor.u32 %v5864_v50, %v4753_v22  ;;  %v6077_v49 = vld [vmem:[%s8297_s1 + $0x5b0] sm:$0xff] }
 0x208   :  { %v3453_v10 = vpop.f32.mrf.mxu0  ;;  %v6085_v22 = vld [vmem:[%s8297_s1 + $0x5f0] sm:$0xff]  ;;  %3913 = vmatpush.bf16.msra.mxu2 %v6077_v49 }
 0x209   :  { %v7557_v63 = vadd.f32 %v3451_v12, %v3403_v23  ;;  %v5865_v12 = vld [vmem:[%s8299_s0 + $0x550] sm:$0xf0]  ;;  %v4758_v23 = vor.u32 %v5852_v8, %v4755_v28  ;;  %3962 = vmatpush.bf16.msra.mxu3 %v6085_v22 }
 0x20c   :  { %v3355_v14 = vpop.f32.mrf.mxu2 }
 0x20d   :  { %v3356_v42 = vadd.f32 %v3355_v14, %v3307_v27  ;;  %v4762_v27 = vor.u32 %v5865_v12, %v4761_v11 }
 0x20e   :  { %v3404_v44 = vpop.f32.mrf.mxu3  ;;  %v3309_v60 = vpop.f32.mrf.mxu1 }
 0x20f   :  { %v3405_v25 = vadd.f32 %v3404_v44, %v3356_v42  ;;  %v3310_v51 = vadd.f32 %v3309_v60, %v7263_v41  ;;  %v6070_v42 = vld [vmem:[%s8297_s1 + $0x578] sm:$0xff]  ;;  %v4853_v60 = vld [vmem:[%s8299_s0 + $0x5b0] sm:$0xf] }
 0x210   :  { %v3456_v52 = vpop.f32.mrf.mxu0  ;;  %v6094_v44 = vld [vmem:[%s8297_s1 + $0x638] sm:$0xff]  ;;  %3863 = vmatpush.bf16.msra.mxu1 %v6070_v42 }
 0x211   :  { %3504 = vmatmul.bf16.gmra.mxu1 %v4650_v45  ;;  %3553 = vmatmul.bf16.gmra.mxu2 %v4654_v29  ;;  %v7578_v53 = vadd.f32 %v3453_v10, %v3405_v25  ;;  %v5876_v45 = vld [vmem:[%s8299_s0 + $0x5ac] sm:$0xf]  ;;  %v4847_v29 = vld [vmem:[%s8299_s0 + $0x60c] sm:$0xf0]  ;;  %v4855_v25 = vld [vmem:[%s8299_s0 + $0x614] sm:$0xf0] }
 0x212   :  { %4010 = vmatpush.bf16.msra.mxu0 %v6094_v44 }
 0x213   :  { %3602 = vmatmul.bf16.gmra.mxu3 %v4658_v47  ;;  %3651 = vmatmul.bf16.gmra.mxu0 %v4662_v48  ;;  %v5889_v47 = vld [vmem:[%s8299_s0 + $0x610] sm:$0xf0] }
 0x214   :  { %v3358_v57 = vpop.f32.mrf.mxu2  ;;  %v5877_v48 = vld [vmem:[%s8299_s0 + $0x5b4] sm:$0xf] }
 0x215   :  { %v3359_v59 = vadd.f32 %v3358_v57, %v3310_v51  ;;  %v4861_v51 = vld [vmem:[%s8299_s0 + $0x5b8] sm:$0xf] }
 0x216   :  { %v3407_v41 = vpop.f32.mrf.mxu3  ;;  %v3311_v4 = vpop.f32.mrf.mxu1 }
 0x217   :  { %v3408_v0 = vadd.f32 %v3407_v41, %v3359_v59  ;;  %v3312_v1 = vadd.f32 %v3311_v4, %v7284_v36  ;;  %v4850_v59 = vor.u32 %v5876_v45, %v4847_v29  ;;  %v4854_v41 = vor.u32 %v5889_v47, %v4853_v60  ;;  %v6076_v29 = vld [vmem:[%s8297_s1 + $0x5a8] sm:$0xff] }
 0x218   :  { %v3458_v39 = vpop.f32.mrf.mxu0  ;;  %v6084_v60 = vld [vmem:[%s8297_s1 + $0x5e8] sm:$0xff]  ;;  %3914 = vmatpush.bf16.msra.mxu2 %v6076_v29 }
 0x219   :  { %v7599_v36 = vadd.f32 %v3456_v52, %v3408_v0  ;;  %v5890_v52 = vld [vmem:[%s8299_s0 + $0x618] sm:$0xf0]  ;;  %v4858_v0 = vor.u32 %v5877_v48, %v4855_v25  ;;  %3963 = vmatpush.bf16.msra.mxu3 %v6084_v60 }
 0x21c   :  { %v3360_v43 = vpop.f32.mrf.mxu2 }
 0x21d   :  { %v3361_v17 = vadd.f32 %v3360_v43, %v3312_v1  ;;  %v4862_v1 = vor.u32 %v5890_v52, %v4861_v51 }
 0x21e   :  { %v3409_v19 = vpop.f32.mrf.mxu3  ;;  %v3314_v24 = vpop.f32.mrf.mxu1 }
 0x21f   :  { %v3410_v10 = vadd.f32 %v3409_v19, %v3361_v17  ;;  %v3315_v30 = vadd.f32 %v3314_v24, %v7305_v16  ;;  %v6069_v17 = vld [vmem:[%s8297_s1 + $0x570] sm:$0xff]  ;;  %v4169_v24 = vld [vmem:[%s8299_s0 + $0x48] sm:$0xf] }
 0x220   :  { %v3461_v18 = vpop.f32.mrf.mxu0  ;;  %v6093_v19 = vld [vmem:[%s8297_s1 + $0x630] sm:$0xff]  ;;  %3864 = vmatpush.bf16.msra.mxu1 %v6069_v17 }
 0x221   :  { %3509 = vmatmul.bf16.gmra.mxu1 %v4750_v20  ;;  %3558 = vmatmul.bf16.gmra.mxu2 %v4754_v3  ;;  %v7620_v32 = vadd.f32 %v3458_v39, %v3410_v10  ;;  %v5703_v20 = vld [vmem:[%s8299_s0 + $0x44] sm:$0xf]  ;;  %v4163_v3 = vld [vmem:[%s8299_s0 + $0xa4] sm:$0xf0]  ;;  %v4171_v10 = vld [vmem:[%s8299_s0 + $0xac] sm:$0xf0] }
 0x222   :  { %4011 = vmatpush.bf16.msra.mxu0 %v6093_v19 }
 0x223   :  { %3607 = vmatmul.bf16.gmra.mxu3 %v4758_v23  ;;  %3656 = vmatmul.bf16.gmra.mxu0 %v4762_v27  ;;  %v5716_v23 = vld [vmem:[%s8299_s0 + $0xa8] sm:$0xf0] }
 0x224   :  { %v3363_v34 = vpop.f32.mrf.mxu2  ;;  %v5704_v27 = vld [vmem:[%s8299_s0 + $0x4c] sm:$0xf] }
 0x225   :  { %v3364_v35 = vadd.f32 %v3363_v34, %v3315_v30  ;;  %v4177_v30 = vld [vmem:[%s8299_s0 + $0x50] sm:$0xf] }
 0x226   :  { %v3412_v16 = vpop.f32.mrf.mxu3  ;;  %v3316_v46 = vpop.f32.mrf.mxu1 }
 0x227   :  { %v3413_v37 = vadd.f32 %v3412_v16, %v3364_v35  ;;  %v3317_v38 = vadd.f32 %v3316_v46, %v7326_v9  ;;  %v4166_v35 = vor.u32 %v5703_v20, %v4163_v3  ;;  %v4170_v16 = vor.u32 %v5716_v23, %v4169_v24  ;;  %v6075_v3 = vld [vmem:[%s8297_s1 + $0x5a0] sm:$0xff] }
 0x228   :  { %v3463_v14 = vpop.f32.mrf.mxu0  ;;  %v6083_v24 = vld [vmem:[%s8297_s1 + $0x5e0] sm:$0xff]  ;;  %3915 = vmatpush.bf16.msra.mxu2 %v6075_v3 }
 0x229   :  { %v7641_v9 = vadd.f32 %v3461_v18, %v3413_v37  ;;  %v5717_v18 = vld [vmem:[%s8299_s0 + $0xb0] sm:$0xf0]  ;;  %v4174_v37 = vor.u32 %v5704_v27, %v4171_v10  ;;  %3964 = vmatpush.bf16.msra.mxu3 %v6083_v24 }
 0x22c   :  { %v3365_v31 = vpop.f32.mrf.mxu2 }
 0x22d   :  { %v3366_v55 = vadd.f32 %v3365_v31, %v3317_v38  ;;  %v4178_v38 = vor.u32 %v5717_v18, %v4177_v30 }
 0x22e   :  { %v3414_v57 = vpop.f32.mrf.mxu3  ;;  %v3319_v4 = vpop.f32.mrf.mxu1 }
 0x22f   :  { %v3415_v39 = vadd.f32 %v3414_v57, %v3366_v55  ;;  %v3320_v56 = vadd.f32 %v3319_v4, %v7347_v54  ;;  %v6068_v55 = vld [vmem:[%s8297_s1 + $0x568] sm:$0xff]  ;;  %v4269_v4 = vld [vmem:[%s8299_s0 + $0x110] sm:$0xf] }
 0x230   :  { %v3466_v62 = vpop.f32.mrf.mxu0  ;;  %v6092_v57 = vld [vmem:[%s8297_s1 + $0x628] sm:$0xff]  ;;  %3865 = vmatpush.bf16.msra.mxu1 %v6068_v55 }
 0x231   :  { %3514 = vmatmul.bf16.gmra.mxu1 %v4850_v59  ;;  %3563 = vmatmul.bf16.gmra.mxu2 %v4854_v41  ;;  %v7662_v5 = vadd.f32 %v3463_v14, %v3415_v39  ;;  %v5728_v59 = vld [vmem:[%s8299_s0 + $0x10c] sm:$0xf]  ;;  %v4263_v41 = vld [vmem:[%s8299_s0 + $0x16c] sm:$0xf0]  ;;  %v4271_v39 = vld [vmem:[%s8299_s0 + $0x174] sm:$0xf0] }
 0x232   :  { %4012 = vmatpush.bf16.msra.mxu0 %v6092_v57 }
 0x233   :  { %3612 = vmatmul.bf16.gmra.mxu3 %v4858_v0  ;;  %3661 = vmatmul.bf16.gmra.mxu0 %v4862_v1  ;;  %v5741_v0 = vld [vmem:[%s8299_s0 + $0x170] sm:$0xf0] }
 0x234   :  { %v3368_v50 = vpop.f32.mrf.mxu2  ;;  %v5729_v1 = vld [vmem:[%s8299_s0 + $0x114] sm:$0xf] }
 0x235   :  { %v3369_v8 = vadd.f32 %v3368_v50, %v3320_v56  ;;  %v4277_v56 = vld [vmem:[%s8299_s0 + $0x118] sm:$0xf] }
 0x236   :  { %v3417_v54 = vpop.f32.mrf.mxu3  ;;  %v3321_v28 = vpop.f32.mrf.mxu1 }
 0x237   :  { %v3418_v11 = vadd.f32 %v3417_v54, %v3369_v8  ;;  %v3322_v12 = vadd.f32 %v3321_v28, %v7368_v15  ;;  %v4266_v8 = vor.u32 %v5728_v59, %v4263_v41  ;;  %v4270_v54 = vor.u32 %v5741_v0, %v4269_v4  ;;  %v6074_v41 = vld [vmem:[%s8297_s1 + $0x598] sm:$0xff] }
 0x238   :  { %v3468_v43 = vpop.f32.mrf.mxu0  ;;  %v6082_v4 = vld [vmem:[%s8297_s1 + $0x5d8] sm:$0xff]  ;;  %3916 = vmatpush.bf16.msra.mxu2 %v6074_v41 }
 0x239   :  { %v7683_v15 = vadd.f32 %v3466_v62, %v3418_v11  ;;  %v5742_v62 = vld [vmem:[%s8299_s0 + $0x178] sm:$0xf0]  ;;  %v4274_v11 = vor.u32 %v5729_v1, %v4271_v39  ;;  %3965 = vmatpush.bf16.msra.mxu3 %v6082_v4 }
 0x23c   :  { %v3370_v7 = vpop.f32.mrf.mxu2 }
 0x23d   :  { %v3371_v58 = vadd.f32 %v3370_v7, %v3322_v12  ;;  %v4278_v12 = vor.u32 %v5742_v62, %v4277_v56 }
 0x23e   :  { %v3419_v34 = vpop.f32.mrf.mxu3  ;;  %v3480_v46 = vpop.f32.mrf.mxu1 }
 0x23f   :  { %v3420_v14 = vadd.f32 %v3419_v34, %v3371_v58  ;;  %v3481_v42 = vadd.f32 %v3480_v46, %v7389_v33  ;;  %v6067_v58 = vld [vmem:[%s8297_s1 + $0x560] sm:$0xff]  ;;  %v4369_v46 = vld [vmem:[%s8299_s0 + $0x1d8] sm:$0xf] }
 0x240   :  { %v3627_v44 = vpop.f32.mrf.mxu0  ;;  %v6091_v34 = vld [vmem:[%s8297_s1 + $0x620] sm:$0xff]  ;;  %3866 = vmatpush.bf16.msra.mxu1 %v6067_v58 }
 0x241   :  { %3675 = vmatmul.bf16.vlgmr.msrb.gmra.mxu1 %v4166_v35  ;;  %3724 = vmatmul.bf16.vlgmr.msrb.gmra.mxu2 %v4170_v16  ;;  %v7704_v45 = vadd.f32 %v3468_v43, %v3420_v14  ;;  %v5753_v35 = vld [vmem:[%s8299_s0 + $0x1d4] sm:$0xf]  ;;  %v4363_v16 = vld [vmem:[%s8299_s0 + $0x234] sm:$0xf0]  ;;  %v4371_v14 = vld [vmem:[%s8299_s0 + $0x23c] sm:$0xf0] }
 0x242   :  { %4013 = vmatpush.bf16.msra.mxu0 %v6091_v34 }
 0x243   :  { %3773 = vmatmul.bf16.vlgmr.msrb.gmra.mxu3 %v4174_v37  ;;  %3822 = vmatmul.bf16.vlgmr.msrb.gmra.mxu0 %v4178_v38  ;;  %v5766_v37 = vld [vmem:[%s8299_s0 + $0x238] sm:$0xf0] }
 0x244   :  { %v3529_v47 = vpop.f32.mrf.mxu2  ;;  %v5754_v38 = vld [vmem:[%s8299_s0 + $0x1dc] sm:$0xf] }
 0x245   :  { %v3530_v48 = vadd.f32 %v3529_v47, %v3481_v42  ;;  %v4377_v42 = vld [vmem:[%s8299_s0 + $0x1e0] sm:$0xf] }
 0x246   :  { %v3578_v33 = vpop.f32.mrf.mxu3  ;;  %v3482_v25 = vpop.f32.mrf.mxu1 }
 0x247   :  { %v3579_v51 = vadd.f32 %v3578_v33, %v3530_v48  ;;  %v3483_v52 = vadd.f32 %v3482_v25, %v7410_v61  ;;  %v4366_v48 = vor.u32 %v5753_v35, %v4363_v16  ;;  %v4370_v33 = vor.u32 %v5766_v37, %v4369_v46  ;;  %v6073_v16 = vld [vmem:[%s8297_s1 + $0x590] sm:$0xff] }
 0x248   :  { %v3629_v31 = vpop.f32.mrf.mxu0  ;;  %v6081_v46 = vld [vmem:[%s8297_s1 + $0x5d0] sm:$0xff]  ;;  %3917 = vmatpush.bf16.msra.mxu2 %v6073_v16 }
 0x249   :  { %v7725_v61 = vadd.f32 %v3627_v44, %v3579_v51  ;;  %v5767_v44 = vld [vmem:[%s8299_s0 + $0x240] sm:$0xf0]  ;;  %v4374_v51 = vor.u32 %v5754_v38, %v4371_v14  ;;  %3966 = vmatpush.bf16.msra.mxu3 %v6081_v46 }
 0x24c   :  { %v3531_v49 = vpop.f32.mrf.mxu2 }
 0x24d   :  { %v3532_v22 = vadd.f32 %v3531_v49, %v3483_v52  ;;  %v4378_v52 = vor.u32 %v5767_v44, %v4377_v42 }
 0x24e   :  { %v3580_v50 = vpop.f32.mrf.mxu3  ;;  %v3485_v28 = vpop.f32.mrf.mxu1 }
 0x24f   :  { %v3581_v43 = vadd.f32 %v3580_v50, %v3532_v22  ;;  %v3486_v17 = vadd.f32 %v3485_v28, %v7431_v6  ;;  %v6066_v22 = vld [vmem:[%s8297_s1 + $0x558] sm:$0xff]  ;;  %v4469_v28 = vld [vmem:[%s8299_s0 + $0x2a0] sm:$0xf] }
 0x250   :  { %v3632_v19 = vpop.f32.mrf.mxu0  ;;  %v6090_v50 = vld [vmem:[%s8297_s1 + $0x618] sm:$0xff]  ;;  %3867 = vmatpush.bf16.msra.mxu1 %v6066_v22 }
 0x251   :  { %3680 = vmatmul.bf16.gmra.mxu1 %v4266_v8  ;;  %3729 = vmatmul.bf16.gmra.mxu2 %v4270_v54  ;;  %v7746_v20 = vadd.f32 %v3629_v31, %v3581_v43  ;;  %v5778_v8 = vld [vmem:[%s8299_s0 + $0x29c] sm:$0xf]  ;;  %v4463_v54 = vld [vmem:[%s8299_s0 + $0x2fc] sm:$0xf0]  ;;  %v4471_v43 = vld [vmem:[%s8299_s0 + $0x304] sm:$0xf0] }
 0x252   :  { %4014 = vmatpush.bf16.msra.mxu0 %v6090_v50 }
 0x253   :  { %3778 = vmatmul.bf16.gmra.mxu3 %v4274_v11  ;;  %3827 = vmatmul.bf16.gmra.mxu0 %v4278_v12  ;;  %v5791_v11 = vld [vmem:[%s8299_s0 + $0x300] sm:$0xf0] }
 0x254   :  { %v3534_v23 = vpop.f32.mrf.mxu2  ;;  %v5779_v12 = vld [vmem:[%s8299_s0 + $0x2a4] sm:$0xf] }
 0x255   :  { %v3535_v27 = vadd.f32 %v3534_v23, %v3486_v17  ;;  %v4477_v17 = vld [vmem:[%s8299_s0 + $0x2a8] sm:$0xf] }
 0x256   :  { %v3583_v6 = vpop.f32.mrf.mxu3  ;;  %v3487_v10 = vpop.f32.mrf.mxu1 }
 0x257   :  { %v3584_v30 = vadd.f32 %v3583_v6, %v3535_v27  ;;  %v3488_v18 = vadd.f32 %v3487_v10, %v7452_v2  ;;  %v4466_v27 = vor.u32 %v5778_v8, %v4463_v54  ;;  %v4470_v6 = vor.u32 %v5791_v11, %v4469_v28  ;;  %v6072_v54 = vld [vmem:[%s8297_s1 + $0x588] sm:$0xff] }
 0x258   :  { %v3634_v7 = vpop.f32.mrf.mxu0  ;;  %v6080_v28 = vld [vmem:[%s8297_s1 + $0x5c8] sm:$0xff]  ;;  %3918 = vmatpush.bf16.msra.mxu2 %v6072_v54 }
 0x259   :  { %v7767_v2 = vadd.f32 %v3632_v19, %v3584_v30  ;;  %v5792_v19 = vld [vmem:[%s8299_s0 + $0x308] sm:$0xf0]  ;;  %v4474_v30 = vor.u32 %v5779_v12, %v4471_v43  ;;  %3967 = vmatpush.bf16.msra.mxu3 %v6080_v28 }
 0x25c   :  { %v3536_v29 = vpop.f32.mrf.mxu2 }
 0x25d   :  { %v3537_v60 = vadd.f32 %v3536_v29, %v3488_v18  ;;  %v4478_v18 = vor.u32 %v5792_v19, %v4477_v17 }
 0x25e   :  { %v3585_v47 = vpop.f32.mrf.mxu3  ;;  %v3490_v25 = vpop.f32.mrf.mxu1 }
 0x25f   :  { %v3586_v31 = vadd.f32 %v3585_v47, %v3537_v60  ;;  %v3491_v55 = vadd.f32 %v3490_v25, %v7473_v26  ;;  %v6065_v60 = vld [vmem:[%s8297_s1 + $0x550] sm:$0xff]  ;;  %v4569_v25 = vld [vmem:[%s8299_s0 + $0x368] sm:$0xf] }
 0x260   :  { %v3637_v57 = vpop.f32.mrf.mxu0  ;;  %v6089_v47 = vld [vmem:[%s8297_s1 + $0x610] sm:$0xff]  ;;  %3868 = vmatpush.bf16.msra.mxu1 %v6065_v60 }
 0x261   :  { %3685 = vmatmul.bf16.gmra.mxu1 %v4366_v48  ;;  %3734 = vmatmul.bf16.gmra.mxu2 %v4370_v33  ;;  %v7788_v59 = vadd.f32 %v3634_v7, %v3586_v31  ;;  %v5803_v48 = vld [vmem:[%s8299_s0 + $0x364] sm:$0xf]  ;;  %v4563_v33 = vld [vmem:[%s8299_s0 + $0x3c4] sm:$0xf0]  ;;  %v4571_v31 = vld [vmem:[%s8299_s0 + $0x3cc] sm:$0xf0] }
 0x262   :  { %4015 = vmatpush.bf16.msra.mxu0 %v6089_v47 }
 0x263   :  { %3783 = vmatmul.bf16.gmra.mxu3 %v4374_v51  ;;  %3832 = vmatmul.bf16.gmra.mxu0 %v4378_v52  ;;  %v5816_v51 = vld [vmem:[%s8299_s0 + $0x3c8] sm:$0xf0] }
 0x264   :  { %v3539_v0 = vpop.f32.mrf.mxu2  ;;  %v5804_v52 = vld [vmem:[%s8299_s0 + $0x36c] sm:$0xf] }
 0x265   :  { %v3540_v1 = vadd.f32 %v3539_v0, %v3491_v55  ;;  %v4577_v55 = vld [vmem:[%s8299_s0 + $0x370] sm:$0xf] }
 0x266   :  { %v3588_v26 = vpop.f32.mrf.mxu3  ;;  %v3492_v39 = vpop.f32.mrf.mxu1 }
 0x267   :  { %v3589_v56 = vadd.f32 %v3588_v26, %v3540_v1  ;;  %v3493_v62 = vadd.f32 %v3492_v39, %v7494_v40  ;;  %v4566_v1 = vor.u32 %v5803_v48, %v4563_v33  ;;  %v4570_v26 = vor.u32 %v5816_v51, %v4569_v25  ;;  %v6071_v33 = vld [vmem:[%s8297_s1 + $0x580] sm:$0xff] }
 0x268   :  { %v3639_v49 = vpop.f32.mrf.mxu0  ;;  %v6079_v25 = vld [vmem:[%s8297_s1 + $0x5c0] sm:$0xff]  ;;  %3919 = vmatpush.bf16.msra.mxu2 %v6071_v33 }
 0x269   :  { %v7809_v40 = vadd.f32 %v3637_v57, %v3589_v56  ;;  %v5817_v57 = vld [vmem:[%s8299_s0 + $0x3d0] sm:$0xf0]  ;;  %v4574_v56 = vor.u32 %v5804_v52, %v4571_v31  ;;  %3968 = vmatpush.bf16.msra.mxu3 %v6079_v25 }
 0x26c   :  { %v3541_v3 = vpop.f32.mrf.mxu2 }
 0x26d   :  { %v3542_v24 = vadd.f32 %v3541_v3, %v3493_v62  ;;  %v4578_v62 = vor.u32 %v5817_v57, %v4577_v55 }
 0x26e   :  { %v3590_v23 = vpop.f32.mrf.mxu3  ;;  %v3495_v10 = vpop.f32.mrf.mxu1 }
 0x26f   :  { %v3591_v7 = vadd.f32 %v3590_v23, %v3542_v24  ;;  %v3496_v58 = vadd.f32 %v3495_v10, %v7515_v21  ;;  %v6064_v24 = vld [vmem:[%s8297_s1 + $0x548] sm:$0xff]  ;;  %v4669_v10 = vld [vmem:[%s8299_s0 + $0x430] sm:$0xf] }
 0x270   :  { %v3642_v34 = vpop.f32.mrf.mxu0  ;;  %v6088_v23 = vld [vmem:[%s8297_s1 + $0x608] sm:$0xff]  ;;  %3869 = vmatpush.bf16.msra.mxu1 %v6064_v24 }
 0x271   :  { %3690 = vmatmul.bf16.gmra.mxu1 %v4466_v27  ;;  %3739 = vmatmul.bf16.gmra.mxu2 %v4470_v6  ;;  %v7830_v35 = vadd.f32 %v3639_v49, %v3591_v7  ;;  %v5828_v27 = vld [vmem:[%s8299_s0 + $0x42c] sm:$0xf]  ;;  %v4663_v6 = vld [vmem:[%s8299_s0 + $0x48c] sm:$0xf0]  ;;  %v4671_v7 = vld [vmem:[%s8299_s0 + $0x494] sm:$0xf0] }
 0x272   :  { %4016 = vmatpush.bf16.msra.mxu0 %v6088_v23 }
 0x273   :  { %3788 = vmatmul.bf16.gmra.mxu3 %v4474_v30  ;;  %3837 = vmatmul.bf16.gmra.mxu0 %v4478_v18  ;;  %v5841_v30 = vld [vmem:[%s8299_s0 + $0x490] sm:$0xf0] }
 0x274   :  { %v3544_v37 = vpop.f32.mrf.mxu2  ;;  %v5829_v18 = vld [vmem:[%s8299_s0 + $0x434] sm:$0xf] }
 0x275   :  { %v3545_v38 = vadd.f32 %v3544_v37, %v3496_v58  ;;  %v4677_v58 = vld [vmem:[%s8299_s0 + $0x438] sm:$0xf] }
 0x276   :  { %v3593_v21 = vpop.f32.mrf.mxu3  ;;  %v3497_v14 = vpop.f32.mrf.mxu1 }
 0x277   :  { %v3594_v42 = vadd.f32 %v3593_v21, %v3545_v38  ;;  %v3498_v44 = vadd.f32 %v3497_v14, %v7536_v13  ;;  %v4666_v38 = vor.u32 %v5828_v27, %v4663_v6  ;;  %v4670_v21 = vor.u32 %v5841_v30, %v4669_v10 }
 0x278   :  { %v3644_v29 = vpop.f32.mrf.mxu0 }
 0x279   :  { %v7851_v13 = vadd.f32 %v3642_v34, %v3594_v42  ;;  %v5842_v34 = vld [vmem:[%s8299_s0 + $0x498] sm:$0xf0]  ;;  %v4674_v42 = vor.u32 %v5829_v18, %v4671_v7 }
 0x27c   :  { %v3546_v41 = vpop.f32.mrf.mxu2 }
 0x27d   :  { %v3547_v4 = vadd.f32 %v3546_v41, %v3498_v44  ;;  %v4678_v44 = vor.u32 %v5842_v34, %v4677_v58 }
 0x27e   :  { %v3595_v0 = vpop.f32.mrf.mxu3  ;;  %v3500_v39 = vpop.f32.mrf.mxu1 }
 0x27f   :  { %v3596_v49 = vadd.f32 %v3595_v0, %v3547_v4  ;;  %v3501_v22 = vadd.f32 %v3500_v39, %v7557_v63  ;;  %v6063_v4 = vld [vmem:[%s8297_s1 + $0x540] sm:$0xff]  ;;  %v4769_v39 = vld [vmem:[%s8299_s0 + $0x4f8] sm:$0xf] }
 0x280   :  { %v3647_v50 = vpop.f32.mrf.mxu0  ;;  %v6087_v0 = vld [vmem:[%s8297_s1 + $0x600] sm:$0xff]  ;;  %3870 = vmatpush.bf16.msra.mxu1 %v6063_v4 }
 0x281   :  { %3695 = vmatmul.bf16.gmra.mxu1 %v4566_v1  ;;  %3744 = vmatmul.bf16.gmra.mxu2 %v4570_v26  ;;  %v7872_v8 = vadd.f32 %v3644_v29, %v3596_v49  ;;  %v5853_v1 = vld [vmem:[%s8299_s0 + $0x4f4] sm:$0xf]  ;;  %v4763_v26 = vld [vmem:[%s8299_s0 + $0x554] sm:$0xf0]  ;;  %v4771_v49 = vld [vmem:[%s8299_s0 + $0x55c] sm:$0xf0] }
 0x282   :  { %4017 = vmatpush.bf16.msra.mxu0 %v6087_v0 }
 0x283   :  { %3793 = vmatmul.bf16.gmra.mxu3 %v4574_v56  ;;  %3842 = vmatmul.bf16.gmra.mxu0 %v4578_v62  ;;  %v5866_v56 = vld [vmem:[%s8299_s0 + $0x558] sm:$0xf0] }
 0x284   :  { %v3549_v11 = vpop.f32.mrf.mxu2  ;;  %v5854_v62 = vld [vmem:[%s8299_s0 + $0x4fc] sm:$0xf] }
 0x285   :  { %v3550_v12 = vadd.f32 %v3549_v11, %v3501_v22  ;;  %v4777_v22 = vld [vmem:[%s8299_s0 + $0x500] sm:$0xf] }
 0x286   :  { %v3598_v63 = vpop.f32.mrf.mxu3  ;;  %v3502_v43 = vpop.f32.mrf.mxu1 }
 0x287   :  { %v3599_v17 = vadd.f32 %v3598_v63, %v3550_v12  ;;  %v3503_v19 = vadd.f32 %v3502_v43, %v7578_v53  ;;  %v4766_v12 = vor.u32 %v5853_v1, %v4763_v26  ;;  %v4770_v63 = vor.u32 %v5866_v56, %v4769_v39 }
 0x288   :  { %v3649_v3 = vpop.f32.mrf.mxu0 }
 0x289   :  { %v7893_v53 = vadd.f32 %v3647_v50, %v3599_v17  ;;  %v5867_v50 = vld [vmem:[%s8299_s0 + $0x560] sm:$0xf0]  ;;  %v4774_v17 = vor.u32 %v5854_v62, %v4771_v49  ;;  %v5705_v62 = vld [vmem:[%s8299_s0 + $0x54] sm:$0xf] }
 0x28c   :  { %v3551_v16 = vpop.f32.mrf.mxu2 }
 0x28d   :  { %v3552_v46 = vadd.f32 %v3551_v16, %v3503_v19  ;;  %v4778_v19 = vor.u32 %v5867_v50, %v4777_v22  ;;  %v5878_v16 = vld [vmem:[%s8299_s0 + $0x5bc] sm:$0xf]  ;;  %v4185_v22 = vld [vmem:[%s8299_s0 + $0x58] sm:$0xf] }
 0x28e   :  { %v3600_v37 = vpop.f32.mrf.mxu3  ;;  %v3505_v14 = vpop.f32.mrf.mxu1  ;;  %v5718_v50 = vld [vmem:[%s8299_s0 + $0xb8] sm:$0xf0] }
 0x28f   :  { %v3601_v29 = vadd.f32 %v3600_v37, %v3552_v46  ;;  %v3506_v60 = vadd.f32 %v3505_v14, %v7599_v36  ;;  %v4869_v37 = vld [vmem:[%s8299_s0 + $0x5c0] sm:$0xf]  ;;  %v4877_v14 = vld [vmem:[%s8299_s0 + $0x5c8] sm:$0xf] }
 0x290   :  { %v3652_v47 = vpop.f32.mrf.mxu0 }
 0x291   :  { %3700 = vmatmul.bf16.gmra.mxu1 %v4666_v38  ;;  %3749 = vmatmul.bf16.gmra.mxu2 %v4670_v21  ;;  %v7914_v48 = vadd.f32 %v3649_v3, %v3601_v29  ;;  %v5891_v38 = vld [vmem:[%s8299_s0 + $0x620] sm:$0xf0]  ;;  %v4871_v21 = vld [vmem:[%s8299_s0 + $0x624] sm:$0xf0] }
 0x292   :  { %v4870_v33 = vor.u32 %v5891_v38, %v4869_v37 }
 0x293   :  { %3798 = vmatmul.bf16.gmra.mxu3 %v4674_v42  ;;  %3847 = vmatmul.bf16.gmra.mxu0 %v4678_v44  ;;  %v5892_v42 = vld [vmem:[%s8299_s0 + $0x628] sm:$0xf0] }
 0x294   :  { %v3554_v51 = vpop.f32.mrf.mxu2 }
 0x295   :  { %v3555_v52 = vadd.f32 %v3554_v51, %v3506_v60 }
 0x296   :  { %v3603_v36 = vpop.f32.mrf.mxu3  ;;  %v3507_v31 = vpop.f32.mrf.mxu1 }
 0x297   :  { %v3604_v55 = vadd.f32 %v3603_v36, %v3555_v52  ;;  %v3508_v57 = vadd.f32 %v3507_v31, %v7620_v32  ;;  %v4878_v52 = vor.u32 %v5892_v42, %v4877_v14  ;;  %v4285_v14 = vld [vmem:[%s8299_s0 + $0x120] sm:$0xf]  ;;  %v5743_v42 = vld [vmem:[%s8299_s0 + $0x180] sm:$0xf0] }
 0x298   :  { %v3654_v41 = vpop.f32.mrf.mxu0 }
 0x299   :  { %v7935_v32 = vadd.f32 %v3652_v47, %v3604_v55 }
 0x29c   :  { %v3556_v54 = vpop.f32.mrf.mxu2 }
 0x29d   :  { %v3557_v28 = vadd.f32 %v3556_v54, %v3508_v57  ;;  %v4187_v54 = vld [vmem:[%s8299_s0 + $0xbc] sm:$0xf0] }
 0x29e   :  { %v3605_v11 = vpop.f32.mrf.mxu3  ;;  %v3510_v43 = vpop.f32.mrf.mxu1 }
 0x29f   :  { %v3606_v3 = vadd.f32 %v3605_v11, %v3557_v28  ;;  %v3511_v24 = vadd.f32 %v3510_v43, %v7641_v9  ;;  %v4863_v9 = vld [vmem:[%s8299_s0 + $0x61c] sm:$0xf0]  ;;  %v5719_v11 = vld [vmem:[%s8299_s0 + $0xc0] sm:$0xf0] }
 0x2a0   :  { %v3657_v23 = vpop.f32.mrf.mxu0  ;;  %v4866_v47 = vor.u32 %v5878_v16, %v4863_v9  ;;  %v4193_v28 = vld [vmem:[%s8299_s0 + $0x60] sm:$0xf] }
 0x2a1   :  { %3705 = vmatmul.bf16.gmra.mxu1 %v4766_v12  ;;  %3754 = vmatmul.bf16.gmra.mxu2 %v4770_v63  ;;  %v7956_v27 = vadd.f32 %v3654_v41, %v3606_v3 }
 0x2a3   :  { %3803 = vmatmul.bf16.gmra.mxu3 %v4774_v17  ;;  %3852 = vmatmul.bf16.gmra.mxu0 %v4778_v19  ;;  %v4186_v19 = vor.u32 %v5718_v50, %v4185_v22 }
 0x2a4   :  { %v3559_v6 = vpop.f32.mrf.mxu2 }
 0x2a5   :  { %v3560_v10 = vadd.f32 %v3559_v6, %v3511_v24 }
 0x2a6   :  { %v3608_v30 = vpop.f32.mrf.mxu3  ;;  %v3512_v18 = vpop.f32.mrf.mxu1 }
 0x2a7   :  { %v3609_v7 = vadd.f32 %v3608_v30, %v3560_v10  ;;  %v3513_v58 = vadd.f32 %v3512_v18, %v7662_v5  ;;  %v5879_v5 = vld [vmem:[%s8299_s0 + $0x5c4] sm:$0xf] }
 0x2a8   :  { %v3659_v34 = vpop.f32.mrf.mxu0  ;;  %v4874_v51 = vor.u32 %v5879_v5, %v4871_v21  ;;  %v5730_v5 = vld [vmem:[%s8299_s0 + $0x11c] sm:$0xf] }
 0x2a9   :  { %v7965_v46 = vadd.f32 %v3657_v23, %v3609_v7  ;;  %v4194_v23 = vor.u32 %v5719_v11, %v4193_v28  ;;  %v4385_v28 = vld [vmem:[%s8299_s0 + $0x1e8] sm:$0xf]  ;;  %v5768_v11 = vld [vmem:[%s8299_s0 + $0x248] sm:$0xf0] }
 0x2ac   :  { %v3561_v44 = vpop.f32.mrf.mxu2 }
 0x2ad   :  { %v3562_v29 = vadd.f32 %v3561_v44, %v3513_v58  ;;  %v4287_v44 = vld [vmem:[%s8299_s0 + $0x184] sm:$0xf0] }
 0x2ae   :  { %v3610_v60 = vpop.f32.mrf.mxu3  ;;  %v3515_v25 = vpop.f32.mrf.mxu1 }
 0x2af   :  { %v3611_v36 = vadd.f32 %v3610_v60, %v3562_v29  ;;  %v3516_v31 = vadd.f32 %v3515_v25, %v7683_v15  ;;  %v4179_v15 = vld [vmem:[%s8299_s0 + $0xb4] sm:$0xf0]  ;;  %v4293_v29 = vld [vmem:[%s8299_s0 + $0x128] sm:$0xf]  ;;  %v5744_v60 = vld [vmem:[%s8299_s0 + $0x188] sm:$0xf0] }
 0x2b0   :  { %v3662_v55 = vpop.f32.mrf.mxu0  ;;  %v4182_v17 = vor.u32 %v5705_v62, %v4179_v15 }
 0x2b1   :  { %3710 = vmatmul.bf16.gmra.mxu1 %v4866_v47  ;;  %3759 = vmatmul.bf16.gmra.mxu2 %v4870_v33  ;;  %v7986_v57 = vadd.f32 %v3659_v34, %v3611_v36 }
 0x2b3   :  { %3808 = vmatmul.bf16.gmra.mxu3 %v4874_v51  ;;  %3857 = vmatmul.bf16.gmra.mxu0 %v4878_v52  ;;  %v4286_v52 = vor.u32 %v5743_v42, %v4285_v14 }
 0x2b4   :  { %v3564_v41 = vpop.f32.mrf.mxu2 }
 0x2b5   :  { %v3565_v4 = vadd.f32 %v3564_v41, %v3516_v31 }
 0x2b6   :  { %v3613_v0 = vpop.f32.mrf.mxu3  ;;  %v3517_v1 = vpop.f32.mrf.mxu1 }
 0x2b7   :  { %v3614_v26 = vadd.f32 %v3613_v0, %v3565_v4  ;;  %v3518_v39 = vadd.f32 %v3517_v1, %v7704_v45  ;;  %v5706_v45 = vld [vmem:[%s8299_s0 + $0x5c] sm:$0xf] }
 0x2b8   :  { %v3664_v56 = vpop.f32.mrf.mxu0  ;;  %v4190_v24 = vor.u32 %v5706_v45, %v4187_v54  ;;  %v5755_v45 = vld [vmem:[%s8299_s0 + $0x1e4] sm:$0xf] }
 0x2b9   :  { %v7995_v49 = vadd.f32 %v3662_v55, %v3614_v26  ;;  %v4294_v55 = vor.u32 %v5744_v60, %v4293_v29  ;;  %v4485_v29 = vld [vmem:[%s8299_s0 + $0x2b0] sm:$0xf]  ;;  %v5793_v60 = vld [vmem:[%s8299_s0 + $0x310] sm:$0xf0] }
 0x2bc   :  { %v3566_v12 = vpop.f32.mrf.mxu2 }
 0x2bd   :  { %v3567_v63 = vadd.f32 %v3566_v12, %v3518_v39  ;;  %v4387_v12 = vld [vmem:[%s8299_s0 + $0x24c] sm:$0xf0] }
 0x2be   :  { %v3615_v43 = vpop.f32.mrf.mxu3  ;;  %v3676_v3 = vpop.f32.mrf.mxu1 }
 0x2bf   :  { %v3616_v6 = vadd.f32 %v3615_v43, %v3567_v63  ;;  %v3677_v10 = vadd.f32 %v3676_v3, %v7725_v61  ;;  %v4279_v61 = vld [vmem:[%s8299_s0 + $0x17c] sm:$0xf0]  ;;  %v4393_v63 = vld [vmem:[%s8299_s0 + $0x1f0] sm:$0xf]  ;;  %v5769_v43 = vld [vmem:[%s8299_s0 + $0x250] sm:$0xf0] }
 0x2c0   :  { %v3823_v30 = vpop.f32.mrf.mxu0  ;;  %v4282_v51 = vor.u32 %v5730_v5, %v4279_v61 }
 0x2c1   :  { %3871 = vmatmul.bf16.vlgmr.msra.gmra.mxu1 %v4182_v17  ;;  %3920 = vmatmul.bf16.vlgmr.msra.gmra.mxu2 %v4186_v19  ;;  %v8016_v18 = vadd.f32 %v3664_v56, %v3616_v6 }
 0x2c3   :  { %3969 = vmatmul.bf16.vlgmr.msra.gmra.mxu3 %v4190_v24  ;;  %4018 = vmatmul.bf16.vlgmr.msra.gmra.mxu0 %v4194_v23  ;;  %v4386_v23 = vor.u32 %v5768_v11, %v4385_v28 }
 0x2c4   :  { %v3725_v7 = vpop.f32.mrf.mxu2 }
 0x2c5   :  { %v3726_v58 = vadd.f32 %v3725_v7, %v3677_v10 }
 0x2c6   :  { %v3774_v34 = vpop.f32.mrf.mxu3  ;;  %v3678_v16 = vpop.f32.mrf.mxu1 }
 0x2c7   :  { %v3775_v9 = vadd.f32 %v3774_v34, %v3726_v58  ;;  %v3679_v37 = vadd.f32 %v3678_v16, %v7746_v20  ;;  %v5731_v20 = vld [vmem:[%s8299_s0 + $0x124] sm:$0xf] }
 0x2c8   :  { %v3825_v38 = vpop.f32.mrf.mxu0  ;;  %v4290_v31 = vor.u32 %v5731_v20, %v4287_v44  ;;  %v5780_v20 = vld [vmem:[%s8299_s0 + $0x2ac] sm:$0xf] }
 0x2c9   :  { %v8025_v21 = vadd.f32 %v3823_v30, %v3775_v9  ;;  %v4394_v30 = vor.u32 %v5769_v43, %v4393_v63  ;;  %v4585_v63 = vld [vmem:[%s8299_s0 + $0x378] sm:$0xf]  ;;  %v5818_v43 = vld [vmem:[%s8299_s0 + $0x3d8] sm:$0xf0] }
 0x2cc   :  { %v3727_v47 = vpop.f32.mrf.mxu2 }
 0x2cd   :  { %v3728_v33 = vadd.f32 %v3727_v47, %v3679_v37  ;;  %v4487_v47 = vld [vmem:[%s8299_s0 + $0x314] sm:$0xf0] }
 0x2ce   :  { %v3776_v25 = vpop.f32.mrf.mxu3  ;;  %v3681_v36 = vpop.f32.mrf.mxu1 }
 0x2cf   :  { %v3777_v41 = vadd.f32 %v3776_v25, %v3728_v33  ;;  %v3682_v4 = vadd.f32 %v3681_v36, %v7767_v2  ;;  %v4379_v2 = vld [vmem:[%s8299_s0 + $0x244] sm:$0xf0]  ;;  %v4493_v33 = vld [vmem:[%s8299_s0 + $0x2b8] sm:$0xf]  ;;  %v5794_v25 = vld [vmem:[%s8299_s0 + $0x318] sm:$0xf0] }
 0x2d0   :  { %v3828_v0 = vpop.f32.mrf.mxu0  ;;  %v4382_v24 = vor.u32 %v5755_v45, %v4379_v2 }
 0x2d1   :  { %3876 = vmatmul.bf16.gmra.mxu1 %v4282_v51  ;;  %3925 = vmatmul.bf16.gmra.mxu2 %v4286_v52  ;;  %v8046_v1 = vadd.f32 %v3825_v38, %v3777_v41 }
 0x2d3   :  { %3974 = vmatmul.bf16.gmra.mxu3 %v4290_v31  ;;  %4023 = vmatmul.bf16.gmra.mxu0 %v4294_v55  ;;  %v4486_v55 = vor.u32 %v5793_v60, %v4485_v29 }
 0x2d4   :  { %v3730_v26 = vpop.f32.mrf.mxu2 }
 0x2d5   :  { %v3731_v39 = vadd.f32 %v3730_v26, %v3682_v4 }
 0x2d6   :  { %v3779_v56 = vpop.f32.mrf.mxu3  ;;  %v3683_v62 = vpop.f32.mrf.mxu1 }
 0x2d7   :  { %v3780_v15 = vadd.f32 %v3779_v56, %v3731_v39  ;;  %v3684_v22 = vadd.f32 %v3683_v62, %v7788_v59  ;;  %v5756_v59 = vld [vmem:[%s8299_s0 + $0x1ec] sm:$0xf] }
 0x2d8   :  { %v3830_v50 = vpop.f32.mrf.mxu0  ;;  %v4390_v10 = vor.u32 %v5756_v59, %v4387_v12  ;;  %v5805_v59 = vld [vmem:[%s8299_s0 + $0x374] sm:$0xf] }
 0x2d9   :  { %v8055_v54 = vadd.f32 %v3828_v0, %v3780_v15  ;;  %v4494_v0 = vor.u32 %v5794_v25, %v4493_v33  ;;  %v4685_v33 = vld [vmem:[%s8299_s0 + $0x440] sm:$0xf]  ;;  %v5843_v25 = vld [vmem:[%s8299_s0 + $0x4a0] sm:$0xf0] }
 0x2dc   :  { %v3732_v17 = vpop.f32.mrf.mxu2 }
 0x2dd   :  { %v3733_v19 = vadd.f32 %v3732_v17, %v3684_v22  ;;  %v4587_v17 = vld [vmem:[%s8299_s0 + $0x3dc] sm:$0xf0] }
 0x2de   :  { %v3781_v3 = vpop.f32.mrf.mxu3  ;;  %v3686_v6 = vpop.f32.mrf.mxu1 }
 0x2df   :  { %v3782_v7 = vadd.f32 %v3781_v3, %v3733_v19  ;;  %v3687_v58 = vadd.f32 %v3686_v6, %v7809_v40  ;;  %v4479_v40 = vld [vmem:[%s8299_s0 + $0x30c] sm:$0xf0]  ;;  %v4593_v19 = vld [vmem:[%s8299_s0 + $0x380] sm:$0xf]  ;;  %v5819_v3 = vld [vmem:[%s8299_s0 + $0x3e0] sm:$0xf0] }
 0x2e0   :  { %v3833_v34 = vpop.f32.mrf.mxu0  ;;  %v4482_v31 = vor.u32 %v5780_v20, %v4479_v40 }
 0x2e1   :  { %3881 = vmatmul.bf16.gmra.mxu1 %v4382_v24  ;;  %3930 = vmatmul.bf16.gmra.mxu2 %v4386_v23  ;;  %v8076_v16 = vadd.f32 %v3830_v50, %v3782_v7 }
 0x2e3   :  { %3979 = vmatmul.bf16.gmra.mxu3 %v4390_v10  ;;  %4028 = vmatmul.bf16.gmra.mxu0 %v4394_v30  ;;  %v4586_v30 = vor.u32 %v5818_v43, %v4585_v63 }
 0x2e4   :  { %v3735_v9 = vpop.f32.mrf.mxu2 }
 0x2e5   :  { %v3736_v37 = vadd.f32 %v3735_v9, %v3687_v58 }
 0x2e6   :  { %v3784_v38 = vpop.f32.mrf.mxu3  ;;  %v3688_v5 = vpop.f32.mrf.mxu1 }
 0x2e7   :  { %v3785_v61 = vadd.f32 %v3784_v38, %v3736_v37  ;;  %v3689_v14 = vadd.f32 %v3688_v5, %v7830_v35  ;;  %v5781_v35 = vld [vmem:[%s8299_s0 + $0x2b4] sm:$0xf] }
 0x2e8   :  { %v3835_v42 = vpop.f32.mrf.mxu0  ;;  %v4490_v4 = vor.u32 %v5781_v35, %v4487_v47  ;;  %v5830_v35 = vld [vmem:[%s8299_s0 + $0x43c] sm:$0xf] }
 0x2e9   :  { %v8085_v44 = vadd.f32 %v3833_v34, %v3785_v61  ;;  %v4594_v34 = vor.u32 %v5819_v3, %v4593_v19  ;;  %v4785_v19 = vld [vmem:[%s8299_s0 + $0x508] sm:$0xf]  ;;  %v5868_v3 = vld [vmem:[%s8299_s0 + $0x568] sm:$0xf0] }
 0x2ec   :  { %v3737_v51 = vpop.f32.mrf.mxu2 }
 0x2ed   :  { %v3738_v52 = vadd.f32 %v3737_v51, %v3689_v14  ;;  %v4687_v51 = vld [vmem:[%s8299_s0 + $0x4a4] sm:$0xf0] }
 0x2ee   :  { %v3786_v36 = vpop.f32.mrf.mxu3  ;;  %v3691_v41 = vpop.f32.mrf.mxu1 }
 0x2ef   :  { %v3787_v26 = vadd.f32 %v3786_v36, %v3738_v52  ;;  %v3692_v39 = vadd.f32 %v3691_v41, %v7851_v13  ;;  %v4579_v13 = vld [vmem:[%s8299_s0 + $0x3d4] sm:$0xf0]  ;;  %v4693_v52 = vld [vmem:[%s8299_s0 + $0x448] sm:$0xf]  ;;  %v5844_v36 = vld [vmem:[%s8299_s0 + $0x4a8] sm:$0xf0] }
 0x2f0   :  { %v3838_v56 = vpop.f32.mrf.mxu0  ;;  %v4582_v10 = vor.u32 %v5805_v59, %v4579_v13 }
 0x2f1   :  { %3886 = vmatmul.bf16.gmra.mxu1 %v4482_v31  ;;  %3935 = vmatmul.bf16.gmra.mxu2 %v4486_v55  ;;  %v8106_v62 = vadd.f32 %v3835_v42, %v3787_v26 }
 0x2f3   :  { %3984 = vmatmul.bf16.gmra.mxu3 %v4490_v4  ;;  %4033 = vmatmul.bf16.gmra.mxu0 %v4494_v0  ;;  %v4686_v0 = vor.u32 %v5843_v25, %v4685_v33 }
 0x2f4   :  { %v3740_v15 = vpop.f32.mrf.mxu2 }
 0x2f5   :  { %v3741_v22 = vadd.f32 %v3740_v15, %v3692_v39 }
 0x2f6   :  { %v3789_v50 = vpop.f32.mrf.mxu3  ;;  %v3693_v45 = vpop.f32.mrf.mxu1 }
 0x2f7   :  { %v3790_v2 = vadd.f32 %v3789_v50, %v3741_v22  ;;  %v3694_v28 = vadd.f32 %v3693_v45, %v7872_v8  ;;  %v5806_v8 = vld [vmem:[%s8299_s0 + $0x37c] sm:$0xf] }
 0x2f8   :  { %v3840_v11 = vpop.f32.mrf.mxu0  ;;  %v4590_v58 = vor.u32 %v5806_v8, %v4587_v17  ;;  %v5855_v8 = vld [vmem:[%s8299_s0 + $0x504] sm:$0xf] }
 0x2f9   :  { %v8115_v12 = vadd.f32 %v3838_v56, %v3790_v2  ;;  %v4694_v56 = vor.u32 %v5844_v36, %v4693_v52  ;;  %v4885_v52 = vld [vmem:[%s8299_s0 + $0x5d0] sm:$0xf]  ;;  %v5893_v36 = vld [vmem:[%s8299_s0 + $0x630] sm:$0xf0] }
 0x2fc   :  { %v3742_v24 = vpop.f32.mrf.mxu2 }
 0x2fd   :  { %v3743_v23 = vadd.f32 %v3742_v24, %v3694_v28  ;;  %v4787_v24 = vld [vmem:[%s8299_s0 + $0x56c] sm:$0xf0] }
 0x2fe   :  { %v3791_v6 = vpop.f32.mrf.mxu3  ;;  %v3696_v7 = vpop.f32.mrf.mxu1 }
 0x2ff   :  { %v3792_v9 = vadd.f32 %v3791_v6, %v3743_v23  ;;  %v3697_v37 = vadd.f32 %v3696_v7, %v7893_v53  ;;  %v4679_v53 = vld [vmem:[%s8299_s0 + $0x49c] sm:$0xf0]  ;;  %v4793_v23 = vld [vmem:[%s8299_s0 + $0x510] sm:$0xf]  ;;  %v5869_v6 = vld [vmem:[%s8299_s0 + $0x570] sm:$0xf0] }
 0x300   :  { %v3843_v38 = vpop.f32.mrf.mxu0  ;;  %v4682_v4 = vor.u32 %v5830_v35, %v4679_v53 }
 0x301   :  { %3891 = vmatmul.bf16.gmra.mxu1 %v4582_v10  ;;  %3940 = vmatmul.bf16.gmra.mxu2 %v4586_v30  ;;  %v8136_v5 = vadd.f32 %v3840_v11, %v3792_v9 }
 0x303   :  { %3989 = vmatmul.bf16.gmra.mxu3 %v4590_v58  ;;  %4038 = vmatmul.bf16.gmra.mxu0 %v4594_v34  ;;  %v4786_v34 = vor.u32 %v5868_v3, %v4785_v19 }
 0x304   :  { %v3745_v61 = vpop.f32.mrf.mxu2 }
 0x305   :  { %v3746_v14 = vadd.f32 %v3745_v61, %v3697_v37 }
 0x306   :  { %v3794_v42 = vpop.f32.mrf.mxu3  ;;  %v3698_v20 = vpop.f32.mrf.mxu1 }
 0x307   :  { %v3795_v40 = vadd.f32 %v3794_v42, %v3746_v14  ;;  %v3699_v29 = vadd.f32 %v3698_v20, %v7914_v48  ;;  %v5831_v48 = vld [vmem:[%s8299_s0 + $0x444] sm:$0xf] }
 0x308   :  { %v3845_v60 = vpop.f32.mrf.mxu0  ;;  %v4690_v39 = vor.u32 %v5831_v48, %v4687_v51  ;;  %v5880_v48 = vld [vmem:[%s8299_s0 + $0x5cc] sm:$0xf] }
 0x309   :  { %v8145_v47 = vadd.f32 %v3843_v38, %v3795_v40  ;;  %v4794_v38 = vor.u32 %v5869_v6, %v4793_v23 }
 0x30c   :  { %v3747_v31 = vpop.f32.mrf.mxu2 }
 0x30d   :  { %v3748_v55 = vadd.f32 %v3747_v31, %v3699_v29  ;;  %v4887_v31 = vld [vmem:[%s8299_s0 + $0x634] sm:$0xf0] }
 0x30e   :  { %v3796_v41 = vpop.f32.mrf.mxu3  ;;  %v3701_v26 = vpop.f32.mrf.mxu1 }
 0x30f   :  { %v3797_v15 = vadd.f32 %v3796_v41, %v3748_v55  ;;  %v3702_v22 = vadd.f32 %v3701_v26, %v7935_v32  ;;  %v4779_v32 = vld [vmem:[%s8299_s0 + $0x564] sm:$0xf0]  ;;  %v4893_v55 = vld [vmem:[%s8299_s0 + $0x5d8] sm:$0xf]  ;;  %v5894_v41 = vld [vmem:[%s8299_s0 + $0x638] sm:$0xf0] }
 0x310   :  { %v3848_v50 = vpop.f32.mrf.mxu0  ;;  %v4782_v58 = vor.u32 %v5855_v8, %v4779_v32 }
 0x311   :  { %3896 = vmatmul.bf16.gmra.mxu1 %v4682_v4  ;;  %3945 = vmatmul.bf16.gmra.mxu2 %v4686_v0  ;;  %v8166_v45 = vadd.f32 %v3845_v60, %v3797_v15 }
 0x313   :  { %3994 = vmatmul.bf16.gmra.mxu3 %v4690_v39  ;;  %4043 = vmatmul.bf16.gmra.mxu0 %v4694_v56  ;;  %v4886_v56 = vor.u32 %v5893_v36, %v4885_v52 }
 0x314   :  { %v3750_v2 = vpop.f32.mrf.mxu2 }
 0x315   :  { %v3751_v28 = vadd.f32 %v3750_v2, %v3702_v22 }
 0x316   :  { %v3799_v11 = vpop.f32.mrf.mxu3  ;;  %v3703_v59 = vpop.f32.mrf.mxu1 }
 0x317   :  { %v3800_v13 = vadd.f32 %v3799_v11, %v3751_v28  ;;  %v3704_v63 = vadd.f32 %v3703_v59, %v7956_v27  ;;  %v5856_v27 = vld [vmem:[%s8299_s0 + $0x50c] sm:$0xf] }
 0x318   :  { %v3850_v43 = vpop.f32.mrf.mxu0  ;;  %v4790_v37 = vor.u32 %v5856_v27, %v4787_v24 }
 0x319   :  { %v8175_v17 = vadd.f32 %v3848_v50, %v3800_v13  ;;  %v4894_v50 = vor.u32 %v5894_v41, %v4893_v55 }
 0x31c   :  { %v3752_v10 = vpop.f32.mrf.mxu2 }
 0x31d   :  { %v3753_v30 = vadd.f32 %v3752_v10, %v3704_v63 }
 0x31e   :  { %v3801_v7 = vpop.f32.mrf.mxu3  ;;  %v3706_v9 = vpop.f32.mrf.mxu1 }
 0x31f   :  { %v3802_v61 = vadd.f32 %v3801_v7, %v3753_v30  ;;  %v3707_v14 = vadd.f32 %v3706_v9, %v7965_v46  ;;  %v4879_v46 = vld [vmem:[%s8299_s0 + $0x62c] sm:$0xf0] }
 0x320   :  { %v3853_v42 = vpop.f32.mrf.mxu0  ;;  %v4882_v39 = vor.u32 %v5880_v48, %v4879_v46 }
 0x321   :  { %3901 = vmatmul.bf16.gmra.mxu1 %v4782_v58  ;;  %3950 = vmatmul.bf16.gmra.mxu2 %v4786_v34  ;;  %v8196_v20 = vadd.f32 %v3850_v43, %v3802_v61 }
 0x323   :  { %3999 = vmatmul.bf16.gmra.mxu3 %v4790_v37  ;;  %4048 = vmatmul.bf16.gmra.mxu0 %v4794_v38 }
 0x324   :  { %v3755_v40 = vpop.f32.mrf.mxu2 }
 0x325   :  { %v3756_v29 = vadd.f32 %v3755_v40, %v3707_v14 }
 0x326   :  { %v3804_v60 = vpop.f32.mrf.mxu3  ;;  %v3708_v35 = vpop.f32.mrf.mxu1 }
 0x327   :  { %v3805_v53 = vadd.f32 %v3804_v60, %v3756_v29  ;;  %v3709_v33 = vadd.f32 %v3708_v35, %v7986_v57  ;;  %v5881_v57 = vld [vmem:[%s8299_s0 + $0x5d4] sm:$0xf] }
 0x328   :  { %v3855_v25 = vpop.f32.mrf.mxu0  ;;  %v4890_v22 = vor.u32 %v5881_v57, %v4887_v31 }
 0x329   :  { %v8205_v51 = vadd.f32 %v3853_v42, %v3805_v53 }
 0x32c   :  { %v3757_v4 = vpop.f32.mrf.mxu2 }
 0x32d   :  { %v3758_v0 = vadd.f32 %v3757_v4, %v3709_v33 }
 0x32e   :  { %v3806_v26 = vpop.f32.mrf.mxu3  ;;  %v3711_v15 = vpop.f32.mrf.mxu1 }
 0x32f   :  { %v3807_v2 = vadd.f32 %v3806_v26, %v3758_v0  ;;  %v3712_v28 = vadd.f32 %v3711_v15, %v7995_v49 }
 0x330   :  { %v3858_v11 = vpop.f32.mrf.mxu0 }
 0x331   :  { %3906 = vmatmul.bf16.gmra.mxu1 %v4882_v39  ;;  %3955 = vmatmul.bf16.gmra.mxu2 %v4886_v56  ;;  %v8226_v59 = vadd.f32 %v3855_v25, %v3807_v2 }
 0x333   :  { %4004 = vmatmul.bf16.gmra.mxu3 %v4890_v22  ;;  %4053 = vmatmul.bf16.gmra.mxu0 %v4894_v50 }
 0x334   :  { %v3760_v13 = vpop.f32.mrf.mxu2 }
 0x335   :  { %v3761_v63 = vadd.f32 %v3760_v13, %v3712_v28 }
 0x336   :  { %v3809_v43 = vpop.f32.mrf.mxu3  ;;  %v3713_v8 = vpop.f32.mrf.mxu1 }
 0x337   :  { %v3810_v32 = vadd.f32 %v3809_v43, %v3761_v63  ;;  %v3714_v19 = vadd.f32 %v3713_v8, %v8016_v18 }
 0x338   :  { %v3860_v3 = vpop.f32.mrf.mxu0 }
 0x339   :  { %v8229_v27 = vadd.f32 %v3858_v11, %v3810_v32 }
 0x33c   :  { %v3762_v24 = vpop.f32.mrf.mxu2 }
 0x33d   :  { %v3763_v23 = vadd.f32 %v3762_v24, %v3714_v19 }
 0x33e   :  { %v3811_v49 = vpop.f32.mrf.mxu3  ;;  %v3872_v6 = vpop.f32.mrf.mxu1 }
 0x33f   :  { %v3812_v10 = vadd.f32 %v3811_v49, %v3763_v23  ;;  %v3873_v58 = vadd.f32 %v3872_v6, %v8025_v21 }
 0x340   :  { %v4019_v30 = vpop.f32.mrf.mxu0 }
 0x341   :  { %v8231_v7 = vadd.f32 %v3860_v3, %v3812_v10 }
 0x344   :  { %v3921_v34 = vpop.f32.mrf.mxu2 }
 0x345   :  { %v3922_v9 = vadd.f32 %v3921_v34, %v3873_v58 }
 0x346   :  { %v3970_v37 = vpop.f32.mrf.mxu3  ;;  %v3874_v38 = vpop.f32.mrf.mxu1 }
 0x347   :  { %v3971_v61 = vadd.f32 %v3970_v37, %v3922_v9  ;;  %v3875_v40 = vadd.f32 %v3874_v38, %v8046_v1 }
 0x348   :  { %v4021_v14 = vpop.f32.mrf.mxu0 }
 0x349   :  { %v4020_v18 = vadd.f32 %v4019_v30, %v3971_v61 }
 0x34b   :  { %v4059_v42 = vmax.f32 %v4020_v18, 0.0 }
 0x34c   :  { %v3923_v29 = vpop.f32.mrf.mxu2 }
 0x34d   :  { %4075 = vst [vmem:[%s8300_s3] sm:$0xff] %v4059_v42  ;;  %v3924_v60 = vadd.f32 %v3923_v29, %v3875_v40 }
 0x34e   :  { %v3972_v35 = vpop.f32.mrf.mxu3  ;;  %v3877_v53 = vpop.f32.mrf.mxu1 }
 0x34f   :  { %v3973_v33 = vadd.f32 %v3972_v35, %v3924_v60  ;;  %v3878_v46 = vadd.f32 %v3877_v53, %v8055_v54 }
 0x350   :  { %v4024_v21 = vpop.f32.mrf.mxu0 }
 0x351   :  { %v4022_v25 = vadd.f32 %v4021_v14, %v3973_v33 }
 0x353   :  { %v4060_v48 = vmax.f32 %v4022_v25, 0.0 }
 0x354   :  { %v3926_v52 = vpop.f32.mrf.mxu2 }
 0x355   :  { %4076 = vst [vmem:[%s8300_s3 + $0x8] sm:$0xff] %v4060_v48  ;;  %v3927_v1 = vadd.f32 %v3926_v52, %v3878_v46 }
 0x356   :  { %v3975_v36 = vpop.f32.mrf.mxu3  ;;  %v3879_v57 = vpop.f32.mrf.mxu1 }
 0x357   :  { %v3976_v31 = vadd.f32 %v3975_v36, %v3927_v1  ;;  %v3880_v0 = vadd.f32 %v3879_v57, %v8076_v16 }
 0x358   :  { %v4026_v55 = vpop.f32.mrf.mxu0 }
 0x359   :  { %v4025_v41 = vadd.f32 %v4024_v21, %v3976_v31 }
 0x35b   :  { %v4061_v4 = vmax.f32 %v4025_v41, 0.0 }
 0x35c   :  { %v3928_v26 = vpop.f32.mrf.mxu2 }
 0x35d   :  { %4077 = vst [vmem:[%s8300_s3 + $0x10] sm:$0xff] %v4061_v4  ;;  %v3929_v54 = vadd.f32 %v3928_v26, %v3880_v0 }
 0x35e   :  { %v3977_v39 = vpop.f32.mrf.mxu3  ;;  %v3882_v56 = vpop.f32.mrf.mxu1 }
 0x35f   :  { %v3978_v15 = vadd.f32 %v3977_v39, %v3929_v54  ;;  %v3883_v28 = vadd.f32 %v3882_v56, %v8085_v44 }
 0x360   :  { %v4029_v22 = vpop.f32.mrf.mxu0 }
 0x361   :  { %v4027_v50 = vadd.f32 %v4026_v55, %v3978_v15 }
 0x363   :  { %v4062_v2 = vmax.f32 %v4027_v50, 0.0 }
 0x364   :  { %v3931_v11 = vpop.f32.mrf.mxu2 }
 0x365   :  { %4078 = vst [vmem:[%s8300_s3 + $0x18] sm:$0xff] %v4062_v2  ;;  %v3932_v16 = vadd.f32 %v3931_v11, %v3883_v28 }
 0x366   :  { %v3980_v13 = vpop.f32.mrf.mxu3  ;;  %v3884_v63 = vpop.f32.mrf.mxu1 }
 0x367   :  { %v3981_v43 = vadd.f32 %v3980_v13, %v3932_v16  ;;  %v3885_v3 = vadd.f32 %v3884_v63, %v8106_v62 }
 0x368   :  { %v4031_v8 = vpop.f32.mrf.mxu0 }
 0x369   :  { %v4030_v32 = vadd.f32 %v4029_v22, %v3981_v43 }
 0x36b   :  { %v4063_v19 = vmax.f32 %v4030_v32, 0.0 }
 0x36c   :  { %v3933_v24 = vpop.f32.mrf.mxu2 }
 0x36d   :  { %4079 = vst [vmem:[%s8300_s3 + $0x20] sm:$0xff] %v4063_v19  ;;  %v3934_v44 = vadd.f32 %v3933_v24, %v3885_v3 }
 0x36e   :  { %v3982_v23 = vpop.f32.mrf.mxu3  ;;  %v3887_v49 = vpop.f32.mrf.mxu1 }
 0x36f   :  { %v3983_v6 = vadd.f32 %v3982_v23, %v3934_v44  ;;  %v3888_v34 = vadd.f32 %v3887_v49, %v8115_v12 }
 0x370   :  { %v4034_v10 = vpop.f32.mrf.mxu0 }
 0x371   :  { %v4032_v30 = vadd.f32 %v4031_v8, %v3983_v6 }
 0x373   :  { %v4064_v58 = vmax.f32 %v4032_v30, 0.0 }
 0x374   :  { %v3936_v9 = vpop.f32.mrf.mxu2 }
 0x375   :  { %4080 = vst [vmem:[%s8300_s3 + $0x28] sm:$0xff] %v4064_v58  ;;  %v3937_v62 = vadd.f32 %v3936_v9, %v3888_v34 }
 0x376   :  { %v3985_v37 = vpop.f32.mrf.mxu3  ;;  %v3889_v38 = vpop.f32.mrf.mxu1 }
 0x377   :  { %v3986_v61 = vadd.f32 %v3985_v37, %v3937_v62  ;;  %v3890_v40 = vadd.f32 %v3889_v38, %v8136_v5 }
 0x378   :  { %v4036_v14 = vpop.f32.mrf.mxu0 }
 0x379   :  { %v4035_v18 = vadd.f32 %v4034_v10, %v3986_v61 }
 0x37b   :  { %v4065_v42 = vmax.f32 %v4035_v18, 0.0 }
 0x37c   :  { %v3938_v29 = vpop.f32.mrf.mxu2 }
 0x37d   :  { %4081 = vst [vmem:[%s8300_s3 + $0x30] sm:$0xff] %v4065_v42  ;;  %v3939_v12 = vadd.f32 %v3938_v29, %v3890_v40 }
 0x37e   :  { %v3987_v60 = vpop.f32.mrf.mxu3  ;;  %v3892_v35 = vpop.f32.mrf.mxu1 }
 0x37f   :  { %v3988_v53 = vadd.f32 %v3987_v60, %v3939_v12  ;;  %v3893_v48 = vadd.f32 %v3892_v35, %v8145_v47 }
 0x380   :  { %v4039_v33 = vpop.f32.mrf.mxu0 }
 0x381   :  { %v4037_v21 = vadd.f32 %v4036_v14, %v3988_v53 }
 0x383   :  { %v4066_v25 = vmax.f32 %v4037_v21, 0.0 }
 0x384   :  { %v3941_v46 = vpop.f32.mrf.mxu2 }
 0x385   :  { %4082 = vst [vmem:[%s8300_s3 + $0x38] sm:$0xff] %v4066_v25  ;;  %v3942_v5 = vadd.f32 %v3941_v46, %v3893_v48 }
 0x386   :  { %v3990_v52 = vpop.f32.mrf.mxu3  ;;  %v3894_v1 = vpop.f32.mrf.mxu1 }
 0x387   :  { %v3991_v36 = vadd.f32 %v3990_v52, %v3942_v5  ;;  %v3895_v41 = vadd.f32 %v3894_v1, %v8166_v45 }
 0x388   :  { %v4041_v57 = vpop.f32.mrf.mxu0 }
 0x389   :  { %v4040_v31 = vadd.f32 %v4039_v33, %v3991_v36 }
 0x38b   :  { %v4067_v55 = vmax.f32 %v4040_v31, 0.0 }
 0x38c   :  { %v3943_v4 = vpop.f32.mrf.mxu2 }
 0x38d   :  { %4083 = vst [vmem:[%s8300_s3 + $0x40] sm:$0xff] %v4067_v55  ;;  %v3944_v47 = vadd.f32 %v3943_v4, %v3895_v41 }
 0x38e   :  { %v3992_v0 = vpop.f32.mrf.mxu3  ;;  %v3897_v26 = vpop.f32.mrf.mxu1 }
 0x38f   :  { %v3993_v54 = vadd.f32 %v3992_v0, %v3944_v47  ;;  %v3898_v22 = vadd.f32 %v3897_v26, %v8175_v17 }
 0x390   :  { %v4044_v39 = vpop.f32.mrf.mxu0 }
 0x391   :  { %v4042_v56 = vadd.f32 %v4041_v57, %v3993_v54 }
 0x393   :  { %v4068_v15 = vmax.f32 %v4042_v56, 0.0 }
 0x394   :  { %v3946_v50 = vpop.f32.mrf.mxu2 }
 0x395   :  { %4084 = vst [vmem:[%s8300_s3 + $0x48] sm:$0xff] %v4068_v15  ;;  %v3947_v45 = vadd.f32 %v3946_v50, %v3898_v22 }
 0x396   :  { %v3995_v2 = vpop.f32.mrf.mxu3  ;;  %v3899_v28 = vpop.f32.mrf.mxu1 }
 0x397   :  { %v3996_v11 = vadd.f32 %v3995_v2, %v3947_v45  ;;  %v3900_v43 = vadd.f32 %v3899_v28, %v8196_v20 }
 0x398   :  { %v4046_v16 = vpop.f32.mrf.mxu0 }
 0x399   :  { %v4045_v13 = vadd.f32 %v4044_v39, %v3996_v11 }
 0x39b   :  { %v4069_v63 = vmax.f32 %v4045_v13, 0.0 }
 0x39c   :  { %v3948_v8 = vpop.f32.mrf.mxu2 }
 0x39d   :  { %4085 = vst [vmem:[%s8300_s3 + $0x50] sm:$0xff] %v4069_v63  ;;  %v3949_v17 = vadd.f32 %v3948_v8, %v3900_v43 }
 0x39e   :  { %v3997_v32 = vpop.f32.mrf.mxu3  ;;  %v3902_v19 = vpop.f32.mrf.mxu1 }
 0x39f   :  { %v3998_v3 = vadd.f32 %v3997_v32, %v3949_v17  ;;  %v3903_v49 = vadd.f32 %v3902_v19, %v8205_v51 }
 0x3a0   :  { %v4049_v44 = vpop.f32.mrf.mxu0 }
 0x3a1   :  { %v4047_v24 = vadd.f32 %v4046_v16, %v3998_v3 }
 0x3a3   :  { %v4070_v23 = vmax.f32 %v4047_v24, 0.0 }
 0x3a4   :  { %v3951_v6 = vpop.f32.mrf.mxu2 }
 0x3a5   :  { %4086 = vst [vmem:[%s8300_s3 + $0x58] sm:$0xff] %v4070_v23  ;;  %v3952_v20 = vadd.f32 %v3951_v6, %v3903_v49 }
 0x3a6   :  { %v4000_v10 = vpop.f32.mrf.mxu3  ;;  %v3904_v30 = vpop.f32.mrf.mxu1 }
 0x3a7   :  { %v4001_v58 = vadd.f32 %v4000_v10, %v3952_v20  ;;  %v3905_v62 = vadd.f32 %v3904_v30, %v8226_v59 }
 0x3a8   :  { %v4051_v37 = vpop.f32.mrf.mxu0 }
 0x3a9   :  { %v4050_v34 = vadd.f32 %v4049_v44, %v4001_v58 }
 0x3ab   :  { %v4071_v9 = vmax.f32 %v4050_v34, 0.0 }
 0x3ac   :  { %v3953_v38 = vpop.f32.mrf.mxu2 }
 0x3ad   :  { %4087 = vst [vmem:[%s8300_s3 + $0x60] sm:$0xff] %v4071_v9  ;;  %v3954_v51 = vadd.f32 %v3953_v38, %v3905_v62 }
 0x3ae   :  { %v4002_v61 = vpop.f32.mrf.mxu3  ;;  %v3907_v14 = vpop.f32.mrf.mxu1 }
 0x3af   :  { %v4003_v18 = vadd.f32 %v4002_v61, %v3954_v51  ;;  %v3908_v29 = vadd.f32 %v3907_v14, %v8229_v27 }
 0x3b0   :  { %v4054_v35 = vpop.f32.mrf.mxu0 }
 0x3b1   :  { %v4052_v42 = vadd.f32 %v4051_v37, %v4003_v18 }
 0x3b3   :  { %v4072_v40 = vmax.f32 %v4052_v42, 0.0 }
 0x3b4   :  { %v3956_v12 = vpop.f32.mrf.mxu2 }
 0x3b5   :  { %4088 = vst [vmem:[%s8300_s3 + $0x68] sm:$0xff] %v4072_v40  ;;  %v3957_v59 = vadd.f32 %v3956_v12, %v3908_v29 }
 0x3b6   :  { %v4005_v60 = vpop.f32.mrf.mxu3  ;;  %v3909_v33 = vpop.f32.mrf.mxu1 }
 0x3b7   :  { %v4006_v53 = vadd.f32 %v4005_v60, %v3957_v59  ;;  %v3910_v48 = vadd.f32 %v3909_v33, %v8231_v7 }
 0x3b8   :  { %v4056_v1 = vpop.f32.mrf.mxu0 }
 0x3b9   :  { %v4055_v21 = vadd.f32 %v4054_v35, %v4006_v53 }
 0x3bb   :  { %v4073_v25 = vmax.f32 %v4055_v21, 0.0 }
 0x3bc   :  { %v3958_v46 = vpop.f32.mrf.mxu2 }
 0x3bd   :  { %4089 = vst [vmem:[%s8300_s3 + $0x70] sm:$0xff] %v4073_v25  ;;  %v3959_v27 = vadd.f32 %v3958_v46, %v3910_v48 }
 0x3be   :  { %v4007_v5 = vpop.f32.mrf.mxu3 }
 0x3bf   :  { %v4008_v52 = vadd.f32 %v4007_v5, %v3959_v27 }
 0x3c1   :  { %v4057_v36 = vadd.f32 %v4056_v1, %v4008_v52 }
 0x3c3   :  { %v4074_v57 = vmax.f32 %v4057_v36, 0.0 }
 0x3c5   :  { %4090 = vst [vmem:[%s8300_s3 + $0x78] sm:$0xff] %v4074_v57 }

</bundles_post_ra>
